<compile_context>
chip_gen: v7x
topology: tpu7x:2x2x1
jax: 0.10.0
libtpu: 0.0.40
codegen_flags: <defaults>
</compile_context>

<pallas_src>
import functools

import jax
import jax.numpy as jnp
from jax.experimental import pallas as pl
from jax.experimental.pallas import tpu as pltpu

# Small, self-consistent sizes (module defaults are 256/256/2; scaled down).
EMBED_SIZE = 32
HIDDEN_SIZE = 32
NUM_LAYERS = 2          # kernel below is written for exactly 2 layers
VOCAB_SIZE = 48
VOCAB_PAD = 128         # lane-dense logits width written by the kernel
CNN_FEAT = 64           # stand-in for resnet50's 2048-dim pooled features
C_IN = 4                # image channels
K_RAW = 9 * C_IN        # im2col contraction dim (3x3 conv)
K_PAD = 128             # lane-aligned contraction dim


# ----------------------------------------------------------------------------
# Encoder kernel: im2col-conv matmul + ReLU + global-avg-pool (sublane reduce)
#                 + fc with BatchNorm1d (eval) folded in, fused in one kernel.
# ----------------------------------------------------------------------------
def encoder_kernel(p_ref, wc_ref, bc_ref, wfc_ref, bfc_ref, out_ref):
    # p_ref:   (B*P, K_PAD) zero-padded im2col patches
    # wc_ref:  (K_PAD, Cf)  conv weight (rows >= K_RAW are zero)
    # bc_ref:  (1, Cf)
    # wfc_ref: (Cf, E)      fc weight with BatchNorm1d (eval) folded in
    # bfc_ref: (1, E)       fc bias with BatchNorm1d (eval) folded in
    # out_ref: (B, E)
    B = out_ref.shape[0]
    P = p_ref.shape[0] // B
    conv = jnp.dot(p_ref[...], wc_ref[...], preferred_element_type=jnp.float32)
    conv = jnp.maximum(conv + bc_ref[...], 0.0)                       # ReLU
    # Global average pool as per-batch sublane reductions (XLU), replacing the
    # old (B, B*P) x (B*P, Cf) matmul against a mostly-zero pooling matrix.
    pooled = jnp.concatenate(
        [jnp.mean(conv[b * P:(b + 1) * P, :], axis=0, keepdims=True)
         for b in range(B)],
        axis=0)                                                       # (B, Cf)
    feat = jnp.dot(pooled, wfc_ref[...],
                   preferred_element_type=jnp.float32) + bfc_ref[...]
    out_ref[...] = feat.astype(out_ref.dtype)


# ----------------------------------------------------------------------------
# Decoder kernel: 2-layer LSTM (PyTorch gate order i,f,g,o) + output Linear.
#   - time-parallel input projection hoisted before the recurrence
#   - state carried in registers through a fully-unrolled static loop
#   - whole-vreg activations + pltpu.roll gate alignment (no lane sub-slices)
#   - output projection hoisted after the recurrence, single lane-dense store
# ----------------------------------------------------------------------------
def decoder_kernel(x_ref, wih0_ref, b0_ref, whh0_ref, wih1_ref, whh1_ref,
                   b1_ref, wout_ref, bout_ref, out_ref, *, batch, hidden):
    # x_ref:   (T*B, E) time-major flattened inputs (t-major, b-minor)
    # wih0:    (E, 4H); b0/b1: (1, 4H)  (b_ih + b_hh folded)
    # whh0/wih1/whh1: (4H, 4H) with zero rows for j >= H ("wide state" trick)
    # wout:    (4H, VPAD) zero rows >= H, zero cols >= V; bout: (1, VPAD)
    # out_ref: (T*B, VPAD)
    B, H = batch, hidden
    T = x_ref.shape[0] // B
    G = 4 * H

    # Hoisted time-parallel layer-0 input projection: one (T*B,E)x(E,4H) matmul.
    xproj = jnp.dot(x_ref[...], wih0_ref[...],
                    preferred_element_type=jnp.float32) + b0_ref[...]

    def lstm_cell(g, c):
        # g: (B, 4H) pre-activations laid out [i | f | g | o] (PyTorch order).
        # Whole-vreg sigmoid/tanh go to the EUP; gate alignment uses XLU lane
        # rotations.  State stays "wide" (B, 4H): real h/c in lanes [0, H),
        # bounded junk elsewhere (inert thanks to zero-padded weight rows).
        sig = jax.nn.sigmoid(g)
        th = jnp.tanh(g)
        f_al = pltpu.roll(sig, shift=3 * H, axis=1)    # f       -> lanes [0,H)
        g_al = pltpu.roll(th, shift=2 * H, axis=1)     # tanh(g) -> lanes [0,H)
        o_al = pltpu.roll(sig, shift=1 * H, axis=1)    # o       -> lanes [0,H)
        c_new = f_al * c + sig * g_al                  # lanes [0,H): f*c + i*g
        h_new = o_al * jnp.tanh(c_new)                 # lanes [0,H): o*tanh(c)
        return h_new, c_new

    zeros = jnp.zeros((B, G), jnp.float32)
    h0, c0, h1, c1 = zeros, zeros, zeros, zeros
    hs = []
    for t in range(T):  # static trip count -> fully unrolled for the scheduler
        g0 = xproj[t * B:(t + 1) * B, :] + jnp.dot(
            h0, whh0_ref[...], preferred_element_type=jnp.float32)
        h0, c0 = lstm_cell(g0, c0)
        g1 = (jnp.dot(h0, wih1_ref[...], preferred_element_type=jnp.float32)
              + jnp.dot(h1, whh1_ref[...], preferred_element_type=jnp.float32)
              + b1_ref[...])
        h1, c1 = lstm_cell(g1, c1)
        hs.append(h1)

    # Hoisted output projection: single (T*B,4H)x(4H,VPAD) matmul + one store.
    hcat = jnp.concatenate(hs, axis=0)                              # (T*B, 4H)
    logits = jnp.dot(hcat, wout_ref[...],
                     preferred_element_type=jnp.float32) + bout_ref[...]
    out_ref[...] = logits.astype(out_ref.dtype)


# ----------------------------------------------------------------------------
# Glue (layout plumbing, parameter folding / padding)
# ----------------------------------------------------------------------------
def im2col_3x3(x_nhwc):
    B, Hh, Ww, C = x_nhwc.shape
    xp = jnp.pad(x_nhwc, ((0, 0), (1, 1), (1, 1), (0, 0)))
    cols = [xp[:, i:i + Hh, j:j + Ww, :] for i in range(3) for j in range(3)]
    patches = jnp.concatenate(cols, axis=-1)          # (B, H, W, 9*C)
    return patches.reshape(B * Hh * Ww, 9 * C)


def run_encoder(params, images_nchw):
    x_nhwc = jnp.transpose(images_nchw, (0, 2, 3, 1)).astype(jnp.float32)
    B = x_nhwc.shape[0]
    patches = im2col_3x3(x_nhwc)                                   # (B*P, K)
    patches = jnp.pad(patches, ((0, 0), (0, K_PAD - K_RAW)))       # lane-align K
    wc = jnp.pad(params['conv_w'], ((0, K_PAD - K_RAW), (0, 0)))
    # Fold BatchNorm1d (eval mode, running stats) into the fc weight/bias.
    scale = params['bn_gamma'] / jnp.sqrt(params['bn_var'] + 1e-5)  # (1, E)
    wfc = params['fc_w'] * scale
    bfc = (params['fc_b'] - params['bn_mean']) * scale + params['bn_beta']
    return pl.pallas_call(
        encoder_kernel,
        out_shape=jax.ShapeDtypeStruct((B, EMBED_SIZE), jnp.float32),
        in_specs=[pl.BlockSpec(memory_space=pltpu.MemorySpace.VMEM)] * 5,
        out_specs=pl.BlockSpec(memory_space=pltpu.MemorySpace.VMEM),
    )(patches, wc, params['conv_b'], wfc, bfc)


def _pad_rows(w, rows):
    return jnp.pad(w, ((0, rows - w.shape[0]), (0, 0)))


def run_decoder(params, x_tbe):
    T, B, _ = x_tbe.shape
    G = 4 * HIDDEN_SIZE
    x2d = x_tbe.reshape(T * B, EMBED_SIZE)
    # Zero-row-padded recurrent / output weights so the decoder can keep its
    # hidden state as a "wide" (B, 4H) vreg (real state in lanes [0, H)) with
    # junk lanes contributing nothing to any matmul that consumes h.
    whh0 = _pad_rows(params['whh0'], G)
    wih1 = _pad_rows(params['wih1'], G)
    whh1 = _pad_rows(params['whh1'], G)
    wout = jnp.pad(params['wout'],
                   ((0, G - HIDDEN_SIZE), (0, VOCAB_PAD - VOCAB_SIZE)))
    bout = jnp.pad(params['bout'], ((0, 0), (0, VOCAB_PAD - VOCAB_SIZE)))
    out2d = pl.pallas_call(
        functools.partial(decoder_kernel, batch=B, hidden=HIDDEN_SIZE),
        out_shape=jax.ShapeDtypeStruct((T * B, VOCAB_PAD), jnp.float32),
        in_specs=[pl.BlockSpec(memory_space=pltpu.MemorySpace.VMEM)] * 9,
        out_specs=pl.BlockSpec(memory_space=pltpu.MemorySpace.VMEM),
    )(x2d, params['wih0'], params['b0'], whh0, wih1, whh1,
      params['b1'], wout, bout)
    # (T*B, VPAD) -> (T, B, V)
    return out2d.reshape(T, B, VOCAB_PAD)[:, :, :VOCAB_SIZE]


def cnn2rnn_forward(params, images_nchw, caption):
    # EncoderCnn
    features = run_encoder(params, images_nchw)                       # (B, E)
    # DecoderRnn
    # TODO(synk): nn.Dropout(0.5) on embeddings is treated as identity (eval mode).
    emb = jnp.take(params['embed'], caption, axis=0)                  # (B, T, E)
    seq = jnp.concatenate([features[:, None, :], emb], axis=1)        # (B, T+1, E)
    x_tbe = jnp.transpose(seq, (1, 0, 2))                             # (T+1, B, E)
    logits_tbv = run_decoder(params, x_tbe)                           # (T+1, B, V)
    return jnp.transpose(logits_tbv, (1, 0, 2))                       # (B, T+1, V)


def init_params(key):
    E, H, V, Cf, Cin = EMBED_SIZE, HIDDEN_SIZE, VOCAB_SIZE, CNN_FEAT, C_IN
    ks = jax.random.split(key, 10)
    p = {}
    # Stand-in "pretrained" CNN (frozen backbone): 3x3 conv weights.
    # TODO(synk): torchvision resnet50 backbone has no in-script equivalent;
    #             replaced by this deterministic conv + ReLU + avg-pool stand-in.
    p['conv_w'] = 0.1 * jax.random.normal(ks[0], (9 * Cin, Cf), jnp.float32)
    p['conv_b'] = jnp.zeros((1, Cf), jnp.float32)
    # EncoderCnn.fc: weight ~ N(0, 0.02), bias = 0 (exactly as in __init__).
    p['fc_w'] = 0.02 * jax.random.normal(ks[1], (Cf, E), jnp.float32)
    p['fc_b'] = jnp.zeros((1, E), jnp.float32)
    # BatchNorm1d (eval-mode running stats).
    p['bn_gamma'] = jnp.ones((1, E), jnp.float32)
    p['bn_beta'] = jnp.zeros((1, E), jnp.float32)
    p['bn_mean'] = jnp.zeros((1, E), jnp.float32)
    p['bn_var'] = jnp.ones((1, E), jnp.float32)
    # DecoderRnn.
    p['embed'] = 0.1 * jax.random.normal(ks[2], (V, E), jnp.float32)
    k = 1.0 / (H ** 0.5)
    p['wih0'] = jax.random.uniform(ks[3], (E, 4 * H), jnp.float32, -k, k)
    p['whh0'] = jax.random.uniform(ks[4], (H, 4 * H), jnp.float32, -k, k)
    p['b0'] = jax.random.uniform(ks[5], (1, 4 * H), jnp.float32, -k, k)  # b_ih+b_hh folded
    p['wih1'] = jax.random.uniform(ks[6], (H, 4 * H), jnp.float32, -k, k)
    p['whh1'] = jax.random.uniform(ks[7], (H, 4 * H), jnp.float32, -k, k)
    p['b1'] = jax.random.uniform(ks[8], (1, 4 * H), jnp.float32, -k, k)
    p['wout'] = 0.1 * jax.random.normal(ks[9], (H, V), jnp.float32)
    p['bout'] = jnp.zeros((1, V), jnp.float32)
    return p


if __name__ == "__main__":
    key = jax.random.PRNGKey(0)
    k_param, k_img, k_cap = jax.random.split(key, 3)

    B, T = 2, 8
    images = jax.random.normal(k_img, (B, C_IN, 16, 16), jnp.float32)     # NCHW
    caption = jax.random.randint(k_cap, (B, T), 0, VOCAB_SIZE, jnp.int32)

    params = init_params(k_param)
    fwd = jax.jit(cnn2rnn_forward)
    out = fwd(params, images, caption)
    out = jax.block_until_ready(out)

    assert out.shape == (B, T + 1, VOCAB_SIZE), out.shape
    assert out.dtype == jnp.float32
    assert bool(jnp.all(jnp.isfinite(out)))
    print("KERNEL_OK")
</pallas_src>

<mosaic_0001>
module attributes {stable_mosaic.version = 11 : i64} {
  func.func @encoder_kernel(%arg0: memref<512x128xf32, #tpu.memory_space<vmem>>, %arg1: memref<128x64xf32, #tpu.memory_space<vmem>>, %arg2: memref<1x64xf32, #tpu.memory_space<vmem>>, %arg3: memref<64x32xf32, #tpu.memory_space<vmem>>, %arg4: memref<1x32xf32, #tpu.memory_space<vmem>>, %arg5: memref<2x32xf32, #tpu.memory_space<vmem>>) attributes {dimension_semantics = [], scalar_prefetch = 0 : i64, scratch_operands = 0 : i64, tpu.core_type = #tpu.core_type<tc>} {
    %c0 = arith.constant 0 : index
    %c0_0 = arith.constant 0 : index
    %0 = vector.load %arg0[%c0, %c0_0] : memref<512x128xf32, #tpu.memory_space<vmem>>, vector<512x128xf32>
    %c0_1 = arith.constant 0 : index
    %c0_2 = arith.constant 0 : index
    %1 = vector.load %arg1[%c0_1, %c0_2] : memref<128x64xf32, #tpu.memory_space<vmem>>, vector<128x64xf32>
    %cst = arith.constant dense<0.000000e+00> : vector<512x64xf32>
    %2 = tpu.matmul %0, %1, %cst {dimension_numbers = #tpu.dot_dimension_numbers<[1], [0], [0], [1], [0, 0, 1, 1], [], []>} : vector<512x128xf32>, vector<128x64xf32>, vector<512x64xf32> -> vector<512x64xf32>
    %c0_3 = arith.constant 0 : index
    %c0_4 = arith.constant 0 : index
    %3 = vector.load %arg2[%c0_3, %c0_4] : memref<1x64xf32, #tpu.memory_space<vmem>>, vector<1x64xf32>
    %4 = vector.broadcast %3 : vector<1x64xf32> to vector<512x64xf32>
    %5 = arith.addf %2, %4 : vector<512x64xf32>
    %cst_5 = arith.constant 0.000000e+00 : f32
    %6 = vector.broadcast %cst_5 : f32 to vector<512x64xf32>
    %7 = arith.maximumf %5, %6 : vector<512x64xf32>
    %8 = vector.extract_strided_slice %7 {offsets = [0, 0], sizes = [256, 64], strides = [1, 1]} : vector<512x64xf32> to vector<256x64xf32>
    %cst_6 = arith.constant dense<0.000000e+00> : vector<64xf32>
    %9 = vector.multi_reduction <add>, %8, %cst_6 [0] : vector<256x64xf32> to vector<64xf32>
    %10 = vector.shape_cast %9 : vector<64xf32> to vector<1x64xf32>
    %cst_7 = arith.constant 2.560000e+02 : f32
    %11 = vector.broadcast %cst_7 : f32 to vector<1x64xf32>
    %12 = arith.divf %10, %11 : vector<1x64xf32>
    %13 = vector.extract_strided_slice %7 {offsets = [256, 0], sizes = [256, 64], strides = [1, 1]} : vector<512x64xf32> to vector<256x64xf32>
    %cst_8 = arith.constant dense<0.000000e+00> : vector<64xf32>
    %14 = vector.multi_reduction <add>, %13, %cst_8 [0] : vector<256x64xf32> to vector<64xf32>
    %15 = vector.shape_cast %14 : vector<64xf32> to vector<1x64xf32>
    %cst_9 = arith.constant 2.560000e+02 : f32
    %16 = vector.broadcast %cst_9 : f32 to vector<1x64xf32>
    %17 = arith.divf %15, %16 : vector<1x64xf32>
    %18 = tpu.concatenate %12, %17 in 0 : vector<1x64xf32>, vector<1x64xf32> -> vector<2x64xf32>
    %c0_10 = arith.constant 0 : index
    %c0_11 = arith.constant 0 : index
    %19 = vector.load %arg3[%c0_10, %c0_11] : memref<64x32xf32, #tpu.memory_space<vmem>>, vector<64x32xf32>
    %cst_12 = arith.constant dense<0.000000e+00> : vector<2x32xf32>
    %20 = tpu.matmul %18, %19, %cst_12 {dimension_numbers = #tpu.dot_dimension_numbers<[1], [0], [0], [1], [0, 0, 1, 1], [], []>} : vector<2x64xf32>, vector<64x32xf32>, vector<2x32xf32> -> vector<2x32xf32>
    %c0_13 = arith.constant 0 : index
    %c0_14 = arith.constant 0 : index
    %21 = vector.load %arg4[%c0_13, %c0_14] : memref<1x32xf32, #tpu.memory_space<vmem>>, vector<1x32xf32>
    %22 = vector.broadcast %21 : vector<1x32xf32> to vector<2x32xf32>
    %23 = arith.addf %20, %22 : vector<2x32xf32>
    %c0_15 = arith.constant 0 : index
    %c0_16 = arith.constant 0 : index
    %24 = vector.load %arg5[%c0_15, %c0_16] : memref<2x32xf32, #tpu.memory_space<vmem>>, vector<2x32xf32>
    tpu.vector_store %arg5[%c0_15, %c0_16], %23 {strides = array<i32>} : memref<2x32xf32, #tpu.memory_space<vmem>>, vector<2x32xf32>,
    return
  }
}

module attributes {stable_mosaic.version = 11 : i64} {
  func.func @decoder_kernel(%arg0: memref<18x32xf32, #tpu.memory_space<vmem>>, %arg1: memref<32x128xf32, #tpu.memory_space<vmem>>, %arg2: memref<1x128xf32, #tpu.memory_space<vmem>>, %arg3: memref<128x128xf32, #tpu.memory_space<vmem>>, %arg4: memref<128x128xf32, #tpu.memory_space<vmem>>, %arg5: memref<128x128xf32, #tpu.memory_space<vmem>>, %arg6: memref<1x128xf32, #tpu.memory_space<vmem>>, %arg7: memref<128x128xf32, #tpu.memory_space<vmem>>, %arg8: memref<1x128xf32, #tpu.memory_space<vmem>>, %arg9: memref<18x128xf32, #tpu.memory_space<vmem>>) attributes {dimension_semantics = [], scalar_prefetch = 0 : i64, scratch_operands = 0 : i64, tpu.core_type = #tpu.core_type<tc>} {
    %c0 = arith.constant 0 : index
    %c0_0 = arith.constant 0 : index
    %0 = vector.load %arg0[%c0, %c0_0] : memref<18x32xf32, #tpu.memory_space<vmem>>, vector<18x32xf32>
    %c0_1 = arith.constant 0 : index
    %c0_2 = arith.constant 0 : index
    %1 = vector.load %arg1[%c0_1, %c0_2] : memref<32x128xf32, #tpu.memory_space<vmem>>, vector<32x128xf32>
    %cst = arith.constant dense<0.000000e+00> : vector<18x128xf32>
    %2 = tpu.matmul %0, %1, %cst {dimension_numbers = #tpu.dot_dimension_numbers<[1], [0], [0], [1], [0, 0, 1, 1], [], []>} : vector<18x32xf32>, vector<32x128xf32>, vector<18x128xf32> -> vector<18x128xf32>
    %c0_3 = arith.constant 0 : index
    %c0_4 = arith.constant 0 : index
    %3 = vector.load %arg2[%c0_3, %c0_4] : memref<1x128xf32, #tpu.memory_space<vmem>>, vector<1x128xf32>
    %4 = vector.broadcast %3 : vector<1x128xf32> to vector<18x128xf32>
    %5 = arith.addf %2, %4 : vector<18x128xf32>
    %cst_5 = arith.constant 0.000000e+00 : f32
    %6 = vector.broadcast %cst_5 : f32 to vector<2x128xf32>
    %7 = vector.extract_strided_slice %5 {offsets = [0, 0], sizes = [2, 128], strides = [1, 1]} : vector<18x128xf32> to vector<2x128xf32>
    %c0_6 = arith.constant 0 : index
    %c0_7 = arith.constant 0 : index
    %8 = vector.load %arg3[%c0_6, %c0_7] : memref<128x128xf32, #tpu.memory_space<vmem>>, vector<128x128xf32>
    %cst_8 = arith.constant dense<0.000000e+00> : vector<2x128xf32>
    %9 = tpu.matmul %6, %8, %cst_8 {dimension_numbers = #tpu.dot_dimension_numbers<[1], [0], [0], [1], [0, 0, 1, 1], [], []>} : vector<2x128xf32>, vector<128x128xf32>, vector<2x128xf32> -> vector<2x128xf32>
    %10 = arith.addf %7, %9 : vector<2x128xf32>
    %11 = arith.negf %10 : vector<2x128xf32>
    %12 = math.exp %11 : vector<2x128xf32>
    %cst_9 = arith.constant 1.000000e+00 : f32
    %13 = vector.broadcast %cst_9 : f32 to vector<2x128xf32>
    %14 = arith.addf %13, %12 : vector<2x128xf32>
    %15 = arith.divf %13, %14 : vector<2x128xf32>
    %16 = math.tanh %10 : vector<2x128xf32>
    %c96_i32 = arith.constant 96 : i32
    %17 = tpu.dynamic_rotate %15 by %c96_i32 dim 1 : vector<2x128xf32>, i32 -> vector<2x128xf32>
    %c64_i32 = arith.constant 64 : i32
    %18 = tpu.dynamic_rotate %16 by %c64_i32 dim 1 : vector<2x128xf32>, i32 -> vector<2x128xf32>
    %c32_i32 = arith.constant 32 : i32
    %19 = tpu.dynamic_rotate %15 by %c32_i32 dim 1 : vector<2x128xf32>, i32 -> vector<2x128xf32>
    %20 = arith.mulf %17, %6 : vector<2x128xf32>
    %21 = arith.mulf %15, %18 : vector<2x128xf32>
    %22 = arith.addf %20, %21 : vector<2x128xf32>
    %23 = math.tanh %22 : vector<2x128xf32>
    %24 = arith.mulf %19, %23 : vector<2x128xf32>
    %c0_10 = arith.constant 0 : index
    %c0_11 = arith.constant 0 : index
    %25 = vector.load %arg4[%c0_10, %c0_11] : memref<128x128xf32, #tpu.memory_space<vmem>>, vector<128x128xf32>
    %cst_12 = arith.constant dense<0.000000e+00> : vector<2x128xf32>
    %26 = tpu.matmul %24, %25, %cst_12 {dimension_numbers = #tpu.dot_dimension_numbers<[1], [0], [0], [1], [0, 0, 1, 1], [], []>} : vector<2x128xf32>, vector<128x128xf32>, vector<2x128xf32> -> vector<2x128xf32>
    %c0_13 = arith.constant 0 : index
    %c0_14 = arith.constant 0 : index
    %27 = vector.load %arg5[%c0_13, %c0_14] : memref<128x128xf32, #tpu.memory_space<vmem>>, vector<128x128xf32>
    %cst_15 = arith.constant dense<0.000000e+00> : vector<2x128xf32>
    %28 = tpu.matmul %6, %27, %cst_15 {dimension_numbers = #tpu.dot_dimension_numbers<[1], [0], [0], [1], [0, 0, 1, 1], [], []>} : vector<2x128xf32>, vector<128x128xf32>, vector<2x128xf32> -> vector<2x128xf32>
    %29 = arith.addf %26, %28 : vector<2x128xf32>
    %c0_16 = arith.constant 0 : index
    %c0_17 = arith.constant 0 : index
    %30 = vector.load %arg6[%c0_16, %c0_17] : memref<1x128xf32, #tpu.memory_space<vmem>>, vector<1x128xf32>
    %31 = vector.broadcast %30 : vector<1x128xf32> to vector<2x128xf32>
    %32 = arith.addf %29, %31 : vector<2x128xf32>
    %33 = arith.negf %32 : vector<2x128xf32>
    %34 = math.exp %33 : vector<2x128xf32>
    %cst_18 = arith.constant 1.000000e+00 : f32
    %35 = vector.broadcast %cst_18 : f32 to vector<2x128xf32>
    %36 = arith.addf %35, %34 : vector<2x128xf32>
    %37 = arith.divf %35, %36 : vector<2x128xf32>
    %38 = math.tanh %32 : vector<2x128xf32>
    %c96_i32_19 = arith.constant 96 : i32
    %39 = tpu.dynamic_rotate %37 by %c96_i32_19 dim 1 : vector<2x128xf32>, i32 -> vector<2x128xf32>
    %c64_i32_20 = arith.constant 64 : i32
    %40 = tpu.dynamic_rotate %38 by %c64_i32_20 dim 1 : vector<2x128xf32>, i32 -> vector<2x128xf32>
    %c32_i32_21 = arith.constant 32 : i32
    %41 = tpu.dynamic_rotate %37 by %c32_i32_21 dim 1 : vector<2x128xf32>, i32 -> vector<2x128xf32>
    %42 = arith.mulf %39, %6 : vector<2x128xf32>
    %43 = arith.mulf %37, %40 : vector<2x128xf32>
    %44 = arith.addf %42, %43 : vector<2x128xf32>
    %45 = math.tanh %44 : vector<2x128xf32>
    %46 = arith.mulf %41, %45 : vector<2x128xf32>
    %47 = vector.extract_strided_slice %5 {offsets = [2, 0], sizes = [2, 128], strides = [1, 1]} : vector<18x128xf32> to vector<2x128xf32>
    %c0_22 = arith.constant 0 : index
    %c0_23 = arith.constant 0 : index
    %48 = vector.load %arg3[%c0_22, %c0_23] : memref<128x128xf32, #tpu.memory_space<vmem>>, vector<128x128xf32>
    %cst_24 = arith.constant dense<0.000000e+00> : vector<2x128xf32>
    %49 = tpu.matmul %24, %48, %cst_24 {dimension_numbers = #tpu.dot_dimension_numbers<[1], [0], [0], [1], [0, 0, 1, 1], [], []>} : vector<2x128xf32>, vector<128x128xf32>, vector<2x128xf32> -> vector<2x128xf32>
    %50 = arith.addf %47, %49 : vector<2x128xf32>
    %51 = arith.negf %50 : vector<2x128xf32>
    %52 = math.exp %51 : vector<2x128xf32>
    %cst_25 = arith.constant 1.000000e+00 : f32
    %53 = vector.broadcast %cst_25 : f32 to vector<2x128xf32>
    %54 = arith.addf %53, %52 : vector<2x128xf32>
    %55 = arith.divf %53, %54 : vector<2x128xf32>
    %56 = math.tanh %50 : vector<2x128xf32>
    %c96_i32_26 = arith.constant 96 : i32
    %57 = tpu.dynamic_rotate %55 by %c96_i32_26 dim 1 : vector<2x128xf32>, i32 -> vector<2x128xf32>
    %c64_i32_27 = arith.constant 64 : i32
    %58 = tpu.dynamic_rotate %56 by %c64_i32_27 dim 1 : vector<2x128xf32>, i32 -> vector<2x128xf32>
    %c32_i32_28 = arith.constant 32 : i32
    %59 = tpu.dynamic_rotate %55 by %c32_i32_28 dim 1 : vector<2x128xf32>, i32 -> vector<2x128xf32>
    %60 = arith.mulf %57, %22 : vector<2x128xf32>
    %61 = arith.mulf %55, %58 : vector<2x128xf32>
    %62 = arith.addf %60, %61 : vector<2x128xf32>
    %63 = math.tanh %62 : vector<2x128xf32>
    %64 = arith.mulf %59, %63 : vector<2x128xf32>
    %c0_29 = arith.constant 0 : index
    %c0_30 = arith.constant 0 : index
    %65 = vector.load %arg4[%c0_29, %c0_30] : memref<128x128xf32, #tpu.memory_space<vmem>>, vector<128x128xf32>
    %cst_31 = arith.constant dense<0.000000e+00> : vector<2x128xf32>
    %66 = tpu.matmul %64, %65, %cst_31 {dimension_numbers = #tpu.dot_dimension_numbers<[1], [0], [0], [1], [0, 0, 1, 1], [], []>} : vector<2x128xf32>, vector<128x128xf32>, vector<2x128xf32> -> vector<2x128xf32>
    %c0_32 = arith.constant 0 : index
    %c0_33 = arith.constant 0 : index
    %67 = vector.load %arg5[%c0_32, %c0_33] : memref<128x128xf32, #tpu.memory_space<vmem>>, vector<128x128xf32>
    %cst_34 = arith.constant dense<0.000000e+00> : vector<2x128xf32>
    %68 = tpu.matmul %46, %67, %cst_34 {dimension_numbers = #tpu.dot_dimension_numbers<[1], [0], [0], [1], [0, 0, 1, 1], [], []>} : vector<2x128xf32>, vector<128x128xf32>, vector<2x128xf32> -> vector<2x128xf32>
    %69 = arith.addf %66, %68 : vector<2x128xf32>
    %c0_35 = arith.constant 0 : index
    %c0_36 = arith.constant 0 : index
    %70 = vector.load %arg6[%c0_35, %c0_36] : memref<1x128xf32, #tpu.memory_space<vmem>>, vector<1x128xf32>
    %71 = vector.broadcast %70 : vector<1x128xf32> to vector<2x128xf32>
    %72 = arith.addf %69, %71 : vector<2x128xf32>
    %73 = arith.negf %72 : vector<2x128xf32>
    %74 = math.exp %73 : vector<2x128xf32>
    %cst_37 = arith.constant 1.000000e+00 : f32
    %75 = vector.broadcast %cst_37 : f32 to vector<2x128xf32>
    %76 = arith.addf %75, %74 : vector<2x128xf32>
    %77 = arith.divf %75, %76 : vector<2x128xf32>
    %78 = math.tanh %72 : vector<2x128xf32>
    %c96_i32_38 = arith.constant 96 : i32
    %79 = tpu.dynamic_rotate %77 by %c96_i32_38 dim 1 : vector<2x128xf32>, i32 -> vector<2x128xf32>
    %c64_i32_39 = arith.constant 64 : i32
    %80 = tpu.dynamic_rotate %78 by %c64_i32_39 dim 1 : vector<2x128xf32>, i32 -> vector<2x128xf32>
    %c32_i32_40 = arith.constant 32 : i32
    %81 = tpu.dynamic_rotate %77 by %c32_i32_40 dim 1 : vector<2x128xf32>, i32 -> vector<2x128xf32>
    %82 = arith.mulf %79, %44 : vector<2x128xf32>
    %83 = arith.mulf %77, %80 : vector<2x128xf32>
    %84 = arith.addf %82, %83 : vector<2x128xf32>
    %85 = math.tanh %84 : vector<2x128xf32>
    %86 = arith.mulf %81, %85 : vector<2x128xf32>
    %87 = vector.extract_strided_slice %5 {offsets = [4, 0], sizes = [2, 128], strides = [1, 1]} : vector<18x128xf32> to vector<2x128xf32>
    %c0_41 = arith.constant 0 : index
    %c0_42 = arith.constant 0 : index
    %88 = vector.load %arg3[%c0_41, %c0_42] : memref<128x128xf32, #tpu.memory_space<vmem>>, vector<128x128xf32>
    %cst_43 = arith.constant dense<0.000000e+00> : vector<2x128xf32>
    %89 = tpu.matmul %64, %88, %cst_43 {dimension_numbers = #tpu.dot_dimension_numbers<[1], [0], [0], [1], [0, 0, 1, 1], [], []>} : vector<2x128xf32>, vector<128x128xf32>, vector<2x128xf32> -> vector<2x128xf32>
    %90 = arith.addf %87, %89 : vector<2x128xf32>
    %91 = arith.negf %90 : vector<2x128xf32>
    %92 = math.exp %91 : vector<2x128xf32>
    %cst_44 = arith.constant 1.000000e+00 : f32
    %93 = vector.broadcast %cst_44 : f32 to vector<2x128xf32>
    %94 = arith.addf %93, %92 : vector<2x128xf32>
    %95 = arith.divf %93, %94 : vector<2x128xf32>
    %96 = math.tanh %90 : vector<2x128xf32>
    %c96_i32_45 = arith.constant 96 : i32
    %97 = tpu.dynamic_rotate %95 by %c96_i32_45 dim 1 : vector<2x128xf32>, i32 -> vector<2x128xf32>
    %c64_i32_46 = arith.constant 64 : i32
    %98 = tpu.dynamic_rotate %96 by %c64_i32_46 dim 1 : vector<2x128xf32>, i32 -> vector<2x128xf32>
    %c32_i32_47 = arith.constant 32 : i32
    %99 = tpu.dynamic_rotate %95 by %c32_i32_47 dim 1 : vector<2x128xf32>, i32 -> vector<2x128xf32>
    %100 = arith.mulf %97, %62 : vector<2x128xf32>
    %101 = arith.mulf %95, %98 : vector<2x128xf32>
    %102 = arith.addf %100, %101 : vector<2x128xf32>
    %103 = math.tanh %102 : vector<2x128xf32>
    %104 = arith.mulf %99, %103 : vector<2x128xf32>
    %c0_48 = arith.constant 0 : index
    %c0_49 = arith.constant 0 : index
    %105 = vector.load %arg4[%c0_48, %c0_49] : memref<128x128xf32, #tpu.memory_space<vmem>>, vector<128x128xf32>
    %cst_50 = arith.constant dense<0.000000e+00> : vector<2x128xf32>
    %106 = tpu.matmul %104, %105, %cst_50 {dimension_numbers = #tpu.dot_dimension_numbers<[1], [0], [0], [1], [0, 0, 1, 1], [], []>} : vector<2x128xf32>, vector<128x128xf32>, vector<2x128xf32> -> vector<2x128xf32>
    %c0_51 = arith.constant 0 : index
    %c0_52 = arith.constant 0 : index
    %107 = vector.load %arg5[%c0_51, %c0_52] : memref<128x128xf32, #tpu.memory_space<vmem>>, vector<128x128xf32>
    %cst_53 = arith.constant dense<0.000000e+00> : vector<2x128xf32>
    %108 = tpu.matmul %86, %107, %cst_53 {dimension_numbers = #tpu.dot_dimension_numbers<[1], [0], [0], [1], [0, 0, 1, 1], [], []>} : vector<2x128xf32>, vector<128x128xf32>, vector<2x128xf32> -> vector<2x128xf32>
    %109 = arith.addf %106, %108 : vector<2x128xf32>
    %c0_54 = arith.constant 0 : index
    %c0_55 = arith.constant 0 : index
    %110 = vector.load %arg6[%c0_54, %c0_55] : memref<1x128xf32, #tpu.memory_space<vmem>>, vector<1x128xf32>
    %111 = vector.broadcast %110 : vector<1x128xf32> to vector<2x128xf32>
    %112 = arith.addf %109, %111 : vector<2x128xf32>
    %113 = arith.negf %112 : vector<2x128xf32>
    %114 = math.exp %113 : vector<2x128xf32>
    %cst_56 = arith.constant 1.000000e+00 : f32
    %115 = vector.broadcast %cst_56 : f32 to vector<2x128xf32>
    %116 = arith.addf %115, %114 : vector<2x128xf32>
    %117 = arith.divf %115, %116 : vector<2x128xf32>
    %118 = math.tanh %112 : vector<2x128xf32>
    %c96_i32_57 = arith.constant 96 : i32
    %119 = tpu.dynamic_rotate %117 by %c96_i32_57 dim 1 : vector<2x128xf32>, i32 -> vector<2x128xf32>
    %c64_i32_58 = arith.constant 64 : i32
    %120 = tpu.dynamic_rotate %118 by %c64_i32_58 dim 1 : vector<2x128xf32>, i32 -> vector<2x128xf32>
    %c32_i32_59 = arith.constant 32 : i32
    %121 = tpu.dynamic_rotate %117 by %c32_i32_59 dim 1 : vector<2x128xf32>, i32 -> vector<2x128xf32>
    %122 = arith.mulf %119, %84 : vector<2x128xf32>
    %123 = arith.mulf %117, %120 : vector<2x128xf32>
    %124 = arith.addf %122, %123 : vector<2x128xf32>
    %125 = math.tanh %124 : vector<2x128xf32>
    %126 = arith.mulf %121, %125 : vector<2x128xf32>
    %127 = vector.extract_strided_slice %5 {offsets = [6, 0], sizes = [2, 128], strides = [1, 1]} : vector<18x128xf32> to vector<2x128xf32>
    %c0_60 = arith.constant 0 : index
    %c0_61 = arith.constant 0 : index
    %128 = vector.load %arg3[%c0_60, %c0_61] : memref<128x128xf32, #tpu.memory_space<vmem>>, vector<128x128xf32>
    %cst_62 = arith.constant dense<0.000000e+00> : vector<2x128xf32>
    %129 = tpu.matmul %104, %128, %cst_62 {dimension_numbers = #tpu.dot_dimension_numbers<[1], [0], [0], [1], [0, 0, 1, 1], [], []>} : vector<2x128xf32>, vector<128x128xf32>, vector<2x128xf32> -> vector<2x128xf32>
    %130 = arith.addf %127, %129 : vector<2x128xf32>
    %131 = arith.negf %130 : vector<2x128xf32>
    %132 = math.exp %131 : vector<2x128xf32>
    %cst_63 = arith.constant 1.000000e+00 : f32
    %133 = vector.broadcast %cst_63 : f32 to vector<2x128xf32>
    %134 = arith.addf %133, %132 : vector<2x128xf32>
    %135 = arith.divf %133, %134 : vector<2x128xf32>
    %136 = math.tanh %130 : vector<2x128xf32>
    %c96_i32_64 = arith.constant 96 : i32
    %137 = tpu.dynamic_rotate %135 by %c96_i32_64 dim 1 : vector<2x128xf32>, i32 -> vector<2x128xf32>
    %c64_i32_65 = arith.constant 64 : i32
    %138 = tpu.dynamic_rotate %136 by %c64_i32_65 dim 1 : vector<2x128xf32>, i32 -> vector<2x128xf32>
    %c32_i32_66 = arith.constant 32 : i32
    %139 = tpu.dynamic_rotate %135 by %c32_i32_66 dim 1 : vector<2x128xf32>, i32 -> vector<2x128xf32>
    %140 = arith.mulf %137, %102 : vector<2x128xf32>
    %141 = arith.mulf %135, %138 : vector<2x128xf32>
    %142 = arith.addf %140, %141 : vector<2x128xf32>
    %143 = math.tanh %142 : vector<2x128xf32>
    %144 = arith.mulf %139, %143 : vector<2x128xf32>
    %c0_67 = arith.constant 0 : index
    %c0_68 = arith.constant 0 : index
    %145 = vector.load %arg4[%c0_67, %c0_68] : memref<128x128xf32, #tpu.memory_space<vmem>>, vector<128x128xf32>
    %cst_69 = arith.constant dense<0.000000e+00> : vector<2x128xf32>
    %146 = tpu.matmul %144, %145, %cst_69 {dimension_numbers = #tpu.dot_dimension_numbers<[1], [0], [0], [1], [0, 0, 1, 1], [], []>} : vector<2x128xf32>, vector<128x128xf32>, vector<2x128xf32> -> vector<2x128xf32>
    %c0_70 = arith.constant 0 : index
    %c0_71 = arith.constant 0 : index
    %147 = vector.load %arg5[%c0_70, %c0_71] : memref<128x128xf32, #tpu.memory_space<vmem>>, vector<128x128xf32>
    %cst_72 = arith.constant dense<0.000000e+00> : vector<2x128xf32>
    %148 = tpu.matmul %126, %147, %cst_72 {dimension_numbers = #tpu.dot_dimension_numbers<[1], [0], [0], [1], [0, 0, 1, 1], [], []>} : vector<2x128xf32>, vector<128x128xf32>, vector<2x128xf32> -> vector<2x128xf32>
    %149 = arith.addf %146, %148 : vector<2x128xf32>
    %c0_73 = arith.constant 0 : index
    %c0_74 = arith.constant 0 : index
    %150 = vector.load %arg6[%c0_73, %c0_74] : memref<1x128xf32, #tpu.memory_space<vmem>>, vector<1x128xf32>
    %151 = vector.broadcast %150 : vector<1x128xf32> to vector<2x128xf32>
    %152 = arith.addf %149, %151 : vector<2x128xf32>
    %153 = arith.negf %152 : vector<2x128xf32>
    %154 = math.exp %153 : vector<2x128xf32>
    %cst_75 = arith.constant 1.000000e+00 : f32
    %155 = vector.broadcast %cst_75 : f32 to vector<2x128xf32>
    %156 = arith.addf %155, %154 : vector<2x128xf32>
    %157 = arith.divf %155, %156 : vector<2x128xf32>
    %158 = math.tanh %152 : vector<2x128xf32>
    %c96_i32_76 = arith.constant 96 : i32
    %159 = tpu.dynamic_rotate %157 by %c96_i32_76 dim 1 : vector<2x128xf32>, i32 -> vector<2x128xf32>
    %c64_i32_77 = arith.constant 64 : i32
    %160 = tpu.dynamic_rotate %158 by %c64_i32_77 dim 1 : vector<2x128xf32>, i32 -> vector<2x128xf32>
    %c32_i32_78 = arith.constant 32 : i32
    %161 = tpu.dynamic_rotate %157 by %c32_i32_78 dim 1 : vector<2x128xf32>, i32 -> vector<2x128xf32>
    %162 = arith.mulf %159, %124 : vector<2x128xf32>
    %163 = arith.mulf %157, %160 : vector<2x128xf32>
    %164 = arith.addf %162, %163 : vector<2x128xf32>
    %165 = math.tanh %164 : vector<2x128xf32>
    %166 = arith.mulf %161, %165 : vector<2x128xf32>
    %167 = vector.extract_strided_slice %5 {offsets = [8, 0], sizes = [2, 128], strides = [1, 1]} : vector<18x128xf32> to vector<2x128xf32>
    %c0_79 = arith.constant 0 : index
    %c0_80 = arith.constant 0 : index
    %168 = vector.load %arg3[%c0_79, %c0_80] : memref<128x128xf32, #tpu.memory_space<vmem>>, vector<128x128xf32>
    %cst_81 = arith.constant dense<0.000000e+00> : vector<2x128xf32>
    %169 = tpu.matmul %144, %168, %cst_81 {dimension_numbers = #tpu.dot_dimension_numbers<[1], [0], [0], [1], [0, 0, 1, 1], [], []>} : vector<2x128xf32>, vector<128x128xf32>, vector<2x128xf32> -> vector<2x128xf32>
    %170 = arith.addf %167, %169 : vector<2x128xf32>
    %171 = arith.negf %170 : vector<2x128xf32>
    %172 = math.exp %171 : vector<2x128xf32>
    %cst_82 = arith.constant 1.000000e+00 : f32
    %173 = vector.broadcast %cst_82 : f32 to vector<2x128xf32>
    %174 = arith.addf %173, %172 : vector<2x128xf32>
    %175 = arith.divf %173, %174 : vector<2x128xf32>
    %176 = math.tanh %170 : vector<2x128xf32>
    %c96_i32_83 = arith.constant 96 : i32
    %177 = tpu.dynamic_rotate %175 by %c96_i32_83 dim 1 : vector<2x128xf32>, i32 -> vector<2x128xf32>
    %c64_i32_84 = arith.constant 64 : i32
    %178 = tpu.dynamic_rotate %176 by %c64_i32_84 dim 1 : vector<2x128xf32>, i32 -> vector<2x128xf32>
    %c32_i32_85 = arith.constant 32 : i32
    %179 = tpu.dynamic_rotate %175 by %c32_i32_85 dim 1 : vector<2x128xf32>, i32 -> vector<2x128xf32>
    %180 = arith.mulf %177, %142 : vector<2x128xf32>
    %181 = arith.mulf %175, %178 : vector<2x128xf32>
    %182 = arith.addf %180, %181 : vector<2x128xf32>
    %183 = math.tanh %182 : vector<2x128xf32>
    %184 = arith.mulf %179, %183 : vector<2x128xf32>
    %c0_86 = arith.constant 0 : index
    %c0_87 = arith.constant 0 : index
    %185 = vector.load %arg4[%c0_86, %c0_87] : memref<128x128xf32, #tpu.memory_space<vmem>>, vector<128x128xf32>
    %cst_88 = arith.constant dense<0.000000e+00> : vector<2x128xf32>
    %186 = tpu.matmul %184, %185, %cst_88 {dimension_numbers = #tpu.dot_dimension_numbers<[1], [0], [0], [1], [0, 0, 1, 1], [], []>} : vector<2x128xf32>, vector<128x128xf32>, vector<2x128xf32> -> vector<2x128xf32>
    %c0_89 = arith.constant 0 : index
    %c0_90 = arith.constant 0 : index
    %187 = vector.load %arg5[%c0_89, %c0_90] : memref<128x128xf32, #tpu.memory_space<vmem>>, vector<128x128xf32>
    %cst_91 = arith.constant dense<0.000000e+00> : vector<2x128xf32>
    %188 = tpu.matmul %166, %187, %cst_91 {dimension_numbers = #tpu.dot_dimension_numbers<[1], [0], [0], [1], [0, 0, 1, 1], [], []>} : vector<2x128xf32>, vector<128x128xf32>, vector<2x128xf32> -> vector<2x128xf32>
    %189 = arith.addf %186, %188 : vector<2x128xf32>
    %c0_92 = arith.constant 0 : index
    %c0_93 = arith.constant 0 : index
    %190 = vector.load %arg6[%c0_92, %c0_93] : memref<1x128xf32, #tpu.memory_space<vmem>>, vector<1x128xf32>
    %191 = vector.broadcast %190 : vector<1x128xf32> to vector<2x128xf32>
    %192 = arith.addf %189, %191 : vector<2x128xf32>
    %193 = arith.negf %192 : vector<2x128xf32>
    %194 = math.exp %193 : vector<2x128xf32>
    %cst_94 = arith.constant 1.000000e+00 : f32
    %195 = vector.broadcast %cst_94 : f32 to vector<2x128xf32>
    %196 = arith.addf %195, %194 : vector<2x128xf32>
    %197 = arith.divf %195, %196 : vector<2x128xf32>
    %198 = math.tanh %192 : vector<2x128xf32>
    %c96_i32_95 = arith.constant 96 : i32
    %199 = tpu.dynamic_rotate %197 by %c96_i32_95 dim 1 : vector<2x128xf32>, i32 -> vector<2x128xf32>
    %c64_i32_96 = arith.constant 64 : i32
    %200 = tpu.dynamic_rotate %198 by %c64_i32_96 dim 1 : vector<2x128xf32>, i32 -> vector<2x128xf32>
    %c32_i32_97 = arith.constant 32 : i32
    %201 = tpu.dynamic_rotate %197 by %c32_i32_97 dim 1 : vector<2x128xf32>, i32 -> vector<2x128xf32>
    %202 = arith.mulf %199, %164 : vector<2x128xf32>
    %203 = arith.mulf %197, %200 : vector<2x128xf32>
    %204 = arith.addf %202, %203 : vector<2x128xf32>
    %205 = math.tanh %204 : vector<2x128xf32>
    %206 = arith.mulf %201, %205 : vector<2x128xf32>
    %207 = vector.extract_strided_slice %5 {offsets = [10, 0], sizes = [2, 128], strides = [1, 1]} : vector<18x128xf32> to vector<2x128xf32>
    %c0_98 = arith.constant 0 : index
    %c0_99 = arith.constant 0 : index
    %208 = vector.load %arg3[%c0_98, %c0_99] : memref<128x128xf32, #tpu.memory_space<vmem>>, vector<128x128xf32>
    %cst_100 = arith.constant dense<0.000000e+00> : vector<2x128xf32>
    %209 = tpu.matmul %184, %208, %cst_100 {dimension_numbers = #tpu.dot_dimension_numbers<[1], [0], [0], [1], [0, 0, 1, 1], [], []>} : vector<2x128xf32>, vector<128x128xf32>, vector<2x128xf32> -> vector<2x128xf32>
    %210 = arith.addf %207, %209 : vector<2x128xf32>
    %211 = arith.negf %210 : vector<2x128xf32>
    %212 = math.exp %211 : vector<2x128xf32>
    %cst_101 = arith.constant 1.000000e+00 : f32
    %213 = vector.broadcast %cst_101 : f32 to vector<2x128xf32>
    %214 = arith.addf %213, %212 : vector<2x128xf32>
    %215 = arith.divf %213, %214 : vector<2x128xf32>
    %216 = math.tanh %210 : vector<2x128xf32>
    %c96_i32_102 = arith.constant 96 : i32
    %217 = tpu.dynamic_rotate %215 by %c96_i32_102 dim 1 : vector<2x128xf32>, i32 -> vector<2x128xf32>
    %c64_i32_103 = arith.constant 64 : i32
    %218 = tpu.dynamic_rotate %216 by %c64_i32_103 dim 1 : vector<2x128xf32>, i32 -> vector<2x128xf32>
    %c32_i32_104 = arith.constant 32 : i32
    %219 = tpu.dynamic_rotate %215 by %c32_i32_104 dim 1 : vector<2x128xf32>, i32 -> vector<2x128xf32>
    %220 = arith.mulf %217, %182 : vector<2x128xf32>
    %221 = arith.mulf %215, %218 : vector<2x128xf32>
    %222 = arith.addf %220, %221 : vector<2x128xf32>
    %223 = math.tanh %222 : vector<2x128xf32>
    %224 = arith.mulf %219, %223 : vector<2x128xf32>
    %c0_105 = arith.constant 0 : index
    %c0_106 = arith.constant 0 : index
    %225 = vector.load %arg4[%c0_105, %c0_106] : memref<128x128xf32, #tpu.memory_space<vmem>>, vector<128x128xf32>
    %cst_107 = arith.constant dense<0.000000e+00> : vector<2x128xf32>
    %226 = tpu.matmul %224, %225, %cst_107 {dimension_numbers = #tpu.dot_dimension_numbers<[1], [0], [0], [1], [0, 0, 1, 1], [], []>} : vector<2x128xf32>, vector<128x128xf32>, vector<2x128xf32> -> vector<2x128xf32>
    %c0_108 = arith.constant 0 : index
    %c0_109 = arith.constant 0 : index
    %227 = vector.load %arg5[%c0_108, %c0_109] : memref<128x128xf32, #tpu.memory_space<vmem>>, vector<128x128xf32>
    %cst_110 = arith.constant dense<0.000000e+00> : vector<2x128xf32>
    %228 = tpu.matmul %206, %227, %cst_110 {dimension_numbers = #tpu.dot_dimension_numbers<[1], [0], [0], [1], [0, 0, 1, 1], [], []>} : vector<2x128xf32>, vector<128x128xf32>, vector<2x128xf32> -> vector<2x128xf32>
    %229 = arith.addf %226, %228 : vector<2x128xf32>
    %c0_111 = arith.constant 0 : index
    %c0_112 = arith.constant 0 : index
    %230 = vector.load %arg6[%c0_111, %c0_112] : memref<1x128xf32, #tpu.memory_space<vmem>>, vector<1x128xf32>
    %231 = vector.broadcast %230 : vector<1x128xf32> to vector<2x128xf32>
    %232 = arith.addf %229, %231 : vector<2x128xf32>
    %233 = arith.negf %232 : vector<2x128xf32>
    %234 = math.exp %233 : vector<2x128xf32>
    %cst_113 = arith.constant 1.000000e+00 : f32
    %235 = vector.broadcast %cst_113 : f32 to vector<2x128xf32>
    %236 = arith.addf %235, %234 : vector<2x128xf32>
    %237 = arith.divf %235, %236 : vector<2x128xf32>
    %238 = math.tanh %232 : vector<2x128xf32>
    %c96_i32_114 = arith.constant 96 : i32
    %239 = tpu.dynamic_rotate %237 by %c96_i32_114 dim 1 : vector<2x128xf32>, i32 -> vector<2x128xf32>
    %c64_i32_115 = arith.constant 64 : i32
    %240 = tpu.dynamic_rotate %238 by %c64_i32_115 dim 1 : vector<2x128xf32>, i32 -> vector<2x128xf32>
    %c32_i32_116 = arith.constant 32 : i32
    %241 = tpu.dynamic_rotate %237 by %c32_i32_116 dim 1 : vector<2x128xf32>, i32 -> vector<2x128xf32>
    %242 = arith.mulf %239, %204 : vector<2x128xf32>
    %243 = arith.mulf %237, %240 : vector<2x128xf32>
    %244 = arith.addf %242, %243 : vector<2x128xf32>
    %245 = math.tanh %244 : vector<2x128xf32>
    %246 = arith.mulf %241, %245 : vector<2x128xf32>
    %247 = vector.extract_strided_slice %5 {offsets = [12, 0], sizes = [2, 128], strides = [1, 1]} : vector<18x128xf32> to vector<2x128xf32>
    %c0_117 = arith.constant 0 : index
    %c0_118 = arith.constant 0 : index
    %248 = vector.load %arg3[%c0_117, %c0_118] : memref<128x128xf32, #tpu.memory_space<vmem>>, vector<128x128xf32>
    %cst_119 = arith.constant dense<0.000000e+00> : vector<2x128xf32>
    %249 = tpu.matmul %224, %248, %cst_119 {dimension_numbers = #tpu.dot_dimension_numbers<[1], [0], [0], [1], [0, 0, 1, 1], [], []>} : vector<2x128xf32>, vector<128x128xf32>, vector<2x128xf32> -> vector<2x128xf32>
    %250 = arith.addf %247, %249 : vector<2x128xf32>
    %251 = arith.negf %250 : vector<2x128xf32>
    %252 = math.exp %251 : vector<2x128xf32>
    %cst_120 = arith.constant 1.000000e+00 : f32
    %253 = vector.broadcast %cst_120 : f32 to vector<2x128xf32>
    %254 = arith.addf %253, %252 : vector<2x128xf32>
    %255 = arith.divf %253, %254 : vector<2x128xf32>
    %256 = math.tanh %250 : vector<2x128xf32>
    %c96_i32_121 = arith.constant 96 : i32
    %257 = tpu.dynamic_rotate %255 by %c96_i32_121 dim 1 : vector<2x128xf32>, i32 -> vector<2x128xf32>
    %c64_i32_122 = arith.constant 64 : i32
    %258 = tpu.dynamic_rotate %256 by %c64_i32_122 dim 1 : vector<2x128xf32>, i32 -> vector<2x128xf32>
    %c32_i32_123 = arith.constant 32 : i32
    %259 = tpu.dynamic_rotate %255 by %c32_i32_123 dim 1 : vector<2x128xf32>, i32 -> vector<2x128xf32>
    %260 = arith.mulf %257, %222 : vector<2x128xf32>
    %261 = arith.mulf %255, %258 : vector<2x128xf32>
    %262 = arith.addf %260, %261 : vector<2x128xf32>
    %263 = math.tanh %262 : vector<2x128xf32>
    %264 = arith.mulf %259, %263 : vector<2x128xf32>
    %c0_124 = arith.constant 0 : index
    %c0_125 = arith.constant 0 : index
    %265 = vector.load %arg4[%c0_124, %c0_125] : memref<128x128xf32, #tpu.memory_space<vmem>>, vector<128x128xf32>
    %cst_126 = arith.constant dense<0.000000e+00> : vector<2x128xf32>
    %266 = tpu.matmul %264, %265, %cst_126 {dimension_numbers = #tpu.dot_dimension_numbers<[1], [0], [0], [1], [0, 0, 1, 1], [], []>} : vector<2x128xf32>, vector<128x128xf32>, vector<2x128xf32> -> vector<2x128xf32>
    %c0_127 = arith.constant 0 : index
    %c0_128 = arith.constant 0 : index
    %267 = vector.load %arg5[%c0_127, %c0_128] : memref<128x128xf32, #tpu.memory_space<vmem>>, vector<128x128xf32>
    %cst_129 = arith.constant dense<0.000000e+00> : vector<2x128xf32>
    %268 = tpu.matmul %246, %267, %cst_129 {dimension_numbers = #tpu.dot_dimension_numbers<[1], [0], [0], [1], [0, 0, 1, 1], [], []>} : vector<2x128xf32>, vector<128x128xf32>, vector<2x128xf32> -> vector<2x128xf32>
    %269 = arith.addf %266, %268 : vector<2x128xf32>
    %c0_130 = arith.constant 0 : index
    %c0_131 = arith.constant 0 : index
    %270 = vector.load %arg6[%c0_130, %c0_131] : memref<1x128xf32, #tpu.memory_space<vmem>>, vector<1x128xf32>
    %271 = vector.broadcast %270 : vector<1x128xf32> to vector<2x128xf32>
    %272 = arith.addf %269, %271 : vector<2x128xf32>
    %273 = arith.negf %272 : vector<2x128xf32>
    %274 = math.exp %273 : vector<2x128xf32>
    %cst_132 = arith.constant 1.000000e+00 : f32
    %275 = vector.broadcast %cst_132 : f32 to vector<2x128xf32>
    %276 = arith.addf %275, %274 : vector<2x128xf32>
    %277 = arith.divf %275, %276 : vector<2x128xf32>
    %278 = math.tanh %272 : vector<2x128xf32>
    %c96_i32_133 = arith.constant 96 : i32
    %279 = tpu.dynamic_rotate %277 by %c96_i32_133 dim 1 : vector<2x128xf32>, i32 -> vector<2x128xf32>
    %c64_i32_134 = arith.constant 64 : i32
    %280 = tpu.dynamic_rotate %278 by %c64_i32_134 dim 1 : vector<2x128xf32>, i32 -> vector<2x128xf32>
    %c32_i32_135 = arith.constant 32 : i32
    %281 = tpu.dynamic_rotate %277 by %c32_i32_135 dim 1 : vector<2x128xf32>, i32 -> vector<2x128xf32>
    %282 = arith.mulf %279, %244 : vector<2x128xf32>
    %283 = arith.mulf %277, %280 : vector<2x128xf32>
    %284 = arith.addf %282, %283 : vector<2x128xf32>
    %285 = math.tanh %284 : vector<2x128xf32>
    %286 = arith.mulf %281, %285 : vector<2x128xf32>
    %287 = vector.extract_strided_slice %5 {offsets = [14, 0], sizes = [2, 128], strides = [1, 1]} : vector<18x128xf32> to vector<2x128xf32>
    %c0_136 = arith.constant 0 : index
    %c0_137 = arith.constant 0 : index
    %288 = vector.load %arg3[%c0_136, %c0_137] : memref<128x128xf32, #tpu.memory_space<vmem>>, vector<128x128xf32>
    %cst_138 = arith.constant dense<0.000000e+00> : vector<2x128xf32>
    %289 = tpu.matmul %264, %288, %cst_138 {dimension_numbers = #tpu.dot_dimension_numbers<[1], [0], [0], [1], [0, 0, 1, 1], [], []>} : vector<2x128xf32>, vector<128x128xf32>, vector<2x128xf32> -> vector<2x128xf32>
    %290 = arith.addf %287, %289 : vector<2x128xf32>
    %291 = arith.negf %290 : vector<2x128xf32>
    %292 = math.exp %291 : vector<2x128xf32>
    %cst_139 = arith.constant 1.000000e+00 : f32
    %293 = vector.broadcast %cst_139 : f32 to vector<2x128xf32>
    %294 = arith.addf %293, %292 : vector<2x128xf32>
    %295 = arith.divf %293, %294 : vector<2x128xf32>
    %296 = math.tanh %290 : vector<2x128xf32>
    %c96_i32_140 = arith.constant 96 : i32
    %297 = tpu.dynamic_rotate %295 by %c96_i32_140 dim 1 : vector<2x128xf32>, i32 -> vector<2x128xf32>
    %c64_i32_141 = arith.constant 64 : i32
    %298 = tpu.dynamic_rotate %296 by %c64_i32_141 dim 1 : vector<2x128xf32>, i32 -> vector<2x128xf32>
    %c32_i32_142 = arith.constant 32 : i32
    %299 = tpu.dynamic_rotate %295 by %c32_i32_142 dim 1 : vector<2x128xf32>, i32 -> vector<2x128xf32>
    %300 = arith.mulf %297, %262 : vector<2x128xf32>
    %301 = arith.mulf %295, %298 : vector<2x128xf32>
    %302 = arith.addf %300, %301 : vector<2x128xf32>
    %303 = math.tanh %302 : vector<2x128xf32>
    %304 = arith.mulf %299, %303 : vector<2x128xf32>
    %c0_143 = arith.constant 0 : index
    %c0_144 = arith.constant 0 : index
    %305 = vector.load %arg4[%c0_143, %c0_144] : memref<128x128xf32, #tpu.memory_space<vmem>>, vector<128x128xf32>
    %cst_145 = arith.constant dense<0.000000e+00> : vector<2x128xf32>
    %306 = tpu.matmul %304, %305, %cst_145 {dimension_numbers = #tpu.dot_dimension_numbers<[1], [0], [0], [1], [0, 0, 1, 1], [], []>} : vector<2x128xf32>, vector<128x128xf32>, vector<2x128xf32> -> vector<2x128xf32>
    %c0_146 = arith.constant 0 : index
    %c0_147 = arith.constant 0 : index
    %307 = vector.load %arg5[%c0_146, %c0_147] : memref<128x128xf32, #tpu.memory_space<vmem>>, vector<128x128xf32>
    %cst_148 = arith.constant dense<0.000000e+00> : vector<2x128xf32>
    %308 = tpu.matmul %286, %307, %cst_148 {dimension_numbers = #tpu.dot_dimension_numbers<[1], [0], [0], [1], [0, 0, 1, 1], [], []>} : vector<2x128xf32>, vector<128x128xf32>, vector<2x128xf32> -> vector<2x128xf32>
    %309 = arith.addf %306, %308 : vector<2x128xf32>
    %c0_149 = arith.constant 0 : index
    %c0_150 = arith.constant 0 : index
    %310 = vector.load %arg6[%c0_149, %c0_150] : memref<1x128xf32, #tpu.memory_space<vmem>>, vector<1x128xf32>
    %311 = vector.broadcast %310 : vector<1x128xf32> to vector<2x128xf32>
    %312 = arith.addf %309, %311 : vector<2x128xf32>
    %313 = arith.negf %312 : vector<2x128xf32>
    %314 = math.exp %313 : vector<2x128xf32>
    %cst_151 = arith.constant 1.000000e+00 : f32
    %315 = vector.broadcast %cst_151 : f32 to vector<2x128xf32>
    %316 = arith.addf %315, %314 : vector<2x128xf32>
    %317 = arith.divf %315, %316 : vector<2x128xf32>
    %318 = math.tanh %312 : vector<2x128xf32>
    %c96_i32_152 = arith.constant 96 : i32
    %319 = tpu.dynamic_rotate %317 by %c96_i32_152 dim 1 : vector<2x128xf32>, i32 -> vector<2x128xf32>
    %c64_i32_153 = arith.constant 64 : i32
    %320 = tpu.dynamic_rotate %318 by %c64_i32_153 dim 1 : vector<2x128xf32>, i32 -> vector<2x128xf32>
    %c32_i32_154 = arith.constant 32 : i32
    %321 = tpu.dynamic_rotate %317 by %c32_i32_154 dim 1 : vector<2x128xf32>, i32 -> vector<2x128xf32>
    %322 = arith.mulf %319, %284 : vector<2x128xf32>
    %323 = arith.mulf %317, %320 : vector<2x128xf32>
    %324 = arith.addf %322, %323 : vector<2x128xf32>
    %325 = math.tanh %324 : vector<2x128xf32>
    %326 = arith.mulf %321, %325 : vector<2x128xf32>
    %327 = vector.extract_strided_slice %5 {offsets = [16, 0], sizes = [2, 128], strides = [1, 1]} : vector<18x128xf32> to vector<2x128xf32>
    %c0_155 = arith.constant 0 : index
    %c0_156 = arith.constant 0 : index
    %328 = vector.load %arg3[%c0_155, %c0_156] : memref<128x128xf32, #tpu.memory_space<vmem>>, vector<128x128xf32>
    %cst_157 = arith.constant dense<0.000000e+00> : vector<2x128xf32>
    %329 = tpu.matmul %304, %328, %cst_157 {dimension_numbers = #tpu.dot_dimension_numbers<[1], [0], [0], [1], [0, 0, 1, 1], [], []>} : vector<2x128xf32>, vector<128x128xf32>, vector<2x128xf32> -> vector<2x128xf32>
    %330 = arith.addf %327, %329 : vector<2x128xf32>
    %331 = arith.negf %330 : vector<2x128xf32>
    %332 = math.exp %331 : vector<2x128xf32>
    %cst_158 = arith.constant 1.000000e+00 : f32
    %333 = vector.broadcast %cst_158 : f32 to vector<2x128xf32>
    %334 = arith.addf %333, %332 : vector<2x128xf32>
    %335 = arith.divf %333, %334 : vector<2x128xf32>
    %336 = math.tanh %330 : vector<2x128xf32>
    %c96_i32_159 = arith.constant 96 : i32
    %337 = tpu.dynamic_rotate %335 by %c96_i32_159 dim 1 : vector<2x128xf32>, i32 -> vector<2x128xf32>
    %c64_i32_160 = arith.constant 64 : i32
    %338 = tpu.dynamic_rotate %336 by %c64_i32_160 dim 1 : vector<2x128xf32>, i32 -> vector<2x128xf32>
    %c32_i32_161 = arith.constant 32 : i32
    %339 = tpu.dynamic_rotate %335 by %c32_i32_161 dim 1 : vector<2x128xf32>, i32 -> vector<2x128xf32>
    %340 = arith.mulf %337, %302 : vector<2x128xf32>
    %341 = arith.mulf %335, %338 : vector<2x128xf32>
    %342 = arith.addf %340, %341 : vector<2x128xf32>
    %343 = math.tanh %342 : vector<2x128xf32>
    %344 = arith.mulf %339, %343 : vector<2x128xf32>
    %c0_162 = arith.constant 0 : index
    %c0_163 = arith.constant 0 : index
    %345 = vector.load %arg4[%c0_162, %c0_163] : memref<128x128xf32, #tpu.memory_space<vmem>>, vector<128x128xf32>
    %cst_164 = arith.constant dense<0.000000e+00> : vector<2x128xf32>
    %346 = tpu.matmul %344, %345, %cst_164 {dimension_numbers = #tpu.dot_dimension_numbers<[1], [0], [0], [1], [0, 0, 1, 1], [], []>} : vector<2x128xf32>, vector<128x128xf32>, vector<2x128xf32> -> vector<2x128xf32>
    %c0_165 = arith.constant 0 : index
    %c0_166 = arith.constant 0 : index
    %347 = vector.load %arg5[%c0_165, %c0_166] : memref<128x128xf32, #tpu.memory_space<vmem>>, vector<128x128xf32>
    %cst_167 = arith.constant dense<0.000000e+00> : vector<2x128xf32>
    %348 = tpu.matmul %326, %347, %cst_167 {dimension_numbers = #tpu.dot_dimension_numbers<[1], [0], [0], [1], [0, 0, 1, 1], [], []>} : vector<2x128xf32>, vector<128x128xf32>, vector<2x128xf32> -> vector<2x128xf32>
    %349 = arith.addf %346, %348 : vector<2x128xf32>
    %c0_168 = arith.constant 0 : index
    %c0_169 = arith.constant 0 : index
    %350 = vector.load %arg6[%c0_168, %c0_169] : memref<1x128xf32, #tpu.memory_space<vmem>>, vector<1x128xf32>
    %351 = vector.broadcast %350 : vector<1x128xf32> to vector<2x128xf32>
    %352 = arith.addf %349, %351 : vector<2x128xf32>
    %353 = arith.negf %352 : vector<2x128xf32>
    %354 = math.exp %353 : vector<2x128xf32>
    %cst_170 = arith.constant 1.000000e+00 : f32
    %355 = vector.broadcast %cst_170 : f32 to vector<2x128xf32>
    %356 = arith.addf %355, %354 : vector<2x128xf32>
    %357 = arith.divf %355, %356 : vector<2x128xf32>
    %358 = math.tanh %352 : vector<2x128xf32>
    %c96_i32_171 = arith.constant 96 : i32
    %359 = tpu.dynamic_rotate %357 by %c96_i32_171 dim 1 : vector<2x128xf32>, i32 -> vector<2x128xf32>
    %c64_i32_172 = arith.constant 64 : i32
    %360 = tpu.dynamic_rotate %358 by %c64_i32_172 dim 1 : vector<2x128xf32>, i32 -> vector<2x128xf32>
    %c32_i32_173 = arith.constant 32 : i32
    %361 = tpu.dynamic_rotate %357 by %c32_i32_173 dim 1 : vector<2x128xf32>, i32 -> vector<2x128xf32>
    %362 = arith.mulf %359, %324 : vector<2x128xf32>
    %363 = arith.mulf %357, %360 : vector<2x128xf32>
    %364 = arith.addf %362, %363 : vector<2x128xf32>
    %365 = math.tanh %364 : vector<2x128xf32>
    %366 = arith.mulf %361, %365 : vector<2x128xf32>
    %367 = tpu.concatenate %46, %86, %126, %166, %206, %246, %286, %326, %366 in 0 : vector<2x128xf32>, vector<2x128xf32>, vector<2x128xf32>, vector<2x128xf32>, vector<2x128xf32>, vector<2x128xf32>, vector<2x128xf32>, vector<2x128xf32>, vector<2x128xf32> -> vector<18x128xf32>
    %c0_174 = arith.constant 0 : index
    %c0_175 = arith.constant 0 : index
    %368 = vector.load %arg7[%c0_174, %c0_175] : memref<128x128xf32, #tpu.memory_space<vmem>>, vector<128x128xf32>
    %cst_176 = arith.constant dense<0.000000e+00> : vector<18x128xf32>
    %369 = tpu.matmul %367, %368, %cst_176 {dimension_numbers = #tpu.dot_dimension_numbers<[1], [0], [0], [1], [0, 0, 1, 1], [], []>} : vector<18x128xf32>, vector<128x128xf32>, vector<18x128xf32> -> vector<18x128xf32>
    %c0_177 = arith.constant 0 : index
    %c0_178 = arith.constant 0 : index
    %370 = vector.load %arg8[%c0_177, %c0_178] : memref<1x128xf32, #tpu.memory_space<vmem>>, vector<1x128xf32>
    %371 = vector.broadcast %370 : vector<1x128xf32> to vector<18x128xf32>
    %372 = arith.addf %369, %371 : vector<18x128xf32>
    %c0_179 = arith.constant 0 : index
    %c0_180 = arith.constant 0 : index
    %373 = vector.load %arg9[%c0_179, %c0_180] : memref<18x128xf32, #tpu.memory_space<vmem>>, vector<18x128xf32>
    tpu.vector_store %arg9[%c0_179, %c0_180], %372 {strides = array<i32>} : memref<18x128xf32, #tpu.memory_space<vmem>>, vector<18x128xf32>,
    return
  }
}

</mosaic_0001>

<bundles_post_ra>
// kernel: cnn2rnn_forward.2
= control target key start
LH: loop header
LB: loop body
LE: loop exit
PB: predicated region body
PF: predicated region fallthrough
CT: control target
= control target key end

     0   :  { %vm556_vm0 = vcmask 523264   ;;  %vm1097_vm1 = vmmov 0   ;;  %vm698_vm2 = vcmask 1040384   ;;  %vm788_vm3 = vcmask 254976   ;;  %s1627_s1 = inlined_call_operand.vmem [shape: f32[128,64], index: 1, kind: input, shape index: {}]   ;;  %s1628_s0 = inlined_call_operand.vmem [shape: f32[512,128], index: 0, kind: input, shape index: {}]   ;;  %s1629_s3 = inlined_call_operand.vmem [shape: f32[64,32], index: 3, kind: input, shape index: {}]   ;;  %s1630_s2 = inlined_call_operand.vmem [shape: f32[1,64], index: 2, kind: input, shape index: {}]   ;;  %s1631_s4 = inlined_call_operand.vmem [shape: f32[1,32], index: 4, kind: input, shape index: {}]   ;;  %s1632_s5 = inlined_call_operand.vmem [shape: f32[2,32], index: 5, kind: output, shape index: {}]  }
   0x1   :  { %v84_v0 = vld [vmem:[%s1627_s1] sm:$0xff]  ;;  %v85_v1 = vld [vmem:[%s1627_s1 + $0x8] sm:$0xff]  ;;  %v86_v2 = vld [vmem:[%s1627_s1 + $0x10] sm:$0xff] }
   0x2   :  { %v1033_v3 = vpack.c.bf16 %v85_v1, %v84_v0  ;;  %v87_v4 = vld [vmem:[%s1627_s1 + $0x18] sm:$0xff]  ;;  %v88_v6 = vld [vmem:[%s1627_s1 + $0x20] sm:$0xff]  ;;  %v89_v7 = vld [vmem:[%s1627_s1 + $0x28] sm:$0xff] }
   0x3   :  { %v1037_v5 = vpack.c.bf16 %v87_v4, %v86_v2  ;;  %v1041_v8 = vpack.c.bf16 %v89_v7, %v88_v6  ;;  %v20_v9 = vld [vmem:[%s1628_s0] sm:$0xff]  ;;  %v90_v10 = vld [vmem:[%s1627_s1 + $0x30] sm:$0xff]  ;;  %v91_v11 = vld [vmem:[%s1627_s1 + $0x38] sm:$0xff] }
   0x4   :  { %1034 = vmatprep.subr.bf16.mxu0 %v1033_v3  ;;  %1077 = vmatprep.subr.bf16.mxu1 %v1033_v3  ;;  %v1045_v12 = vpack.c.bf16 %v91_v11, %v90_v10  ;;  %v92_v13 = vld [vmem:[%s1627_s1 + $0x40] sm:$0xff]  ;;  %v93_v14 = vld [vmem:[%s1627_s1 + $0x48] sm:$0xff]  ;;  %v94_v16 = vld [vmem:[%s1627_s1 + $0x50] sm:$0xff] }
   0x5   :  { %1036 = vmatpush3.bf16.msra.mxu0 %v1033_v3  ;;  %1085 = vmatpush3.bf16.msra.mxu1 %v1033_v3  ;;  %v1049_v15 = vpack.c.bf16 %v93_v14, %v92_v13  ;;  %v95_v17 = vld [vmem:[%s1627_s1 + $0x58] sm:$0xff]  ;;  %v54_v18 = vld [vmem:[%s1628_s0 + $0x110] sm:$0xff]  ;;  %v96_v20 = vld [vmem:[%s1627_s1 + $0x60] sm:$0xff] }
   0x6   :  { %1038 = vmatprep.subr.bf16.mxu0 %v1037_v5  ;;  %1078 = vmatprep.subr.bf16.mxu1 %v1037_v5  ;;  %v1053_v19 = vpack.c.bf16 %v95_v17, %v94_v16  ;;  %v97_v21 = vld [vmem:[%s1627_s1 + $0x68] sm:$0xff]  ;;  %v98_v23 = vld [vmem:[%s1627_s1 + $0x70] sm:$0xff]  ;;  %v99_v24 = vld [vmem:[%s1627_s1 + $0x78] sm:$0xff] }
   0x7   :  { %918 = vmatprep.mubr.f32.mxu0 %v20_v9  ;;  %969 = vmatprep.mubr.f32.mxu1 %v54_v18  ;;  %v1057_v22 = vpack.c.bf16 %v97_v21, %v96_v20  ;;  %v1061_v25 = vpack.c.bf16 %v99_v24, %v98_v23  ;;  %v21_v26 = vld [vmem:[%s1628_s0 + $0x8] sm:$0xff]  ;;  %v55_v27 = vld [vmem:[%s1628_s0 + $0x118] sm:$0xff]  ;;  %v22_v28 = vld [vmem:[%s1628_s0 + $0x10] sm:$0xff]  ;;  %v1096_v24 = vmov 0.0|0.0  }
   0x8   :  { %v56_v29 = vld [vmem:[%s1628_s0 + $0x120] sm:$0xff]  ;;  %v23_v30 = vld [vmem:[%s1628_s0 + $0x18] sm:$0xff]  ;;  %v57_v31 = vld [vmem:[%s1628_s0 + $0x128] sm:$0xff] }
   0x9   :  { %1040 = vmatpush3.bf16.msra.mxu0 %v1037_v5  ;;  %1086 = vmatpush3.bf16.msra.mxu1 %v1037_v5  ;;  %v24_v32 = vld [vmem:[%s1628_s0 + $0x20] sm:$0xff]  ;;  %v58_v33 = vld [vmem:[%s1628_s0 + $0x130] sm:$0xff]  ;;  %v25_v34 = vld [vmem:[%s1628_s0 + $0x28] sm:$0xff] }
   0xa   :  { %1042 = vmatprep.subr.bf16.mxu0 %v1041_v8  ;;  %1079 = vmatprep.subr.bf16.mxu1 %v1041_v8  ;;  %v59_v35 = vld [vmem:[%s1628_s0 + $0x138] sm:$0xff]  ;;  %v26_v36 = vld [vmem:[%s1628_s0 + $0x30] sm:$0xff]  ;;  %v60_v37 = vld [vmem:[%s1628_s0 + $0x140] sm:$0xff] }
   0xb   :  { %v27_v38 = vld [vmem:[%s1628_s0 + $0x38] sm:$0xff]  ;;  %v61_v39 = vld [vmem:[%s1628_s0 + $0x148] sm:$0xff]  ;;  %v28_v40 = vld [vmem:[%s1628_s0 + $0x40] sm:$0xff] }
   0xc   :  { %v62_v41 = vld [vmem:[%s1628_s0 + $0x150] sm:$0xff]  ;;  %v29_v42 = vld [vmem:[%s1628_s0 + $0x48] sm:$0xff]  ;;  %v63_v43 = vld [vmem:[%s1628_s0 + $0x158] sm:$0xff] }
   0xd   :  { %1044 = vmatpush3.bf16.msra.mxu0 %v1041_v8  ;;  %1087 = vmatpush3.bf16.msra.mxu1 %v1041_v8  ;;  %v30_v44 = vld [vmem:[%s1628_s0 + $0x50] sm:$0xff]  ;;  %v64_v45 = vld [vmem:[%s1628_s0 + $0x160] sm:$0xff]  ;;  %v31_v46 = vld [vmem:[%s1628_s0 + $0x58] sm:$0xff] }
   0xe   :  { %1046 = vmatprep.subr.bf16.mxu0 %v1045_v12  ;;  %1080 = vmatprep.subr.bf16.mxu1 %v1045_v12  ;;  %v65_v47 = vld [vmem:[%s1628_s0 + $0x168] sm:$0xff]  ;;  %v32_v48 = vld [vmem:[%s1628_s0 + $0x60] sm:$0xff]  ;;  %v66_v49 = vld [vmem:[%s1628_s0 + $0x170] sm:$0xff] }
   0xf   :  { %v33_v50 = vld [vmem:[%s1628_s0 + $0x68] sm:$0xff]  ;;  %v67_v51 = vld [vmem:[%s1628_s0 + $0x178] sm:$0xff]  ;;  %v34_v52 = vld [vmem:[%s1628_s0 + $0x70] sm:$0xff] }
  0x10   :  { %v68_v53 = vld [vmem:[%s1628_s0 + $0x180] sm:$0xff]  ;;  %v35_v54 = vld [vmem:[%s1628_s0 + $0x78] sm:$0xff]  ;;  %v69_v55 = vld [vmem:[%s1628_s0 + $0x188] sm:$0xff] }
  0x11   :  { %1048 = vmatpush3.bf16.msra.mxu0 %v1045_v12  ;;  %1088 = vmatpush3.bf16.msra.mxu1 %v1045_v12  ;;  %v36_v56 = vld [vmem:[%s1628_s0 + $0x80] sm:$0xff]  ;;  %v70_v57 = vld [vmem:[%s1628_s0 + $0x190] sm:$0xff]  ;;  %v37_v58 = vld [vmem:[%s1628_s0 + $0x88] sm:$0xff] }
  0x12   :  { %1050 = vmatprep.subr.bf16.mxu0 %v1049_v15  ;;  %1081 = vmatprep.subr.bf16.mxu1 %v1049_v15  ;;  %v71_v59 = vld [vmem:[%s1628_s0 + $0x198] sm:$0xff]  ;;  %v38_v60 = vld [vmem:[%s1628_s0 + $0x90] sm:$0xff]  ;;  %v72_v61 = vld [vmem:[%s1628_s0 + $0x1a0] sm:$0xff] }
  0x13   :  { %v39_v62 = vld [vmem:[%s1628_s0 + $0x98] sm:$0xff]  ;;  %v73_v63 = vld [vmem:[%s1628_s0 + $0x1a8] sm:$0xff]  ;;  %v40_v0 = vld [vmem:[%s1628_s0 + $0xa0] sm:$0xff] }
  0x14   :  { %v74_v1 = vld [vmem:[%s1628_s0 + $0x1b0] sm:$0xff]  ;;  %v41_v2 = vld [vmem:[%s1628_s0 + $0xa8] sm:$0xff]  ;;  %v75_v3 = vld [vmem:[%s1628_s0 + $0x1b8] sm:$0xff] }
  0x15   :  { %1052 = vmatpush3.bf16.msra.mxu0 %v1049_v15  ;;  %1089 = vmatpush3.bf16.msra.mxu1 %v1049_v15  ;;  %v42_v4 = vld [vmem:[%s1628_s0 + $0xb0] sm:$0xff]  ;;  %v76_v5 = vld [vmem:[%s1628_s0 + $0x1c0] sm:$0xff]  ;;  %v43_v6 = vld [vmem:[%s1628_s0 + $0xb8] sm:$0xff] }
  0x16   :  { %1054 = vmatprep.subr.bf16.mxu0 %v1053_v19  ;;  %1082 = vmatprep.subr.bf16.mxu1 %v1053_v19  ;;  %v77_v7 = vld [vmem:[%s1628_s0 + $0x1c8] sm:$0xff]  ;;  %v44_v8 = vld [vmem:[%s1628_s0 + $0xc0] sm:$0xff]  ;;  %v78_v9 = vld [vmem:[%s1628_s0 + $0x1d0] sm:$0xff] }
  0x17   :  { %v45_v10 = vld [vmem:[%s1628_s0 + $0xc8] sm:$0xff]  ;;  %v79_v11 = vld [vmem:[%s1628_s0 + $0x1d8] sm:$0xff]  ;;  %v46_v12 = vld [vmem:[%s1628_s0 + $0xd0] sm:$0xff] }
  0x18   :  { %v80_v13 = vld [vmem:[%s1628_s0 + $0x1e0] sm:$0xff]  ;;  %v47_v14 = vld [vmem:[%s1628_s0 + $0xd8] sm:$0xff]  ;;  %v81_v15 = vld [vmem:[%s1628_s0 + $0x1e8] sm:$0xff] }
  0x19   :  { %1056 = vmatpush3.bf16.msra.mxu0 %v1053_v19  ;;  %1090 = vmatpush3.bf16.msra.mxu1 %v1053_v19  ;;  %v48_v16 = vld [vmem:[%s1628_s0 + $0xe0] sm:$0xff]  ;;  %v82_v17 = vld [vmem:[%s1628_s0 + $0x1f0] sm:$0xff]  ;;  %v49_v18 = vld [vmem:[%s1628_s0 + $0xe8] sm:$0xff] }
  0x1a   :  { %1058 = vmatprep.subr.bf16.mxu0 %v1057_v22  ;;  %1083 = vmatprep.subr.bf16.mxu1 %v1057_v22  ;;  %v83_v19 = vld [vmem:[%s1628_s0 + $0x1f8] sm:$0xff]  ;;  %v50_v20 = vld [vmem:[%s1628_s0 + $0xf0] sm:$0xff]  ;;  %v53_v23 = vld [vmem:[%s1628_s0 + $0x108] sm:$0xff] }
  0x1b   :  { %v51_v21 = vld [vmem:[%s1628_s0 + $0xf8] sm:$0xff] }
  0x1d   :  { %1060 = vmatpush3.bf16.msra.mxu0 %v1057_v22  ;;  %1091 = vmatpush3.bf16.msra.mxu1 %v1057_v22  ;;  %v52_v22 = vld [vmem:[%s1628_s0 + $0x100] sm:$0xff] }
  0x1e   :  { %1062 = vmatprep.subr.bf16.mxu0 %v1061_v25  ;;  %1084 = vmatprep.subr.bf16.mxu1 %v1061_v25 }
  0x21   :  { %1064 = vmatpush3.bf16.msra.mxu0 %v1061_v25  ;;  %1092 = vmatpush3.bf16.msra.mxu1 %v1061_v25  ;;  %v700_v25 = vld [vmem:[%s1629_s3] sm:$0xff] }
  0x22   :  { %1065 = vmatprep.subr.bf16.mxu1 %v1096_v24 }
  0x24   :  { %919 = vmatmul.mubr.f32.vlgmr.msra.gmra.mrb[0].mxu0 %v21_v26  ;;  %970 = vmatmul.mubr.f32.vlgmr.msra.gmra.mrb[0].mxu1 %v55_v27  ;;  %v701_v26 = vld [vmem:[%s1629_s3 + $0x8] sm:$0xff] }
  0x25   :  { %921 = vmatprep.mubr.f32.mxu0 %v22_v28  ;;  %972 = vmatprep.mubr.f32.mxu1 %v56_v29  ;;  %v1066_v27 = vpack.c.bf16 %v701_v26, %v700_v25  ;;  %v702_v28 = vld [vmem:[%s1629_s3 + $0x10] sm:$0xff]  ;;  %v703_v29 = vld [vmem:[%s1629_s3 + $0x18] sm:$0xff] }
  0x27   :  { %1067 = vmatpush3.bf16.msra.mxu1 %v1066_v27 }
  0x28   :  { %922 = vmatmul.mubr.f32.gmra.mrb[2].mxu0 %v23_v30  ;;  %973 = vmatmul.mubr.f32.gmra.mrb[2].mxu1 %v57_v31  ;;  %v1069_v30 = vpack.c.bf16 %v703_v29, %v702_v28  ;;  %v704_v31 = vld [vmem:[%s1629_s3 + $0x20] sm:$0xff] }
  0x29   :  { %924 = vmatprep.mubr.f32.mxu0 %v24_v32  ;;  %975 = vmatprep.mubr.f32.mxu1 %v58_v33  ;;  %v705_v32 = vld [vmem:[%s1629_s3 + $0x28] sm:$0xff]  ;;  %v1390_v33 = vld [vmem:[%s1630_s2] ss:$0 sm:$0xff] }
  0x2a   :  { %1068 = vmatprep.subr.bf16.mxu1 %v1096_v24 }
  0x2b   :  { %1070 = vmatpush3.bf16.msra.mxu1 %v1069_v30 }
  0x2c   :  { %925 = vmatmul.mubr.f32.gmra.mrb[4].mxu0 %v25_v34  ;;  %976 = vmatmul.mubr.f32.gmra.mrb[4].mxu1 %v59_v35  ;;  %v1072_v34 = vpack.c.bf16 %v705_v32, %v704_v31 }
  0x2d   :  { %927 = vmatprep.mubr.f32.mxu0 %v26_v36  ;;  %978 = vmatprep.mubr.f32.mxu1 %v60_v37 }
  0x2e   :  { %1071 = vmatprep.subr.bf16.mxu1 %v1096_v24 }
  0x2f   :  { %1073 = vmatpush3.bf16.msra.mxu1 %v1072_v34 }
  0x30   :  { %928 = vmatmul.mubr.f32.gmra.mrb[6].mxu0 %v27_v38  ;;  %979 = vmatmul.mubr.f32.gmra.mrb[6].mxu1 %v61_v39 }
  0x31   :  { %930 = vmatprep.mubr.f32.mxu0 %v28_v40  ;;  %981 = vmatprep.mubr.f32.mxu1 %v62_v41 }
  0x32   :  { %1074 = vmatprep.subr.bf16.mxu1 %v1096_v24 }
  0x34   :  { %931 = vmatmul.mubr.f32.gmra.mrb[8].mxu0 %v29_v42  ;;  %982 = vmatmul.mubr.f32.gmra.mrb[8].mxu1 %v63_v43 }
  0x35   :  { %933 = vmatprep.mubr.f32.mxu0 %v30_v44  ;;  %984 = vmatprep.mubr.f32.mxu1 %v64_v45 }
  0x38   :  { %934 = vmatmul.mubr.f32.gmra.mrb[10].mxu0 %v31_v46  ;;  %985 = vmatmul.mubr.f32.gmra.mrb[10].mxu1 %v65_v47 }
  0x39   :  { %936 = vmatprep.mubr.f32.mxu0 %v32_v48  ;;  %987 = vmatprep.mubr.f32.mxu1 %v66_v49 }
  0x3c   :  { %937 = vmatmul.mubr.f32.gmra.mrb[12].mxu0 %v33_v50  ;;  %988 = vmatmul.mubr.f32.gmra.mrb[12].mxu1 %v67_v51 }
  0x3d   :  { %939 = vmatprep.mubr.f32.mxu0 %v34_v52  ;;  %990 = vmatprep.mubr.f32.mxu1 %v68_v53 }
  0x40   :  { %940 = vmatmul.mubr.f32.gmra.mrb[14].mxu0 %v35_v54  ;;  %991 = vmatmul.mubr.f32.gmra.mrb[14].mxu1 %v69_v55 }
  0x41   :  { %942 = vmatprep.mubr.f32.mxu0 %v36_v56  ;;  %993 = vmatprep.mubr.f32.mxu1 %v70_v57 }
  0x44   :  { %943 = vmatmul.mubr.f32.gmra.mrb[16].mxu0 %v37_v58  ;;  %994 = vmatmul.mubr.f32.gmra.mrb[16].mxu1 %v71_v59 }
  0x45   :  { %945 = vmatprep.mubr.f32.mxu0 %v38_v60  ;;  %996 = vmatprep.mubr.f32.mxu1 %v72_v61 }
  0x48   :  { %946 = vmatmul.mubr.f32.gmra.mrb[18].mxu0 %v39_v62  ;;  %997 = vmatmul.mubr.f32.gmra.mrb[18].mxu1 %v73_v63 }
  0x49   :  { %948 = vmatprep.mubr.f32.mxu0 %v40_v0  ;;  %999 = vmatprep.mubr.f32.mxu1 %v74_v1 }
  0x4c   :  { %949 = vmatmul.mubr.f32.gmra.mrb[20].mxu0 %v41_v2  ;;  %1000 = vmatmul.mubr.f32.gmra.mrb[20].mxu1 %v75_v3 }
  0x4d   :  { %951 = vmatprep.mubr.f32.mxu0 %v42_v4  ;;  %1002 = vmatprep.mubr.f32.mxu1 %v76_v5 }
  0x50   :  { %952 = vmatmul.mubr.f32.gmra.mrb[22].mxu0 %v43_v6  ;;  %1003 = vmatmul.mubr.f32.gmra.mrb[22].mxu1 %v77_v7 }
  0x51   :  { %954 = vmatprep.mubr.f32.mxu0 %v44_v8  ;;  %1005 = vmatprep.mubr.f32.mxu1 %v78_v9  ;;  %v706_v9 = vld [vmem:[%s1629_s3 + $0x30] sm:$0xff] }
  0x54   :  { %955 = vmatmul.mubr.f32.gmra.mrb[24].mxu0 %v45_v10  ;;  %1006 = vmatmul.mubr.f32.gmra.mrb[24].mxu1 %v79_v11  ;;  %v707_v10 = vld [vmem:[%s1629_s3 + $0x38] sm:$0xff] }
  0x55   :  { %957 = vmatprep.mubr.f32.mxu0 %v46_v12  ;;  %1008 = vmatprep.mubr.f32.mxu1 %v80_v13  ;;  %v1075_v13 = vpack.c.bf16 %v707_v10, %v706_v9 }
  0x57   :  { %1076 = vmatpush3.bf16.msra.mxu1 %v1075_v13 }
  0x58   :  { %958 = vmatmul.mubr.f32.gmra.mrb[26].mxu0 %v47_v14  ;;  %1009 = vmatmul.mubr.f32.gmra.mrb[26].mxu1 %v81_v15 }
  0x59   :  { %960 = vmatprep.mubr.f32.mxu0 %v48_v16  ;;  %1011 = vmatprep.mubr.f32.mxu1 %v82_v17 }
  0x5c   :  { %961 = vmatmul.mubr.f32.gmra.mrb[28].mxu0 %v49_v18  ;;  %1012 = vmatmul.mubr.f32.gmra.mrb[28].mxu1 %v83_v19 }
  0x5d   :  { %963 = vmatprep.mubr.f32.mxu0 %v50_v20 }
  0x60   :  { %964 = vmatmul.mubr.f32.gmra.mrb[30].mxu0 %v51_v21 }
  0x61   :  { %966 = vmatprep.mubr.f32.mxu0 %v52_v22 }
  0x64   :  { %967 = vmatmul.mubr.f32.gmra.mrb[32].mxu0 %v53_v23 }
  0xf7   :  { %v920_v35 = vpop.f32.mrb[0].mxu0  ;;  %v1392_v36 = vpop.f32.mrb[0].mxu1 }
  0xf8   :  { %v179_v37 = vadd.f32 %v920_v35, %v1390_v33  ;;  %v173_v38 = vpop.f32.mrb[1].mxu0  ;;  %v1395_v39 = vpop.f32.mrb[1].mxu1  ;;  %v1098_v35 = vmov 0.0  }
  0xf9   :  { %v174_v40 = vadd.f32 %v1390_v33, %v173_v38  ;;  %1030 = vmatprep.mubr.msk.f32.mxu1 %vm1097_vm1, %v1098_v35 }
  0xfa   :  { %v493_v41 = vmax.f32 %v179_v37, 0.0 }
  0xfb   :  { %v492_v42 = vmax.f32 %v174_v40, 0.0  ;;  %v923_v43 = vpop.f32.mrb[2].mxu0  ;;  %v1398_v44 = vpop.f32.mrb[2].mxu1 }
  0xfc   :  { %v558_v45 = vsel %vm556_vm0, %v493_v41, 0.0  ;;  %v189_v46 = vadd.f32 %v923_v43, %v1390_v33  ;;  %v183_v47 = vpop.f32.mrb[3].mxu0  ;;  %v1402_v48 = vpop.f32.mrb[3].mxu1 }
  0xfd   :  { %v557_v49 = vsel %vm556_vm0, %v492_v42, 0.0  ;;  %v184_v50 = vadd.f32 %v1390_v33, %v183_v47 }
  0xfe   :  { %v559_v51 = vadd.f32 %v558_v45, %v557_v49  ;;  %v495_v52 = vmax.f32 %v189_v46, 0.0 }
  0xff   :  { %v494_v53 = vmax.f32 %v184_v50, 0.0  ;;  %v926_v54 = vpop.f32.mrb[4].mxu0  ;;  %v1406_v55 = vpop.f32.mrb[4].mxu1 }
 0x100   :  { %v199_v56 = vadd.f32 %v926_v54, %v1390_v33  ;;  %v193_v57 = vpop.f32.mrb[5].mxu0  ;;  %v1409_v58 = vpop.f32.mrb[5].mxu1  ;;  %v562_v62 = vsel %vm556_vm0, %v495_v52, 0.0 }
 0x101   :  { %v560_v59 = vsel %vm556_vm0, %v494_v53, 0.0  ;;  %v194_v60 = vadd.f32 %v1390_v33, %v193_v57 }
 0x102   :  { %v561_v61 = vadd.f32 %v560_v59, %v559_v51  ;;  %v497_v63 = vmax.f32 %v199_v56, 0.0 }
 0x103   :  { %v496_v0 = vmax.f32 %v194_v60, 0.0  ;;  %v929_v1 = vpop.f32.mrb[6].mxu0  ;;  %v1414_v2 = vpop.f32.mrb[6].mxu1 }
 0x104   :  { %v563_v3 = vadd.f32 %v562_v62, %v561_v61  ;;  %v209_v4 = vadd.f32 %v929_v1, %v1390_v33  ;;  %v203_v5 = vpop.f32.mrb[7].mxu0  ;;  %v1417_v6 = vpop.f32.mrb[7].mxu1  ;;  %v566_v14 = vsel %vm556_vm0, %v497_v63, 0.0 }
 0x105   :  { %v564_v7 = vsel %vm556_vm0, %v496_v0, 0.0  ;;  %v204_v8 = vadd.f32 %v1390_v33, %v203_v5 }
 0x106   :  { %v565_v11 = vadd.f32 %v564_v7, %v563_v3  ;;  %v499_v12 = vmax.f32 %v209_v4, 0.0 }
 0x107   :  { %v498_v15 = vmax.f32 %v204_v8, 0.0  ;;  %v932_v16 = vpop.f32.mrb[8].mxu0  ;;  %v1428_v17 = vpop.f32.mrb[8].mxu1 }
 0x108   :  { %v567_v18 = vadd.f32 %v566_v14, %v565_v11  ;;  %v219_v19 = vadd.f32 %v932_v16, %v1390_v33  ;;  %v213_v20 = vpop.f32.mrb[9].mxu0  ;;  %v1431_v21 = vpop.f32.mrb[9].mxu1  ;;  %v570_v24 = vsel %vm556_vm0, %v499_v12, 0.0 }
 0x109   :  { %v568_v22 = vsel %vm556_vm0, %v498_v15, 0.0  ;;  %v214_v23 = vadd.f32 %v1390_v33, %v213_v20 }
 0x10a   :  { %v569_v25 = vadd.f32 %v568_v22, %v567_v18  ;;  %v501_v26 = vmax.f32 %v219_v19, 0.0 }
 0x10b   :  { %v500_v27 = vmax.f32 %v214_v23, 0.0  ;;  %v935_v28 = vpop.f32.mrb[10].mxu0  ;;  %v1436_v29 = vpop.f32.mrb[10].mxu1 }
 0x10c   :  { %v571_v30 = vadd.f32 %v570_v24, %v569_v25  ;;  %v229_v31 = vadd.f32 %v935_v28, %v1390_v33  ;;  %v223_v32 = vpop.f32.mrb[11].mxu0  ;;  %v1439_v34 = vpop.f32.mrb[11].mxu1  ;;  %v574_v41 = vsel %vm556_vm0, %v501_v26, 0.0 }
 0x10d   :  { %v572_v37 = vsel %vm556_vm0, %v500_v27, 0.0  ;;  %v224_v38 = vadd.f32 %v1390_v33, %v223_v32 }
 0x10e   :  { %v573_v40 = vadd.f32 %v572_v37, %v571_v30  ;;  %v503_v42 = vmax.f32 %v229_v31, 0.0 }
 0x10f   :  { %v502_v43 = vmax.f32 %v224_v38, 0.0  ;;  %v938_v45 = vpop.f32.mrb[12].mxu0  ;;  %v1444_v46 = vpop.f32.mrb[12].mxu1 }
 0x110   :  { %v575_v47 = vadd.f32 %v574_v41, %v573_v40  ;;  %v239_v49 = vadd.f32 %v938_v45, %v1390_v33  ;;  %v233_v50 = vpop.f32.mrb[13].mxu0  ;;  %v1447_v51 = vpop.f32.mrb[13].mxu1  ;;  %v578_v56 = vsel %vm556_vm0, %v503_v42, 0.0 }
 0x111   :  { %v576_v52 = vsel %vm556_vm0, %v502_v43, 0.0  ;;  %v234_v53 = vadd.f32 %v1390_v33, %v233_v50 }
 0x112   :  { %v577_v54 = vadd.f32 %v576_v52, %v575_v47  ;;  %v505_v57 = vmax.f32 %v239_v49, 0.0 }
 0x113   :  { %v504_v59 = vmax.f32 %v234_v53, 0.0  ;;  %v941_v60 = vpop.f32.mrb[14].mxu0  ;;  %v1452_v61 = vpop.f32.mrb[14].mxu1 }
 0x114   :  { %v579_v62 = vadd.f32 %v578_v56, %v577_v54  ;;  %v249_v63 = vadd.f32 %v941_v60, %v1390_v33  ;;  %v243_v0 = vpop.f32.mrb[15].mxu0  ;;  %v1455_v1 = vpop.f32.mrb[15].mxu1  ;;  %v582_v7 = vsel %vm556_vm0, %v505_v57, 0.0 }
 0x115   :  { %v580_v3 = vsel %vm556_vm0, %v504_v59, 0.0  ;;  %v244_v4 = vadd.f32 %v1390_v33, %v243_v0 }
 0x116   :  { %v581_v5 = vadd.f32 %v580_v3, %v579_v62  ;;  %v507_v8 = vmax.f32 %v249_v63, 0.0 }
 0x117   :  { %v506_v9 = vmax.f32 %v244_v4, 0.0  ;;  %v944_v10 = vpop.f32.mrb[16].mxu0  ;;  %v1460_v11 = vpop.f32.mrb[16].mxu1 }
 0x118   :  { %v583_v12 = vadd.f32 %v582_v7, %v581_v5  ;;  %v259_v13 = vadd.f32 %v944_v10, %v1390_v33  ;;  %v253_v14 = vpop.f32.mrb[17].mxu0  ;;  %v1463_v15 = vpop.f32.mrb[17].mxu1  ;;  %v586_v20 = vsel %vm556_vm0, %v507_v8, 0.0 }
 0x119   :  { %v584_v16 = vsel %vm556_vm0, %v506_v9, 0.0  ;;  %v254_v18 = vadd.f32 %v1390_v33, %v253_v14 }
 0x11a   :  { %v585_v19 = vadd.f32 %v584_v16, %v583_v12  ;;  %v509_v22 = vmax.f32 %v259_v13, 0.0 }
 0x11b   :  { %v508_v23 = vmax.f32 %v254_v18, 0.0  ;;  %v947_v24 = vpop.f32.mrb[18].mxu0  ;;  %v1468_v25 = vpop.f32.mrb[18].mxu1 }
 0x11c   :  { %v587_v26 = vadd.f32 %v586_v20, %v585_v19  ;;  %v269_v27 = vadd.f32 %v947_v24, %v1390_v33  ;;  %v263_v28 = vpop.f32.mrb[19].mxu0  ;;  %v1471_v30 = vpop.f32.mrb[19].mxu1  ;;  %v590_v37 = vsel %vm556_vm0, %v509_v22, 0.0 }
 0x11d   :  { %v588_v31 = vsel %vm556_vm0, %v508_v23, 0.0  ;;  %v264_v32 = vadd.f32 %v1390_v33, %v263_v28 }
 0x11e   :  { %v589_v35 = vadd.f32 %v588_v31, %v587_v26  ;;  %v511_v38 = vmax.f32 %v269_v27, 0.0 }
 0x11f   :  { %v510_v40 = vmax.f32 %v264_v32, 0.0  ;;  %v950_v41 = vpop.f32.mrb[20].mxu0  ;;  %v1476_v42 = vpop.f32.mrb[20].mxu1 }
 0x120   :  { %v591_v43 = vadd.f32 %v590_v37, %v589_v35  ;;  %v279_v45 = vadd.f32 %v950_v41, %v1390_v33  ;;  %v273_v47 = vpop.f32.mrb[21].mxu0  ;;  %v1479_v49 = vpop.f32.mrb[21].mxu1  ;;  %v594_v54 = vsel %vm556_vm0, %v511_v38, 0.0 }
 0x121   :  { %v592_v50 = vsel %vm556_vm0, %v510_v40, 0.0  ;;  %v274_v52 = vadd.f32 %v1390_v33, %v273_v47 }
 0x122   :  { %v593_v53 = vadd.f32 %v592_v50, %v591_v43  ;;  %v513_v56 = vmax.f32 %v279_v45, 0.0 }
 0x123   :  { %v512_v57 = vmax.f32 %v274_v52, 0.0  ;;  %v953_v59 = vpop.f32.mrb[22].mxu0  ;;  %v1484_v60 = vpop.f32.mrb[22].mxu1 }
 0x124   :  { %v595_v62 = vadd.f32 %v594_v54, %v593_v53  ;;  %v289_v63 = vadd.f32 %v953_v59, %v1390_v33  ;;  %v283_v0 = vpop.f32.mrb[23].mxu0  ;;  %v1487_v3 = vpop.f32.mrb[23].mxu1  ;;  %v598_v8 = vsel %vm556_vm0, %v513_v56, 0.0 }
 0x125   :  { %v596_v4 = vsel %vm556_vm0, %v512_v57, 0.0  ;;  %v284_v5 = vadd.f32 %v1390_v33, %v283_v0 }
 0x126   :  { %v597_v7 = vadd.f32 %v596_v4, %v595_v62  ;;  %v515_v9 = vmax.f32 %v289_v63, 0.0 }
 0x127   :  { %v514_v10 = vmax.f32 %v284_v5, 0.0  ;;  %v956_v12 = vpop.f32.mrb[24].mxu0  ;;  %v1492_v13 = vpop.f32.mrb[24].mxu1 }
 0x128   :  { %v599_v14 = vadd.f32 %v598_v8, %v597_v7  ;;  %v299_v16 = vadd.f32 %v956_v12, %v1390_v33  ;;  %v293_v18 = vpop.f32.mrb[25].mxu0  ;;  %v1495_v19 = vpop.f32.mrb[25].mxu1  ;;  %v602_v24 = vsel %vm556_vm0, %v515_v9, 0.0 }
 0x129   :  { %v600_v20 = vsel %vm556_vm0, %v514_v10, 0.0  ;;  %v294_v22 = vadd.f32 %v1390_v33, %v293_v18  ;;  %v344_v18 = vadd.f32 %v1390_v33, %v1395_v39  ;;  %v354_v39 = vadd.f32 %v1390_v33, %v1402_v48 }
 0x12a   :  { %v601_v23 = vadd.f32 %v600_v20, %v599_v14  ;;  %v517_v26 = vmax.f32 %v299_v16, 0.0  ;;  %v364_v48 = vadd.f32 %v1390_v33, %v1409_v58  ;;  %v379_v58 = vadd.f32 %v1414_v2, %v1390_v33 }
 0x12b   :  { %v516_v27 = vmax.f32 %v294_v22, 0.0  ;;  %v959_v28 = vpop.f32.mrb[26].mxu0  ;;  %v1500_v31 = vpop.f32.mrb[26].mxu1  ;;  %v394_v2 = vadd.f32 %v1390_v33, %v1439_v34  ;;  %v409_v34 = vadd.f32 %v1444_v46, %v1390_v33  ;;  %v424_v46 = vadd.f32 %v1390_v33, %v1463_v15 }
 0x12c   :  { %v603_v32 = vadd.f32 %v602_v24, %v601_v23  ;;  %v309_v35 = vadd.f32 %v959_v28, %v1390_v33  ;;  %v303_v37 = vpop.f32.mrb[27].mxu0  ;;  %v1503_v38 = vpop.f32.mrb[27].mxu1  ;;  %v606_v45 = vsel %vm556_vm0, %v517_v26, 0.0  ;;  %v439_v15 = vadd.f32 %v1468_v25, %v1390_v33 }
 0x12d   :  { %v604_v40 = vsel %vm556_vm0, %v516_v27, 0.0  ;;  %v304_v41 = vadd.f32 %v1390_v33, %v303_v37  ;;  %v454_v25 = vadd.f32 %v1390_v33, %v1487_v3  ;;  %v469_v3 = vadd.f32 %v1492_v13, %v1390_v33 }
 0x12e   :  { %v605_v43 = vadd.f32 %v604_v40, %v603_v32  ;;  %v519_v47 = vmax.f32 %v309_v35, 0.0  ;;  %v349_v35 = vadd.f32 %v1392_v36, %v1390_v33  ;;  %v359_v36 = vadd.f32 %v1398_v44, %v1390_v33 }
 0x12f   :  { %v518_v50 = vmax.f32 %v304_v41, 0.0  ;;  %v962_v52 = vpop.f32.mrb[28].mxu0  ;;  %v1508_v53 = vpop.f32.mrb[28].mxu1  ;;  %v526_v41 = vmax.f32 %v344_v18, 0.0  ;;  %v374_v44 = vadd.f32 %v1390_v33, %v1417_v6 }
 0x130   :  { %v607_v54 = vadd.f32 %v606_v45, %v605_v43  ;;  %v319_v56 = vadd.f32 %v962_v52, %v1390_v33  ;;  %v313_v57 = vpop.f32.mrb[29].mxu0  ;;  %v1511_v59 = vpop.f32.mrb[29].mxu1  ;;  %v610_v4 = vsel %vm556_vm0, %v519_v47, 0.0 }
 0x131   :  { %v608_v62 = vsel %vm556_vm0, %v518_v50, 0.0  ;;  %v314_v63 = vadd.f32 %v1390_v33, %v313_v57  ;;  %v484_v13 = vadd.f32 %v1390_v33, %v1511_v59 }
 0x132   :  { %v609_v0 = vadd.f32 %v608_v62, %v607_v54  ;;  %v521_v5 = vmax.f32 %v319_v56, 0.0  ;;  %v527_v56 = vmax.f32 %v349_v35, 0.0  ;;  %v631_v62 = vsel %vm556_vm0, %v526_v41, 0.0 }
 0x133   :  { %v520_v7 = vmax.f32 %v314_v63, 0.0  ;;  %v965_v8 = vpop.f32.mrb[30].mxu0  ;;  %v528_v63 = vmax.f32 %v354_v39, 0.0 }
 0x134   :  { %v611_v9 = vadd.f32 %v610_v4, %v609_v0  ;;  %v329_v10 = vadd.f32 %v965_v8, %v1390_v33  ;;  %v323_v12 = vpop.f32.mrb[31].mxu0  ;;  %v614_v22 = vsel %vm556_vm0, %v521_v5, 0.0  ;;  %v633_v4 = vsel %vm556_vm0, %v527_v56, 0.0 }
 0x135   :  { %v612_v14 = vsel %vm556_vm0, %v520_v7, 0.0  ;;  %v324_v16 = vadd.f32 %v1390_v33, %v323_v12  ;;  %v369_v7 = vadd.f32 %v1406_v55, %v1390_v33  ;;  %v529_v8 = vmax.f32 %v359_v36, 0.0 }
 0x136   :  { %v613_v20 = vadd.f32 %v612_v14, %v611_v9  ;;  %v523_v23 = vmax.f32 %v329_v10, 0.0  ;;  %v635_v9 = vsel %vm556_vm0, %v528_v63, 0.0  ;;  %v530_v10 = vmax.f32 %v364_v48, 0.0 }
 0x137   :  { %v522_v24 = vmax.f32 %v324_v16, 0.0  ;;  %v968_v26 = vpop.f32.mrb[32].mxu0  ;;  %v531_v16 = vmax.f32 %v369_v7, 0.0  ;;  %v637_v18 = vsel %vm556_vm0, %v529_v8, 0.0  ;;  %v384_v55 = vadd.f32 %v1390_v33, %v1431_v21 }
 0x138   :  { %v615_v27 = vadd.f32 %v614_v22, %v613_v20  ;;  %v339_v28 = vadd.f32 %v968_v26, %v1390_v33  ;;  %v333_v32 = vpop.f32.mrb[33].mxu0  ;;  %v618_v47 = vsel %vm556_vm0, %v523_v23, 0.0  ;;  %v639_v20 = vsel %vm556_vm0, %v530_v10, 0.0 }
 0x139   :  { %v616_v37 = vsel %vm556_vm0, %v522_v24, 0.0  ;;  %v334_v40 = vadd.f32 %v1390_v33, %v333_v32  ;;  %v532_v22 = vmax.f32 %v374_v44, 0.0  ;;  %v641_v24 = vsel %vm556_vm0, %v531_v16, 0.0 }
 0x13a   :  { %v617_v43 = vadd.f32 %v616_v37, %v615_v27  ;;  %v525_v45 = vmax.f32 %v339_v28, 0.0  ;;  %v533_v27 = vmax.f32 %v379_v58, 0.0  ;;  %v389_v28 = vadd.f32 %v1428_v17, %v1390_v33 }
 0x13b   :  { %v524_v50 = vmax.f32 %v334_v40, 0.0  ;;  %v643_v6 = vsel %vm556_vm0, %v532_v22, 0.0  ;;  %v534_v32 = vmax.f32 %v384_v55, 0.0  ;;  %v399_v21 = vadd.f32 %v1436_v29, %v1390_v33 }
 0x13c   :  { %v1530_v52 = vadd.f32 %v618_v47, %v617_v43  ;;  %v629_v54 = vsel %vm556_vm0, %v525_v45, 0.0  ;;  %v645_v37 = vsel %vm556_vm0, %v533_v27, 0.0  ;;  %v535_v41 = vmax.f32 %v389_v28, 0.0 }
 0x13d   :  { %v628_v57 = vsel %vm556_vm0, %v524_v50, 0.0  ;;  %v647_v39 = vsel %vm556_vm0, %v534_v32, 0.0  ;;  %v536_v43 = vmax.f32 %v394_v2, 0.0  ;;  %v404_v45 = vadd.f32 %v1390_v33, %v1447_v51 }
 0x13e   :  { %v630_v0 = vadd.f32 %v629_v54, %v628_v57  ;;  %v537_v50 = vmax.f32 %v399_v21, 0.0  ;;  %v649_v54 = vsel %vm556_vm0, %v535_v41, 0.0  ;;  %v414_v29 = vadd.f32 %v1390_v33, %v1455_v1 }
 0x13f   :  { %v651_v56 = vsel %vm556_vm0, %v536_v43, 0.0  ;;  %v538_v36 = vmax.f32 %v404_v45, 0.0  ;;  %v539_v48 = vmax.f32 %v409_v34, 0.0  ;;  %v429_v1 = vadd.f32 %v1460_v11, %v1390_v33 }
 0x140   :  { %v632_v5 = vadd.f32 %v631_v62, %v630_v0  ;;  %v653_v62 = vsel %vm556_vm0, %v537_v50, 0.0  ;;  %v419_v0 = vadd.f32 %v1452_v61, %v1390_v33  ;;  %v542_v44 = vmax.f32 %v424_v46, 0.0 }
 0x141   :  { %v655_v51 = vsel %vm556_vm0, %v538_v36, 0.0  ;;  %v657_v7 = vsel %vm556_vm0, %v539_v48, 0.0  ;;  %v543_v16 = vmax.f32 %v429_v1, 0.0  ;;  %v444_v11 = vadd.f32 %v1390_v33, %v1479_v49 }
 0x142   :  { %v634_v12 = vadd.f32 %v633_v4, %v632_v5  ;;  %v540_v4 = vmax.f32 %v414_v29, 0.0  ;;  %v459_v49 = vadd.f32 %v1484_v60, %v1390_v33  ;;  %v474_v60 = vadd.f32 %v1390_v33, %v1503_v38 }
 0x143   :  { %v665_v55 = vsel %vm556_vm0, %v543_v16, 0.0  ;;  %v546_v27 = vmax.f32 %v444_v11, 0.0  ;;  %v551_v34 = vmax.f32 %v469_v3, 0.0  ;;  %v620_v29 = vrot.slane %v1530_v52, 4  ;;  %v795_v11 = vld [vmem:[%s1631_s4] ss:$0 sm:$0xff] }
 0x144   :  { %v636_v14 = vadd.f32 %v635_v9, %v634_v12  ;;  %v541_v9 = vmax.f32 %v419_v0, 0.0  ;;  %v659_v10 = vsel %vm556_vm0, %v540_v4, 0.0  ;;  %v434_v12 = vadd.f32 %v1390_v33, %v1471_v30 }
 0x145   :  { %v549_v41 = vmax.f32 %v459_v49, 0.0  ;;  %v489_v48 = vadd.f32 %v1508_v53, %v1390_v33 }
 0x146   :  { %v638_v23 = vadd.f32 %v637_v18, %v636_v14  ;;  %v661_v58 = vsel %vm556_vm0, %v541_v9, 0.0  ;;  %v663_v18 = vsel %vm556_vm0, %v542_v44, 0.0 }
 0x147   :  { %v555_v59 = vmax.f32 %v489_v48, 0.0 }
 0x148   :  { %v640_v26 = vadd.f32 %v639_v20, %v638_v23  ;;  %v544_v20 = vmax.f32 %v434_v12, 0.0 }
 0x149   :  { %v689_v9 = vsel %vm556_vm0, %v555_v59, 0.0 }
 0x14a   :  { %v642_v35 = vadd.f32 %v641_v24, %v640_v26  ;;  %v545_v24 = vmax.f32 %v439_v15, 0.0  ;;  %v667_v30 = vsel %vm556_vm0, %v544_v20, 0.0  ;;  %v449_v26 = vadd.f32 %v1476_v42, %v1390_v33 }
 0x14c   :  { %v644_v40 = vadd.f32 %v643_v6, %v642_v35  ;;  %v669_v28 = vsel %vm556_vm0, %v545_v24, 0.0  ;;  %v547_v2 = vmax.f32 %v449_v26, 0.0  ;;  %v671_v35 = vsel %vm556_vm0, %v546_v27, 0.0 }
 0x14e   :  { %v646_v47 = vadd.f32 %v645_v37, %v644_v40  ;;  %v548_v37 = vmax.f32 %v454_v25, 0.0  ;;  %v464_v40 = vadd.f32 %v1390_v33, %v1495_v19 }
 0x150   :  { %v648_v17 = vadd.f32 %v647_v39, %v646_v47  ;;  %v673_v39 = vsel %vm556_vm0, %v547_v2, 0.0  ;;  %v675_v43 = vsel %vm556_vm0, %v548_v37, 0.0  ;;  %v550_v45 = vmax.f32 %v464_v40, 0.0 }
 0x152   :  { %v650_v57 = vadd.f32 %v649_v54, %v648_v17  ;;  %v677_v17 = vsel %vm556_vm0, %v549_v41, 0.0  ;;  %v679_v19 = vsel %vm556_vm0, %v550_v45, 0.0  ;;  %v479_v54 = vadd.f32 %v1500_v31, %v1390_v33 }
 0x153   :  { %v621_v31 = vadd.f32 %v620_v29, %v1530_v52 }
 0x154   :  { %v652_v63 = vadd.f32 %v651_v56, %v650_v57  ;;  %v552_v56 = vmax.f32 %v474_v60, 0.0  ;;  %v681_v57 = vsel %vm556_vm0, %v551_v34, 0.0 }
 0x156   :  { %v654_v5 = vadd.f32 %v653_v62, %v652_v63  ;;  %v553_v62 = vmax.f32 %v479_v54, 0.0  ;;  %v683_v63 = vsel %vm556_vm0, %v552_v56, 0.0 }
 0x158   :  { %v656_v8 = vadd.f32 %v655_v51, %v654_v5  ;;  %v554_v51 = vmax.f32 %v484_v13, 0.0  ;;  %v685_v46 = vsel %vm556_vm0, %v553_v62, 0.0 }
 0x15a   :  { %v658_v14 = vadd.f32 %v657_v7, %v656_v8  ;;  %v687_v5 = vsel %vm556_vm0, %v554_v51, 0.0  ;;  %v622_v8 = vrot.slane %v621_v31, 2 }
 0x15c   :  { %v660_v61 = vadd.f32 %v659_v10, %v658_v14  ;;  %v623_v44 = vadd.f32 %v622_v8, %v621_v31 }
 0x15e   :  { %v662_v22 = vadd.f32 %v661_v58, %v660_v61  ;;  %v624_v33 = vrot.slane %v623_v44, 1 }
 0x160   :  { %v664_v23 = vadd.f32 %v663_v18, %v662_v22  ;;  %v625_v16 = vadd.f32 %v624_v33, %v623_v44 }
 0x162   :  { %v666_v6 = vadd.f32 %v665_v55, %v664_v23  ;;  %v627_v58 = vmul.f32 0.00390625, %v625_v16 }
 0x164   :  { %v668_v32 = vadd.f32 %v667_v30, %v666_v6 }
 0x166   :  { %v670_v21 = vadd.f32 %v669_v28, %v668_v32 }
 0x168   :  { %v672_v42 = vadd.f32 %v671_v35, %v670_v21 }
 0x16a   :  { %v674_v47 = vadd.f32 %v673_v39, %v672_v42 }
 0x16c   :  { %v676_v50 = vadd.f32 %v675_v43, %v674_v47 }
 0x16e   :  { %v678_v36 = vadd.f32 %v677_v17, %v676_v50 }
 0x170   :  { %v680_v38 = vadd.f32 %v679_v19, %v678_v36 }
 0x172   :  { %v682_v0 = vadd.f32 %v681_v57, %v680_v38 }
 0x174   :  { %v684_v4 = vadd.f32 %v683_v63, %v682_v0 }
 0x176   :  { %v686_v7 = vadd.f32 %v685_v46, %v684_v4 }
 0x178   :  { %v688_v1 = vadd.f32 %v687_v5, %v686_v7 }
 0x17a   :  { %v690_v10 = vadd.f32 %v689_v9, %v688_v1 }
 0x17c   :  { %v691_v12 = vrot.slane %v690_v10, 4 }
 0x17e   :  { %v692_v14 = vadd.f32 %v691_v12, %v690_v10 }
 0x180   :  { %v693_v53 = vrot.slane %v692_v14, 2 }
 0x182   :  { %v694_v61 = vadd.f32 %v693_v53, %v692_v14 }
 0x184   :  { %v695_v52 = vrot.slane %v694_v61, 1 }
 0x186   :  { %v696_v15 = vadd.f32 %v695_v52, %v694_v61 }
 0x188   :  { %v697_v18 = vmul.f32 0.00390625, %v696_v15 }
 0x18a   :  { %v699_v20 = vsel %vm698_vm2, %v627_v58, %v697_v18 }
 0x18b   :  { %1031 = vmatmul.mubr.msk.f32.vlgmr.msra.gmra.mrb[30].mxu1 %vm556_vm0, %v699_v20 }
 0x25e   :  { %v784_v22 = vpop.f32.mrb[30].mxu1 }
 0x25f   :  { %v785_v55 = vadd.f32 %v795_v11, %v784_v22  ;;  %v1032_v23 = vpop.f32.mrb[31].mxu1 }
 0x261   :  { %789 = vst.msk [vmem:[%s1632_s5] sm:$0x3] %vm788_vm3, %v785_v55 }

// kernel: cnn2rnn_forward.3
= control target key start
LH: loop header
LB: loop body
LE: loop exit
PB: predicated region body
PF: predicated region fallthrough
CT: control target
= control target key end

     0   :  { %v4993_v0 = vmov 0.0|0.0   ;;  %vm4994_vm0 = vmmov 0   ;;  %v4995_v4 = vmov 0.0   ;;  %vm46_vm1 = vcmask 261120   ;;  %s4996_s23 = smov 32   ;;  %s4997_s24 = smov 96   ;;  %s6022_s1 = inlined_call_operand.vmem [shape: f32[32,128], index: 1, kind: input, shape index: {}]   ;;  %s6023_s3 = inlined_call_operand.vmem [shape: f32[128,128], index: 3, kind: input, shape index: {}]   ;;  %s6024_s0 = inlined_call_operand.vmem [shape: f32[18,32], index: 0, kind: input, shape index: {}]   ;;  %s6025_s5 = inlined_call_operand.vmem [shape: f32[128,128], index: 5, kind: input, shape index: {}]   ;;  %s6026_s4 = inlined_call_operand.vmem [shape: f32[128,128], index: 4, kind: input, shape index: {}]   ;;  %s6027_s2 = inlined_call_operand.vmem [shape: f32[1,128], index: 2, kind: input, shape index: {}]   ;;  %s6028_s6 = inlined_call_operand.vmem [shape: f32[1,128], index: 6, kind: input, shape index: {}]   ;;  %s6029_s7 = inlined_call_operand.vmem [shape: f32[128,128], index: 7, kind: input, shape index: {}]   ;;  %s6030_s8 = inlined_call_operand.vmem [shape: f32[1,128], index: 8, kind: input, shape index: {}]   ;;  %s6031_s9 = inlined_call_operand.vmem [shape: f32[18,128], index: 9, kind: output, shape index: {}]  }
   0x1   :  { %4162 = vmatprep.subr.bf16.mxu1 %v4993_v0  ;;  %v35_v1 = vld [vmem:[%s6022_s1] sm:$0xff]  ;;  %v36_v2 = vld [vmem:[%s6022_s1 + $0x8] sm:$0xff]  ;;  %v37_v3 = vld [vmem:[%s6022_s1 + $0x10] sm:$0xff]  ;;  %3167 = vmatprep.mubr.msk.f32.mxu1 %vm4994_vm0, %v4995_v4  ;;  %s4998_s25 = smov 64   ;;  %vm2531_vm2 = vcmask 1041408   ;;  %vm2533_vm3 = vcmask 1043456  }
   0x2   :  { %v4163_v5 = vpack.c.bf16 %v36_v2, %v35_v1  ;;  %v38_v6 = vld [vmem:[%s6022_s1 + $0x18] sm:$0xff]  ;;  %4192 = vmatprep.subr.bf16.mxu0 %v4993_v0  ;;  %3243 = vmatprep.mubr.msk.f32.mxu0 %vm4994_vm0, %v4995_v4  ;;  %v136_v8 = vld [vmem:[%s6023_s3] sm:$0xff]  ;;  %v137_v9 = vld [vmem:[%s6023_s3 + $0x8] sm:$0xff]  ;;  %vm2535_vm4 = vcmask 1045504  }
   0x3   :  { %v4166_v7 = vpack.c.bf16 %v38_v6, %v37_v3  ;;  %v32_v10 = vld [vmem:[%s6024_s0] sm:$0xff]  ;;  %v5077_v11 = vpack.c.bf16 %v137_v9, %v136_v8  ;;  %v138_v12 = vld [vmem:[%s6023_s3 + $0x10] sm:$0xff]  ;;  %v139_v13 = vld [vmem:[%s6023_s3 + $0x18] sm:$0xff] }
   0x4   :  { %4164 = vmatpush3.bf16.msra.mxu1 %v4163_v5  ;;  %v5088_v14 = vpack.c.bf16 %v139_v13, %v138_v12  ;;  %v33_v15 = vld [vmem:[%s6024_s0 + $0x8] sm:$0xff]  ;;  %v140_v16 = vld [vmem:[%s6023_s3 + $0x20] sm:$0xff]  ;;  %v34_v19 = vld [vmem:[%s6024_s0 + $0x10] sm:$0x3] }
   0x5   :  { %4165 = vmatprep.subr.bf16.mxu1 %v4993_v0  ;;  %v141_v17 = vld [vmem:[%s6023_s3 + $0x28] sm:$0xff]  ;;  %v142_v20 = vld [vmem:[%s6023_s3 + $0x30] sm:$0xff]  ;;  %v143_v21 = vld [vmem:[%s6023_s3 + $0x38] sm:$0xff] }
   0x6   :  { %v5104_v18 = vpack.c.bf16 %v141_v17, %v140_v16  ;;  %v5120_v22 = vpack.c.bf16 %v143_v21, %v142_v20  ;;  %v144_v23 = vld [vmem:[%s6023_s3 + $0x40] sm:$0xff]  ;;  %v145_v24 = vld [vmem:[%s6023_s3 + $0x48] sm:$0xff]  ;;  %v146_v26 = vld [vmem:[%s6023_s3 + $0x50] sm:$0xff] }
   0x7   :  { %v5132_v25 = vpack.c.bf16 %v145_v24, %v144_v23  ;;  %v147_v27 = vld [vmem:[%s6023_s3 + $0x58] sm:$0xff]  ;;  %v148_v29 = vld [vmem:[%s6023_s3 + $0x60] sm:$0xff]  ;;  %v149_v30 = vld [vmem:[%s6023_s3 + $0x68] sm:$0xff] }
   0x8   :  { %4167 = vmatpush3.bf16.msra.mxu1 %v4166_v7  ;;  %v5142_v28 = vpack.c.bf16 %v147_v27, %v146_v26  ;;  %v5152_v31 = vpack.c.bf16 %v149_v30, %v148_v29  ;;  %v150_v32 = vld [vmem:[%s6023_s3 + $0x70] sm:$0xff]  ;;  %v151_v33 = vld [vmem:[%s6023_s3 + $0x78] sm:$0xff]  ;;  %v257_v35 = vld [vmem:[%s6025_s5] sm:$0xff] }
   0x9   :  { %4168 = vmatprep.subr.bf16.mxu1 %v4993_v0  ;;  %v5162_v34 = vpack.c.bf16 %v151_v33, %v150_v32  ;;  %v258_v36 = vld [vmem:[%s6025_s5 + $0x8] sm:$0xff]  ;;  %v259_v37 = vld [vmem:[%s6025_s5 + $0x10] sm:$0xff]  ;;  %v260_v39 = vld [vmem:[%s6025_s5 + $0x18] sm:$0xff] }
   0xa   :  { %v5179_v38 = vpack.c.bf16 %v258_v36, %v257_v35  ;;  %v5185_v40 = vpack.c.bf16 %v260_v39, %v259_v37  ;;  %v261_v41 = vld [vmem:[%s6025_s5 + $0x20] sm:$0xff]  ;;  %v262_v42 = vld [vmem:[%s6025_s5 + $0x28] sm:$0xff]  ;;  %v243_v46 = vld [vmem:[%s6026_s4 + $0x10] sm:$0xff] }
   0xb   :  { %3168 = vmatmul.mubr.msk.f32.vlgmr.msra.gmra.mrb[0].mxu1 %vm46_vm1, %v32_v10  ;;  %v241_v43 = vld [vmem:[%s6026_s4] sm:$0xff]  ;;  %v242_v44 = vld [vmem:[%s6026_s4 + $0x8] sm:$0xff]  ;;  %v244_v47 = vld [vmem:[%s6026_s4 + $0x18] sm:$0xff]  ;;  %v5209_v48 = vpack.c.bf16 %v262_v42, %v261_v41 }
   0xc   :  { %4170 = vmatpush3.bf16.msra.mxu1 %v5077_v11  ;;  %3170 = vmatprep.mubr.msk.f32.mxu1 %vm4994_vm0, %v4995_v4  ;;  %v5200_v45 = vpack.c.bf16 %v242_v44, %v241_v43  ;;  %v263_v49 = vld [vmem:[%s6025_s5 + $0x30] sm:$0xff]  ;;  %v264_v50 = vld [vmem:[%s6025_s5 + $0x38] sm:$0xff]  ;;  %v5219_v51 = vpack.c.bf16 %v244_v47, %v243_v46  ;;  %v245_v52 = vld [vmem:[%s6026_s4 + $0x20] sm:$0xff] }
   0xd   :  { %4171 = vmatprep.subr.bf16.mxu1 %v4993_v0  ;;  %4194 = vmatpush3.bf16.msra.mxu0 %v5179_v38  ;;  %v246_v53 = vld [vmem:[%s6026_s4 + $0x28] sm:$0xff]  ;;  %v5229_v54 = vpack.c.bf16 %v264_v50, %v263_v49  ;;  %v265_v55 = vld [vmem:[%s6025_s5 + $0x40] sm:$0xff]  ;;  %v267_v59 = vld [vmem:[%s6025_s5 + $0x50] sm:$0xff] }
   0xe   :  { %4195 = vmatprep.subr.bf16.mxu0 %v4993_v0  ;;  %v266_v56 = vld [vmem:[%s6025_s5 + $0x48] sm:$0xff]  ;;  %v5239_v57 = vpack.c.bf16 %v246_v53, %v245_v52  ;;  %v268_v60 = vld [vmem:[%s6025_s5 + $0x58] sm:$0xff]  ;;  %v269_v62 = vld [vmem:[%s6025_s5 + $0x60] sm:$0xff] }
   0xf   :  { %3171 = vmatmul.mubr.msk.f32.gmra.mrb[2].mxu1 %vm46_vm1, %v33_v15  ;;  %v5243_v58 = vpack.c.bf16 %v266_v56, %v265_v55  ;;  %v5255_v61 = vpack.c.bf16 %v268_v60, %v267_v59  ;;  %v270_v63 = vld [vmem:[%s6025_s5 + $0x68] sm:$0xff]  ;;  %v271_v2 = vld [vmem:[%s6025_s5 + $0x70] sm:$0xff]  ;;  %v272_v3 = vld [vmem:[%s6025_s5 + $0x78] sm:$0xff] }
  0x10   :  { %4173 = vmatpush3.bf16.msra.mxu1 %v5088_v14  ;;  %3173 = vmatprep.mubr.msk.f32.mxu1 %vm4994_vm0, %v4995_v4  ;;  %v5265_v1 = vpack.c.bf16 %v270_v63, %v269_v62  ;;  %v5275_v5 = vpack.c.bf16 %v272_v3, %v271_v2  ;;  %v2650_v8 = vld [vmem:[%s6027_s2] ss:$0 sm:$0xff]  ;;  %v247_v26 = vld [vmem:[%s6026_s4 + $0x30] sm:$0xff]  ;;  %v248_v27 = vld [vmem:[%s6026_s4 + $0x38] sm:$0xff] }
  0x11   :  { %4174 = vmatprep.subr.bf16.mxu1 %v4993_v0  ;;  %4197 = vmatpush3.bf16.msra.mxu0 %v5185_v40  ;;  %v5315_v30 = vpack.c.bf16 %v248_v27, %v247_v26  ;;  %v249_v32 = vld [vmem:[%s6026_s4 + $0x40] sm:$0xff]  ;;  %v250_v33 = vld [vmem:[%s6026_s4 + $0x48] sm:$0xff]  ;;  %v251_v36 = vld [vmem:[%s6026_s4 + $0x50] sm:$0xff] }
  0x12   :  { %4198 = vmatprep.subr.bf16.mxu0 %v4993_v0  ;;  %v5325_v35 = vpack.c.bf16 %v250_v33, %v249_v32  ;;  %v252_v37 = vld [vmem:[%s6026_s4 + $0x58] sm:$0xff]  ;;  %v253_v41 = vld [vmem:[%s6026_s4 + $0x60] sm:$0xff]  ;;  %v254_v42 = vld [vmem:[%s6026_s4 + $0x68] sm:$0xff] }
  0x13   :  { %3174 = vmatmul.mubr.msk.f32.gmra.mrb[4].mxu1 %vm46_vm1, %v34_v19  ;;  %v5335_v39 = vpack.c.bf16 %v252_v37, %v251_v36  ;;  %v5344_v43 = vpack.c.bf16 %v254_v42, %v253_v41  ;;  %v255_v44 = vld [vmem:[%s6026_s4 + $0x70] sm:$0xff]  ;;  %v256_v46 = vld [vmem:[%s6026_s4 + $0x78] sm:$0xff] }
  0x14   :  { %4176 = vmatpush3.bf16.msra.mxu1 %v5104_v18  ;;  %3208 = vmatprep.mubr.msk.f32.mxu1 %vm4994_vm0, %v4995_v4  ;;  %v5356_v49 = vpack.c.bf16 %v256_v46, %v255_v44 }
  0x15   :  { %4177 = vmatprep.subr.bf16.mxu1 %v4993_v0  ;;  %4200 = vmatpush3.bf16.msra.mxu0 %v5209_v48 }
  0x16   :  { %4201 = vmatprep.subr.bf16.mxu0 %v4993_v0 }
  0x18   :  { %4179 = vmatpush3.bf16.msra.mxu1 %v5120_v22 }
  0x19   :  { %4180 = vmatprep.subr.bf16.mxu1 %v4993_v0  ;;  %4203 = vmatpush3.bf16.msra.mxu0 %v5229_v54 }
  0x1a   :  { %4204 = vmatprep.subr.bf16.mxu0 %v4993_v0 }
  0x1c   :  { %4182 = vmatpush3.bf16.msra.mxu1 %v5132_v25 }
  0x1d   :  { %4183 = vmatprep.subr.bf16.mxu1 %v4993_v0  ;;  %4206 = vmatpush3.bf16.msra.mxu0 %v5243_v58 }
  0x1e   :  { %4207 = vmatprep.subr.bf16.mxu0 %v4993_v0 }
  0x20   :  { %4185 = vmatpush3.bf16.msra.mxu1 %v5142_v28 }
  0x21   :  { %4186 = vmatprep.subr.bf16.mxu1 %v4993_v0  ;;  %4209 = vmatpush3.bf16.msra.mxu0 %v5255_v61 }
  0x22   :  { %4210 = vmatprep.subr.bf16.mxu0 %v4993_v0 }
  0x24   :  { %4188 = vmatpush3.bf16.msra.mxu1 %v5152_v31 }
  0x25   :  { %4189 = vmatprep.subr.bf16.mxu1 %v4993_v0  ;;  %4212 = vmatpush3.bf16.msra.mxu0 %v5265_v1 }
  0x26   :  { %4213 = vmatprep.subr.bf16.mxu0 %v4993_v0 }
  0x28   :  { %4191 = vmatpush3.bf16.msra.mxu1 %v5162_v34 }
  0x29   :  { %4216 = vmatprep.subr.bf16.mxu1 %v4993_v0  ;;  %4215 = vmatpush3.bf16.msra.mxu0 %v5275_v5 }
  0x2a   :  { %4240 = vmatprep.subr.bf16.mxu0 %v4993_v0 }
  0x2b   :  { %3209 = vmatmul.mubr.f32.vlgmr.msra.gmra.mrb[6].mxu1 %v4995_v4 }
  0x2c   :  { %3278 = vmatprep.mubr.msk.f32.mxu1 %vm4994_vm0, %v4995_v4  ;;  %4218 = vmatpush3.bf16.msra.mxu1 %v5200_v45 }
  0x2d   :  { %4219 = vmatprep.subr.bf16.mxu1 %v4993_v0  ;;  %3244 = vmatmul.mubr.f32.vlgmr.msra.gmra.mrb[0].mxu0 %v4995_v4 }
  0x2e   :  { %4242 = vmatpush3.bf16.msra.mxu0 %v5077_v11  ;;  %3313 = vmatprep.mubr.msk.f32.mxu0 %vm4994_vm0, %v4995_v4 }
  0x2f   :  { %4243 = vmatprep.subr.bf16.mxu0 %v4993_v0 }
  0x30   :  { %4221 = vmatpush3.bf16.msra.mxu1 %v5219_v51 }
  0x31   :  { %4222 = vmatprep.subr.bf16.mxu1 %v4993_v0 }
  0x32   :  { %4245 = vmatpush3.bf16.msra.mxu0 %v5088_v14 }
  0x33   :  { %4246 = vmatprep.subr.bf16.mxu0 %v4993_v0 }
  0x34   :  { %4224 = vmatpush3.bf16.msra.mxu1 %v5239_v57 }
  0x35   :  { %4225 = vmatprep.subr.bf16.mxu1 %v4993_v0 }
  0x36   :  { %4248 = vmatpush3.bf16.msra.mxu0 %v5104_v18 }
  0x37   :  { %4249 = vmatprep.subr.bf16.mxu0 %v4993_v0 }
  0x38   :  { %4227 = vmatpush3.bf16.msra.mxu1 %v5315_v30 }
  0x39   :  { %4228 = vmatprep.subr.bf16.mxu1 %v4993_v0 }
  0x3a   :  { %4251 = vmatpush3.bf16.msra.mxu0 %v5120_v22 }
  0x3b   :  { %4252 = vmatprep.subr.bf16.mxu0 %v4993_v0 }
  0x3c   :  { %4230 = vmatpush3.bf16.msra.mxu1 %v5325_v35 }
  0x3d   :  { %4231 = vmatprep.subr.bf16.mxu1 %v4993_v0 }
  0x3e   :  { %4254 = vmatpush3.bf16.msra.mxu0 %v5132_v25 }
  0x3f   :  { %4255 = vmatprep.subr.bf16.mxu0 %v4993_v0 }
  0x40   :  { %4233 = vmatpush3.bf16.msra.mxu1 %v5335_v39 }
  0x41   :  { %4234 = vmatprep.subr.bf16.mxu1 %v4993_v0 }
  0x42   :  { %4257 = vmatpush3.bf16.msra.mxu0 %v5142_v28 }
  0x43   :  { %4258 = vmatprep.subr.bf16.mxu0 %v4993_v0 }
  0x44   :  { %4236 = vmatpush3.bf16.msra.mxu1 %v5344_v43 }
  0x45   :  { %4237 = vmatprep.subr.bf16.mxu1 %v4993_v0 }
  0x46   :  { %4260 = vmatpush3.bf16.msra.mxu0 %v5152_v31 }
  0x47   :  { %4261 = vmatprep.subr.bf16.mxu0 %v4993_v0 }
  0x48   :  { %4239 = vmatpush3.bf16.msra.mxu1 %v5356_v49 }
  0x49   :  { %4264 = vmatprep.subr.bf16.mxu1 %v4993_v0 }
  0x4a   :  { %4263 = vmatpush3.bf16.msra.mxu0 %v5162_v34 }
  0x4b   :  { %4288 = vmatprep.subr.bf16.mxu0 %v4993_v0 }
  0xde   :  { %v122_v6 = vpop.f32.mrb[0].mxu1 }
  0xdf   :  { %v3169_v7 = vpop.f32.mrb[1].mxu1  ;;  %v5306_v17 = vadd.f32 %v2650_v8, %v122_v6 }
  0xe0   :  { %v5404_v7 = vld [vmem:[%s6028_s6] ss:$0 sm:$0xff] }
  0xe2   :  { %v127_v9 = vpop.f32.mrb[2].mxu1 }
  0xe3   :  { %v5302_v10 = vadd.f32 %v2650_v8, %v127_v9  ;;  %v3172_v12 = vpop.f32.mrb[3].mxu1 }
  0xe6   :  { %v132_v13 = vpop.f32.mrb[4].mxu1 }
  0xe7   :  { %v5304_v15 = vadd.f32 %v2650_v8, %v132_v13  ;;  %v3175_v16 = vpop.f32.mrb[5].mxu1 }
  0xfe   :  { %v218_v19 = vpop.f32.mrb[6].mxu1 }
  0xff   :  { %v222_v20 = vadd.f32 %v218_v19, %v5306_v17  ;;  %v3210_v21 = vpop.f32.mrb[7].mxu1 }
 0x100   :  { %v339_v60 = vpop.f32.mrb[0].mxu0 }
 0x101   :  { %v2654_v23 = vmul.f32 -1.442695, %v222_v20  ;;  %v3245_v62 = vpop.f32.mrb[1].mxu0 }
 0x103   :  { %4848 = vpow2.f32 %v2654_v23 }
 0x10d   :  { %v4849_v24 = vpop.eup %4848 }
 0x10e   :  { %v226_v29 = vadd.f32 1.0, %v4849_v24 }
 0x110   :  { %4850 = vrcp.f32 %v226_v29 }
 0x111   :  { %4852 = vtanh.f32 %v222_v20 }
 0x11a   :  { %v4851_v47 = vpop.eup %4850 }
 0x11b   :  { %234 = vrot.lane.b32.xlu1 %v4851_v47, %s4996_s23  ;;  %230 = vrot.lane.b32.xlu0 %v4851_v47, %s4997_s24  ;;  %v4853_v50 = vpop.eup %4852 }
 0x11f   :  { %232 = vrot.lane.b32.xlu0 %v4853_v50, %s4998_s25 }
 0x18d   :  { %v231_v52 = vpop.permute.xlu0 %230  ;;  %v235_v2 = vpop.permute.xlu1 %234 }
 0x18e   :  { %v236_v55 = vmul.f32 0.0, %v231_v52 }
 0x191   :  { %v233_v53 = vpop.permute.xlu0 %232 }
 0x192   :  { %v237_v56 = vmul.f32 %v4851_v47, %v233_v53 }
 0x194   :  { %v5362_v59 = vadd.f32 %v237_v56, %v236_v55 }
 0x196   :  { %4854 = vtanh.f32 %v5362_v59 }
 0x1a0   :  { %v4855_v63 = vpop.eup %4854 }
 0x1a1   :  { %v240_v3 = vmul.f32 %v4855_v63, %v235_v2 }
 0x1a3   :  { %3279 = vmatmul.mubr.f32.vlgmr.msra.gmra.mrb[8].mxu1 %v240_v3  ;;  %3314 = vmatmul.mubr.f32.vlgmr.msra.gmra.mrb[2].mxu0 %v240_v3 }
 0x1a4   :  { %4266 = vmatpush3.bf16.msra.mxu1 %v5179_v38  ;;  %4290 = vmatpush3.bf16.msra.mxu0 %v5200_v45 }
 0x1a5   :  { %4267 = vmatprep.subr.bf16.mxu1 %v4993_v0  ;;  %4291 = vmatprep.subr.bf16.mxu0 %v4993_v0 }
 0x1a6   :  { %3348 = vmatprep.mubr.msk.f32.mxu1 %vm4994_vm0, %v4995_v4  ;;  %3383 = vmatprep.mubr.msk.f32.mxu0 %vm4994_vm0, %v4995_v4 }
 0x1a8   :  { %4269 = vmatpush3.bf16.msra.mxu1 %v5185_v40  ;;  %4293 = vmatpush3.bf16.msra.mxu0 %v5219_v51 }
 0x1a9   :  { %4270 = vmatprep.subr.bf16.mxu1 %v4993_v0  ;;  %4294 = vmatprep.subr.bf16.mxu0 %v4993_v0 }
 0x1ac   :  { %4272 = vmatpush3.bf16.msra.mxu1 %v5209_v48  ;;  %4296 = vmatpush3.bf16.msra.mxu0 %v5239_v57 }
 0x1ad   :  { %4273 = vmatprep.subr.bf16.mxu1 %v4993_v0  ;;  %4297 = vmatprep.subr.bf16.mxu0 %v4993_v0 }
 0x1b0   :  { %4275 = vmatpush3.bf16.msra.mxu1 %v5229_v54  ;;  %4299 = vmatpush3.bf16.msra.mxu0 %v5315_v30 }
 0x1b1   :  { %4276 = vmatprep.subr.bf16.mxu1 %v4993_v0  ;;  %4300 = vmatprep.subr.bf16.mxu0 %v4993_v0 }
 0x1b4   :  { %4278 = vmatpush3.bf16.msra.mxu1 %v5243_v58  ;;  %4302 = vmatpush3.bf16.msra.mxu0 %v5325_v35 }
 0x1b5   :  { %4279 = vmatprep.subr.bf16.mxu1 %v4993_v0  ;;  %4303 = vmatprep.subr.bf16.mxu0 %v4993_v0 }
 0x1b8   :  { %4281 = vmatpush3.bf16.msra.mxu1 %v5255_v61  ;;  %4305 = vmatpush3.bf16.msra.mxu0 %v5335_v39 }
 0x1b9   :  { %4282 = vmatprep.subr.bf16.mxu1 %v4993_v0  ;;  %4306 = vmatprep.subr.bf16.mxu0 %v4993_v0 }
 0x1bc   :  { %4284 = vmatpush3.bf16.msra.mxu1 %v5265_v1  ;;  %4308 = vmatpush3.bf16.msra.mxu0 %v5344_v43 }
 0x1bd   :  { %4285 = vmatprep.subr.bf16.mxu1 %v4993_v0  ;;  %4309 = vmatprep.subr.bf16.mxu0 %v4993_v0 }
 0x1c0   :  { %4287 = vmatpush3.bf16.msra.mxu1 %v5275_v5  ;;  %4311 = vmatpush3.bf16.msra.mxu0 %v5356_v49 }
 0x1c1   :  { %4312 = vmatprep.subr.bf16.mxu1 %v4993_v0  ;;  %4336 = vmatprep.subr.bf16.mxu0 %v4993_v0 }
 0x276   :  { %v409_v6 = vpop.f32.mrb[8].mxu1  ;;  %v505_v8 = vpop.f32.mrb[2].mxu0 }
 0x277   :  { %v410_v9 = vadd.f32 %v409_v6, %v339_v60  ;;  %v510_v12 = vrot.slane %v505_v8, 6  ;;  %v3280_v13 = vpop.f32.mrb[9].mxu1  ;;  %v3315_v16 = vpop.f32.mrb[3].mxu0 }
 0x279   :  { %v420_v19 = vadd.f32 %v5404_v7, %v410_v9  ;;  %v512_v20 = vadd.f32 %v510_v12, %v5306_v17 }
 0x27b   :  { %v2656_v21 = vmul.f32 -1.442695, %v420_v19  ;;  %v2657_v23 = vmul.f32 -1.442695, %v512_v20  ;;  %4856 = vtanh.f32 %v512_v20 }
 0x27d   :  { %4858 = vpow2.f32 %v2656_v21 }
 0x27e   :  { %4860 = vpow2.f32 %v2657_v23 }
 0x27f   :  { %4862 = vtanh.f32 %v420_v19 }
 0x285   :  { %v4857_v24 = vpop.eup %4856 }
 0x286   :  { %v526_v27 = vrot.slane %v4857_v24, 2 }
 0x287   :  { %v4859_v26 = vpop.eup %4858 }
 0x288   :  { %v4861_v29 = vpop.eup %4860  ;;  %v424_v32 = vadd.f32 1.0, %v4859_v26  ;;  %528 = vrot.lane.b32.xlu1 %v526_v27, %s4998_s25 }
 0x289   :  { %v516_v33 = vadd.f32 1.0, %v4861_v29  ;;  %v4863_v36 = vpop.eup %4862 }
 0x28a   :  { %4864 = vrcp.f32 %v424_v32 }
 0x28b   :  { %4866 = vrcp.f32 %v516_v33 }
 0x28c   :  { %430 = vrot.lane.b32.xlu1 %v4863_v36, %s4998_s25 }
 0x294   :  { %v4865_v37 = vpop.eup %4864 }
 0x295   :  { %v4867_v41 = vpop.eup %4866  ;;  %432 = vrot.lane.b32.xlu1 %v4865_v37, %s4996_s23  ;;  %428 = vrot.lane.b32.xlu0 %v4865_v37, %s4997_s24 }
 0x296   :  { %v521_v42 = vrot.slane %v4867_v41, 2 }
 0x299   :  { %523 = vrot.lane.b32.xlu0 %v521_v42, %s4997_s24 }
 0x29d   :  { %530 = vrot.lane.b32.xlu0 %v521_v42, %s4996_s23 }
 0x2fa   :  { %v529_v44 = vpop.permute.xlu1 %528 }
 0x2fb   :  { %v534_v46 = vrot.slane %v529_v44, 6 }
 0x2fd   :  { %v536_v52 = vmul.f32 %v4867_v41, %v534_v46 }
 0x2fe   :  { %v431_v47 = vpop.permute.xlu1 %430 }
 0x2ff   :  { %v435_v53 = vmul.f32 %v4865_v37, %v431_v47  ;;  %v538_v62 = vrot.slane %v536_v52, 2 }
 0x307   :  { %v429_v50 = vpop.permute.xlu0 %428  ;;  %v433_v6 = vpop.permute.xlu1 %432 }
 0x308   :  { %v434_v55 = vmul.f32 0.0, %v429_v50 }
 0x30a   :  { %v5414_v56 = vadd.f32 %v435_v53, %v434_v55 }
 0x30b   :  { %v524_v60 = vpop.permute.xlu0 %523 }
 0x30c   :  { %4868 = vtanh.f32 %v5414_v56  ;;  %v532_v63 = vmul.f32 %v524_v60, %v5362_v59 }
 0x30e   :  { %v5418_v2 = vadd.f32 %v538_v62, %v532_v63 }
 0x30f   :  { %v531_v12 = vpop.permute.xlu0 %530 }
 0x310   :  { %4870 = vtanh.f32 %v5418_v2 }
 0x316   :  { %v4869_v3 = vpop.eup %4868 }
 0x317   :  { %v5421_v8 = vmul.f32 %v4869_v3, %v433_v6 }
 0x319   :  { %3349 = vmatmul.mubr.f32.vlgmr.msra.gmra.mrb[10].mxu1 %v5421_v8 }
 0x31a   :  { %v4871_v9 = vpop.eup %4870  ;;  %4314 = vmatpush3.bf16.msra.mxu1 %v5077_v11  ;;  %3418 = vmatprep.mubr.msk.f32.mxu1 %vm4994_vm0, %v4995_v4 }
 0x31b   :  { %v542_v13 = vmul.f32 %v4871_v9, %v531_v12  ;;  %4315 = vmatprep.subr.bf16.mxu1 %v4993_v0 }
 0x31d   :  { %3384 = vmatmul.mubr.f32.vlgmr.msra.gmra.mrb[4].mxu0 %v542_v13 }
 0x31e   :  { %4317 = vmatpush3.bf16.msra.mxu1 %v5088_v14  ;;  %4338 = vmatpush3.bf16.msra.mxu0 %v5179_v38 }
 0x31f   :  { %4318 = vmatprep.subr.bf16.mxu1 %v4993_v0  ;;  %4339 = vmatprep.subr.bf16.mxu0 %v4993_v0 }
 0x320   :  { %3453 = vmatprep.mubr.msk.f32.mxu0 %vm4994_vm0, %v4995_v4 }
 0x322   :  { %4320 = vmatpush3.bf16.msra.mxu1 %v5104_v18  ;;  %4341 = vmatpush3.bf16.msra.mxu0 %v5185_v40 }
 0x323   :  { %4321 = vmatprep.subr.bf16.mxu1 %v4993_v0  ;;  %4342 = vmatprep.subr.bf16.mxu0 %v4993_v0 }
 0x326   :  { %4323 = vmatpush3.bf16.msra.mxu1 %v5120_v22  ;;  %4344 = vmatpush3.bf16.msra.mxu0 %v5209_v48 }
 0x327   :  { %4324 = vmatprep.subr.bf16.mxu1 %v4993_v0  ;;  %4345 = vmatprep.subr.bf16.mxu0 %v4993_v0 }
 0x32a   :  { %4326 = vmatpush3.bf16.msra.mxu1 %v5132_v25  ;;  %4347 = vmatpush3.bf16.msra.mxu0 %v5229_v54 }
 0x32b   :  { %4327 = vmatprep.subr.bf16.mxu1 %v4993_v0  ;;  %4348 = vmatprep.subr.bf16.mxu0 %v4993_v0 }
 0x32e   :  { %4329 = vmatpush3.bf16.msra.mxu1 %v5142_v28  ;;  %4350 = vmatpush3.bf16.msra.mxu0 %v5243_v58 }
 0x32f   :  { %4330 = vmatprep.subr.bf16.mxu1 %v4993_v0  ;;  %4351 = vmatprep.subr.bf16.mxu0 %v4993_v0 }
 0x332   :  { %4332 = vmatpush3.bf16.msra.mxu1 %v5152_v31  ;;  %4353 = vmatpush3.bf16.msra.mxu0 %v5255_v61 }
 0x333   :  { %4333 = vmatprep.subr.bf16.mxu1 %v4993_v0  ;;  %4354 = vmatprep.subr.bf16.mxu0 %v4993_v0 }
 0x336   :  { %4335 = vmatpush3.bf16.msra.mxu1 %v5162_v34  ;;  %4356 = vmatpush3.bf16.msra.mxu0 %v5265_v1 }
 0x337   :  { %4357 = vmatprep.subr.bf16.mxu0 %v4993_v0  ;;  %4360 = vmatprep.subr.bf16.mxu1 %v4993_v0 }
 0x339   :  { %3419 = vmatmul.mubr.f32.vlgmr.msra.gmra.mrb[12].mxu1 %v542_v13 }
 0x33a   :  { %4359 = vmatpush3.bf16.msra.mxu0 %v5275_v5  ;;  %4362 = vmatpush3.bf16.msra.mxu1 %v5200_v45 }
 0x33b   :  { %4384 = vmatprep.subr.bf16.mxu0 %v4993_v0  ;;  %4363 = vmatprep.subr.bf16.mxu1 %v4993_v0 }
 0x33c   :  { %3488 = vmatprep.mubr.msk.f32.mxu1 %vm4994_vm0, %v4995_v4 }
 0x33e   :  { %4365 = vmatpush3.bf16.msra.mxu1 %v5219_v51 }
 0x33f   :  { %4366 = vmatprep.subr.bf16.mxu1 %v4993_v0 }
 0x342   :  { %4368 = vmatpush3.bf16.msra.mxu1 %v5239_v57 }
 0x343   :  { %4369 = vmatprep.subr.bf16.mxu1 %v4993_v0 }
 0x346   :  { %4371 = vmatpush3.bf16.msra.mxu1 %v5315_v30 }
 0x347   :  { %4372 = vmatprep.subr.bf16.mxu1 %v4993_v0 }
 0x34a   :  { %4374 = vmatpush3.bf16.msra.mxu1 %v5325_v35 }
 0x34b   :  { %4375 = vmatprep.subr.bf16.mxu1 %v4993_v0 }
 0x34e   :  { %4377 = vmatpush3.bf16.msra.mxu1 %v5335_v39 }
 0x34f   :  { %4378 = vmatprep.subr.bf16.mxu1 %v4993_v0 }
 0x352   :  { %4380 = vmatpush3.bf16.msra.mxu1 %v5344_v43 }
 0x353   :  { %4381 = vmatprep.subr.bf16.mxu1 %v4993_v0 }
 0x356   :  { %4383 = vmatpush3.bf16.msra.mxu1 %v5356_v49 }
 0x357   :  { %4408 = vmatprep.subr.bf16.mxu1 %v4993_v0 }
 0x3ec   :  { %v609_v59 = vpop.f32.mrb[10].mxu1 }
 0x3ed   :  { %v3350_v16 = vpop.f32.mrb[11].mxu1 }
 0x3f0   :  { %v679_v19 = vpop.f32.mrb[4].mxu0 }
 0x3f1   :  { %v680_v20 = vadd.f32 %v679_v19, %v609_v59  ;;  %v3385_v21 = vpop.f32.mrb[5].mxu0 }
 0x3f3   :  { %v683_v23 = vadd.f32 %v5404_v7, %v680_v20 }
 0x3f5   :  { %v2658_v24 = vmul.f32 -1.442695, %v683_v23  ;;  %4872 = vtanh.f32 %v683_v23 }
 0x3f7   :  { %4874 = vpow2.f32 %v2658_v24 }
 0x3ff   :  { %v4873_v26 = vpop.eup %4872 }
 0x400   :  { %693 = vrot.lane.b32.xlu0 %v4873_v26, %s4998_s25 }
 0x401   :  { %v4875_v27 = vpop.eup %4874 }
 0x402   :  { %v687_v29 = vadd.f32 1.0, %v4875_v27 }
 0x404   :  { %4876 = vrcp.f32 %v687_v29 }
 0x40c   :  { %v768_v32 = vpop.f32.mrb[12].mxu1 }
 0x40d   :  { %v773_v33 = vrot.slane %v768_v32, 4  ;;  %v3420_v36 = vpop.f32.mrb[13].mxu1 }
 0x40e   :  { %v4877_v37 = vpop.eup %4876 }
 0x40f   :  { %v775_v41 = vadd.f32 %v773_v33, %v5306_v17  ;;  %691 = vrot.lane.b32.xlu1 %v4877_v37, %s4997_s24 }
 0x411   :  { %v2659_v42 = vmul.f32 -1.442695, %v775_v41  ;;  %4878 = vtanh.f32 %v775_v41 }
 0x413   :  { %4880 = vpow2.f32 %v2659_v42  ;;  %695 = vrot.lane.b32.xlu1 %v4877_v37, %s4996_s23 }
 0x41b   :  { %v4879_v44 = vpop.eup %4878 }
 0x41c   :  { %v789_v46 = vrot.slane %v4879_v44, 4 }
 0x41d   :  { %v4881_v47 = vpop.eup %4880 }
 0x41e   :  { %v779_v50 = vadd.f32 1.0, %v4881_v47  ;;  %791 = vrot.lane.b32.xlu0 %v789_v46, %s4998_s25 }
 0x420   :  { %4882 = vrcp.f32 %v779_v50 }
 0x42a   :  { %v4883_v52 = vpop.eup %4882 }
 0x42b   :  { %v784_v53 = vrot.slane %v4883_v52, 4 }
 0x42d   :  { %793 = vrot.lane.b32.xlu0 %v784_v53, %s4996_s23  ;;  %786 = vrot.lane.b32.xlu1 %v784_v53, %s4997_s24 }
 0x472   :  { %v694_v55 = vpop.permute.xlu0 %693 }
 0x473   :  { %v698_v62 = vmul.f32 %v4877_v37, %v694_v55 }
 0x481   :  { %v692_v60 = vpop.permute.xlu1 %691 }
 0x482   :  { %v697_v63 = vmul.f32 %v692_v60, %v5414_v56 }
 0x484   :  { %v5487_v3 = vadd.f32 %v698_v62, %v697_v63 }
 0x485   :  { %v696_v9 = vpop.permute.xlu1 %695 }
 0x486   :  { %4884 = vtanh.f32 %v5487_v3 }
 0x490   :  { %v4885_v6 = vpop.eup %4884  ;;  %v792_v13 = vpop.permute.xlu0 %791 }
 0x491   :  { %v5490_v12 = vmul.f32 %v4885_v6, %v696_v9  ;;  %v797_v59 = vrot.slane %v792_v13, 4 }
 0x493   :  { %3454 = vmatmul.mubr.f32.vlgmr.msra.gmra.mrb[6].mxu0 %v5490_v12  ;;  %v799_v56 = vmul.f32 %v4883_v52, %v797_v59 }
 0x494   :  { %4386 = vmatpush3.bf16.msra.mxu0 %v5077_v11  ;;  %3523 = vmatprep.mubr.msk.f32.mxu0 %vm4994_vm0, %v4995_v4 }
 0x495   :  { %4387 = vmatprep.subr.bf16.mxu0 %v4993_v0  ;;  %v801_v19 = vrot.slane %v799_v56, 4 }
 0x498   :  { %4389 = vmatpush3.bf16.msra.mxu0 %v5088_v14 }
 0x499   :  { %4390 = vmatprep.subr.bf16.mxu0 %v4993_v0 }
 0x49c   :  { %4392 = vmatpush3.bf16.msra.mxu0 %v5104_v18 }
 0x49d   :  { %4393 = vmatprep.subr.bf16.mxu0 %v4993_v0 }
 0x49f   :  { %v787_v16 = vpop.permute.xlu1 %786  ;;  %v794_v23 = vpop.permute.xlu0 %793 }
 0x4a0   :  { %v795_v20 = vmul.f32 %v787_v16, %v5418_v2  ;;  %4395 = vmatpush3.bf16.msra.mxu0 %v5120_v22 }
 0x4a1   :  { %4396 = vmatprep.subr.bf16.mxu0 %v4993_v0 }
 0x4a2   :  { %v5504_v21 = vadd.f32 %v801_v19, %v795_v20 }
 0x4a4   :  { %4886 = vtanh.f32 %v5504_v21  ;;  %4398 = vmatpush3.bf16.msra.mxu0 %v5132_v25 }
 0x4a5   :  { %4399 = vmatprep.subr.bf16.mxu0 %v4993_v0 }
 0x4a8   :  { %4401 = vmatpush3.bf16.msra.mxu0 %v5142_v28 }
 0x4a9   :  { %4402 = vmatprep.subr.bf16.mxu0 %v4993_v0 }
 0x4ac   :  { %4404 = vmatpush3.bf16.msra.mxu0 %v5152_v31 }
 0x4ad   :  { %4405 = vmatprep.subr.bf16.mxu0 %v4993_v0 }
 0x4ae   :  { %v4887_v2 = vpop.eup %4886 }
 0x4af   :  { %v805_v24 = vmul.f32 %v4887_v2, %v794_v23 }
 0x4b0   :  { %4407 = vmatpush3.bf16.msra.mxu0 %v5162_v34 }
 0x4b1   :  { %3489 = vmatmul.mubr.f32.vlgmr.msra.gmra.mrb[14].mxu1 %v805_v24  ;;  %4432 = vmatprep.subr.bf16.mxu0 %v4993_v0 }
 0x4b2   :  { %4410 = vmatpush3.bf16.msra.mxu1 %v5179_v38  ;;  %3558 = vmatprep.mubr.msk.f32.mxu1 %vm4994_vm0, %v4995_v4 }
 0x4b3   :  { %3524 = vmatmul.mubr.f32.vlgmr.msra.gmra.mrb[8].mxu0 %v805_v24  ;;  %4411 = vmatprep.subr.bf16.mxu1 %v4993_v0 }
 0x4b4   :  { %4434 = vmatpush3.bf16.msra.mxu0 %v5200_v45  ;;  %3593 = vmatprep.mubr.msk.f32.mxu0 %vm4994_vm0, %v4995_v4 }
 0x4b5   :  { %4435 = vmatprep.subr.bf16.mxu0 %v4993_v0 }
 0x4b6   :  { %4413 = vmatpush3.bf16.msra.mxu1 %v5185_v40 }
 0x4b7   :  { %4414 = vmatprep.subr.bf16.mxu1 %v4993_v0 }
 0x4b8   :  { %4437 = vmatpush3.bf16.msra.mxu0 %v5219_v51 }
 0x4b9   :  { %4438 = vmatprep.subr.bf16.mxu0 %v4993_v0 }
 0x4ba   :  { %4416 = vmatpush3.bf16.msra.mxu1 %v5209_v48 }
 0x4bb   :  { %4417 = vmatprep.subr.bf16.mxu1 %v4993_v0 }
 0x4bc   :  { %4440 = vmatpush3.bf16.msra.mxu0 %v5239_v57 }
 0x4bd   :  { %4441 = vmatprep.subr.bf16.mxu0 %v4993_v0 }
 0x4be   :  { %4419 = vmatpush3.bf16.msra.mxu1 %v5229_v54 }
 0x4bf   :  { %4420 = vmatprep.subr.bf16.mxu1 %v4993_v0 }
 0x4c0   :  { %4443 = vmatpush3.bf16.msra.mxu0 %v5315_v30 }
 0x4c1   :  { %4444 = vmatprep.subr.bf16.mxu0 %v4993_v0 }
 0x4c2   :  { %4422 = vmatpush3.bf16.msra.mxu1 %v5243_v58 }
 0x4c3   :  { %4423 = vmatprep.subr.bf16.mxu1 %v4993_v0 }
 0x4c4   :  { %4446 = vmatpush3.bf16.msra.mxu0 %v5325_v35 }
 0x4c5   :  { %4447 = vmatprep.subr.bf16.mxu0 %v4993_v0 }
 0x4c6   :  { %4425 = vmatpush3.bf16.msra.mxu1 %v5255_v61 }
 0x4c7   :  { %4426 = vmatprep.subr.bf16.mxu1 %v4993_v0 }
 0x4c8   :  { %4449 = vmatpush3.bf16.msra.mxu0 %v5335_v39 }
 0x4c9   :  { %4450 = vmatprep.subr.bf16.mxu0 %v4993_v0 }
 0x4ca   :  { %4428 = vmatpush3.bf16.msra.mxu1 %v5265_v1 }
 0x4cb   :  { %4429 = vmatprep.subr.bf16.mxu1 %v4993_v0 }
 0x4cc   :  { %4452 = vmatpush3.bf16.msra.mxu0 %v5344_v43 }
 0x4cd   :  { %4453 = vmatprep.subr.bf16.mxu0 %v4993_v0 }
 0x4ce   :  { %4431 = vmatpush3.bf16.msra.mxu1 %v5275_v5 }
 0x4cf   :  { %4456 = vmatprep.subr.bf16.mxu1 %v4993_v0 }
 0x4d0   :  { %4455 = vmatpush3.bf16.msra.mxu0 %v5356_v49 }
 0x4d1   :  { %4480 = vmatprep.subr.bf16.mxu0 %v4993_v0 }
 0x566   :  { %v872_v26 = vpop.f32.mrb[6].mxu0 }
 0x567   :  { %v3455_v27 = vpop.f32.mrb[7].mxu0 }
 0x584   :  { %v942_v29 = vpop.f32.mrb[14].mxu1 }
 0x585   :  { %v943_v32 = vadd.f32 %v942_v29, %v872_v26  ;;  %v3490_v33 = vpop.f32.mrb[15].mxu1 }
 0x586   :  { %v1031_v36 = vpop.f32.mrb[8].mxu0  ;;  %v2514_v33 = vrot.slane %v5490_v12, 6 }
 0x587   :  { %v946_v37 = vadd.f32 %v5404_v7, %v943_v32  ;;  %v1036_v41 = vrot.slane %v1031_v36, 2  ;;  %v3525_v42 = vpop.f32.mrb[9].mxu0 }
 0x588   :  { %v2532_v42 = vsel %vm2531_vm2, %v5421_v8, %v2514_v33 }
 0x589   :  { %v2660_v44 = vmul.f32 -1.442695, %v946_v37  ;;  %v1038_v46 = vadd.f32 %v1036_v41, %v5306_v17 }
 0x58b   :  { %4888 = vpow2.f32 %v2660_v44  ;;  %v2661_v47 = vmul.f32 -1.442695, %v1038_v46 }
 0x58c   :  { %4890 = vtanh.f32 %v1038_v46 }
 0x58d   :  { %4892 = vpow2.f32 %v2661_v47 }
 0x58e   :  { %4894 = vtanh.f32 %v946_v37 }
 0x595   :  { %v4889_v50 = vpop.eup %4888 }
 0x596   :  { %v4891_v52 = vpop.eup %4890  ;;  %v950_v53 = vadd.f32 1.0, %v4889_v50 }
 0x597   :  { %v4893_v55 = vpop.eup %4892  ;;  %v1052_v60 = vrot.slane %v4891_v52, 6 }
 0x598   :  { %4896 = vrcp.f32 %v950_v53  ;;  %v1042_v62 = vadd.f32 1.0, %v4893_v55  ;;  %v4895_v63 = vpop.eup %4894 }
 0x599   :  { %1054 = vrot.lane.b32.xlu1 %v1052_v60, %s4998_s25 }
 0x59a   :  { %4898 = vrcp.f32 %v1042_v62 }
 0x59d   :  { %956 = vrot.lane.b32.xlu1 %v4895_v63, %s4998_s25 }
 0x5a2   :  { %v4897_v6 = vpop.eup %4896 }
 0x5a3   :  { %958 = vrot.lane.b32.xlu1 %v4897_v6, %s4996_s23  ;;  %954 = vrot.lane.b32.xlu0 %v4897_v6, %s4997_s24 }
 0x5a4   :  { %v4899_v17 = vpop.eup %4898 }
 0x5a5   :  { %v1047_v9 = vrot.slane %v4899_v17, 6 }
 0x5a7   :  { %1049 = vrot.lane.b32.xlu0 %v1047_v9, %s4997_s24 }
 0x5ab   :  { %1056 = vrot.lane.b32.xlu0 %v1047_v9, %s4996_s23 }
 0x60b   :  { %v1055_v13 = vpop.permute.xlu1 %1054 }
 0x60c   :  { %v1060_v59 = vrot.slane %v1055_v13, 2 }
 0x60e   :  { %v1062_v19 = vmul.f32 %v4899_v17, %v1060_v59 }
 0x60f   :  { %v957_v56 = vpop.permute.xlu1 %956 }
 0x610   :  { %v961_v20 = vmul.f32 %v4897_v6, %v957_v56  ;;  %v1064_v26 = vrot.slane %v1062_v19, 6 }
 0x615   :  { %v955_v16 = vpop.permute.xlu0 %954  ;;  %v959_v36 = vpop.permute.xlu1 %958 }
 0x616   :  { %v960_v2 = vmul.f32 %v955_v16, %v5487_v3 }
 0x618   :  { %v5560_v23 = vadd.f32 %v961_v20, %v960_v2 }
 0x619   :  { %v1050_v24 = vpop.permute.xlu0 %1049 }
 0x61a   :  { %4900 = vtanh.f32 %v5560_v23  ;;  %v1058_v27 = vmul.f32 %v1050_v24, %v5504_v21 }
 0x61c   :  { %v5564_v29 = vadd.f32 %v1064_v26, %v1058_v27 }
 0x61d   :  { %v1057_v44 = vpop.permute.xlu0 %1056 }
 0x61e   :  { %4902 = vtanh.f32 %v5564_v29 }
 0x624   :  { %v4901_v32 = vpop.eup %4900 }
 0x625   :  { %v964_v37 = vmul.f32 %v4901_v32, %v959_v36 }
 0x627   :  { %3559 = vmatmul.mubr.f32.vlgmr.msra.gmra.mrb[16].mxu1 %v964_v37  ;;  %v2517_v3 = vrot.slane %v964_v37, 4 }
 0x628   :  { %v4903_v41 = vpop.eup %4902  ;;  %4458 = vmatpush3.bf16.msra.mxu1 %v5077_v11  ;;  %3628 = vmatprep.mubr.msk.f32.mxu1 %vm4994_vm0, %v4995_v4 }
 0x629   :  { %v1068_v21 = vmul.f32 %v4903_v41, %v1057_v44  ;;  %4459 = vmatprep.subr.bf16.mxu1 %v4993_v0  ;;  %v5575_v12 = vsel %vm2533_vm3, %v2532_v42, %v2517_v3 }
 0x62b   :  { %3594 = vmatmul.mubr.f32.vlgmr.msra.gmra.mrb[10].mxu0 %v1068_v21 }
 0x62c   :  { %4461 = vmatpush3.bf16.msra.mxu1 %v5088_v14  ;;  %4482 = vmatpush3.bf16.msra.mxu0 %v5179_v38 }
 0x62d   :  { %4462 = vmatprep.subr.bf16.mxu1 %v4993_v0  ;;  %4483 = vmatprep.subr.bf16.mxu0 %v4993_v0 }
 0x62e   :  { %3663 = vmatprep.mubr.msk.f32.mxu0 %vm4994_vm0, %v4995_v4 }
 0x630   :  { %4464 = vmatpush3.bf16.msra.mxu1 %v5104_v18  ;;  %4485 = vmatpush3.bf16.msra.mxu0 %v5185_v40 }
 0x631   :  { %4465 = vmatprep.subr.bf16.mxu1 %v4993_v0  ;;  %4486 = vmatprep.subr.bf16.mxu0 %v4993_v0 }
 0x634   :  { %4467 = vmatpush3.bf16.msra.mxu1 %v5120_v22  ;;  %4488 = vmatpush3.bf16.msra.mxu0 %v5209_v48 }
 0x635   :  { %4468 = vmatprep.subr.bf16.mxu1 %v4993_v0  ;;  %4489 = vmatprep.subr.bf16.mxu0 %v4993_v0 }
 0x638   :  { %4470 = vmatpush3.bf16.msra.mxu1 %v5132_v25  ;;  %4491 = vmatpush3.bf16.msra.mxu0 %v5229_v54 }
 0x639   :  { %4471 = vmatprep.subr.bf16.mxu1 %v4993_v0  ;;  %4492 = vmatprep.subr.bf16.mxu0 %v4993_v0 }
 0x63c   :  { %4473 = vmatpush3.bf16.msra.mxu1 %v5142_v28  ;;  %4494 = vmatpush3.bf16.msra.mxu0 %v5243_v58 }
 0x63d   :  { %4474 = vmatprep.subr.bf16.mxu1 %v4993_v0  ;;  %4495 = vmatprep.subr.bf16.mxu0 %v4993_v0 }
 0x640   :  { %4476 = vmatpush3.bf16.msra.mxu1 %v5152_v31  ;;  %4497 = vmatpush3.bf16.msra.mxu0 %v5255_v61 }
 0x641   :  { %4477 = vmatprep.subr.bf16.mxu1 %v4993_v0  ;;  %4498 = vmatprep.subr.bf16.mxu0 %v4993_v0 }
 0x644   :  { %4479 = vmatpush3.bf16.msra.mxu1 %v5162_v34  ;;  %4500 = vmatpush3.bf16.msra.mxu0 %v5265_v1 }
 0x645   :  { %4504 = vmatprep.subr.bf16.mxu1 %v4993_v0  ;;  %4501 = vmatprep.subr.bf16.mxu0 %v4993_v0 }
 0x647   :  { %3629 = vmatmul.mubr.f32.vlgmr.msra.gmra.mrb[18].mxu1 %v1068_v21 }
 0x648   :  { %4506 = vmatpush3.bf16.msra.mxu1 %v5200_v45  ;;  %4503 = vmatpush3.bf16.msra.mxu0 %v5275_v5 }
 0x649   :  { %4507 = vmatprep.subr.bf16.mxu1 %v4993_v0  ;;  %4528 = vmatprep.subr.bf16.mxu0 %v4993_v0 }
 0x64a   :  { %3698 = vmatprep.mubr.msk.f32.mxu1 %vm4994_vm0, %v4995_v4 }
 0x64c   :  { %4509 = vmatpush3.bf16.msra.mxu1 %v5219_v51 }
 0x64d   :  { %4510 = vmatprep.subr.bf16.mxu1 %v4993_v0 }
 0x650   :  { %4512 = vmatpush3.bf16.msra.mxu1 %v5239_v57 }
 0x651   :  { %4513 = vmatprep.subr.bf16.mxu1 %v4993_v0 }
 0x654   :  { %4515 = vmatpush3.bf16.msra.mxu1 %v5315_v30 }
 0x655   :  { %4516 = vmatprep.subr.bf16.mxu1 %v4993_v0 }
 0x658   :  { %4518 = vmatpush3.bf16.msra.mxu1 %v5325_v35 }
 0x659   :  { %4519 = vmatprep.subr.bf16.mxu1 %v4993_v0 }
 0x65c   :  { %4521 = vmatpush3.bf16.msra.mxu1 %v5335_v39 }
 0x65d   :  { %4522 = vmatprep.subr.bf16.mxu1 %v4993_v0 }
 0x660   :  { %4524 = vmatpush3.bf16.msra.mxu1 %v5344_v43 }
 0x661   :  { %4525 = vmatprep.subr.bf16.mxu1 %v4993_v0 }
 0x664   :  { %4527 = vmatpush3.bf16.msra.mxu1 %v5356_v49 }
 0x665   :  { %4552 = vmatprep.subr.bf16.mxu1 %v4993_v0 }
 0x6fa   :  { %v1135_v8 = vpop.f32.mrb[16].mxu1 }
 0x6fb   :  { %v3560_v46 = vpop.f32.mrb[17].mxu1 }
 0x6fe   :  { %v1205_v47 = vpop.f32.mrb[10].mxu0 }
 0x6ff   :  { %v1206_v50 = vadd.f32 %v1205_v47, %v1135_v8  ;;  %v3595_v52 = vpop.f32.mrb[11].mxu0 }
 0x701   :  { %v1209_v53 = vadd.f32 %v5404_v7, %v1206_v50 }
 0x703   :  { %v2662_v55 = vmul.f32 -1.442695, %v1209_v53  ;;  %4904 = vtanh.f32 %v1209_v53 }
 0x705   :  { %4906 = vpow2.f32 %v2662_v55 }
 0x70d   :  { %v4905_v60 = vpop.eup %4904 }
 0x70e   :  { %1219 = vrot.lane.b32.xlu0 %v4905_v60, %s4998_s25 }
 0x70f   :  { %v4907_v62 = vpop.eup %4906 }
 0x710   :  { %v1213_v63 = vadd.f32 1.0, %v4907_v62 }
 0x712   :  { %4908 = vrcp.f32 %v1213_v63 }
 0x71a   :  { %v1294_v6 = vpop.f32.mrb[18].mxu1 }
 0x71b   :  { %v1298_v17 = vadd.f32 %v1294_v6, %v5302_v10  ;;  %v3630_v9 = vpop.f32.mrb[19].mxu1 }
 0x71c   :  { %v4909_v13 = vpop.eup %4908 }
 0x71d   :  { %v2663_v59 = vmul.f32 -1.442695, %v1298_v17  ;;  %4910 = vtanh.f32 %v1298_v17  ;;  %1217 = vrot.lane.b32.xlu1 %v4909_v13, %s4997_s24 }
 0x71f   :  { %4912 = vpow2.f32 %v2663_v59 }
 0x721   :  { %1221 = vrot.lane.b32.xlu1 %v4909_v13, %s4996_s23 }
 0x727   :  { %v4911_v56 = vpop.eup %4910 }
 0x728   :  { %1308 = vrot.lane.b32.xlu1 %v4911_v56, %s4998_s25 }
 0x729   :  { %v4913_v16 = vpop.eup %4912 }
 0x72a   :  { %v1302_v19 = vadd.f32 1.0, %v4913_v16 }
 0x72c   :  { %4914 = vrcp.f32 %v1302_v19 }
 0x736   :  { %v4915_v20 = vpop.eup %4914 }
 0x737   :  { %1306 = vrot.lane.b32.xlu0 %v4915_v20, %s4997_s24 }
 0x73b   :  { %1310 = vrot.lane.b32.xlu0 %v4915_v20, %s4996_s23 }
 0x780   :  { %v1220_v2 = vpop.permute.xlu0 %1219 }
 0x781   :  { %v1224_v26 = vmul.f32 %v4909_v13, %v1220_v2 }
 0x78f   :  { %v1218_v24 = vpop.permute.xlu1 %1217 }
 0x790   :  { %v1223_v27 = vmul.f32 %v1218_v24, %v5560_v23 }
 0x792   :  { %v5636_v32 = vadd.f32 %v1224_v26, %v1223_v27 }
 0x793   :  { %v1222_v36 = vpop.permute.xlu1 %1221 }
 0x794   :  { %4916 = vtanh.f32 %v5636_v32 }
 0x79a   :  { %v1309_v41 = vpop.permute.xlu1 %1308 }
 0x79b   :  { %v1313_v44 = vmul.f32 %v4915_v20, %v1309_v41 }
 0x79e   :  { %v4917_v33 = vpop.eup %4916 }
 0x79f   :  { %v1227_v37 = vmul.f32 %v4917_v33, %v1222_v36 }
 0x7a1   :  { %v2520_v3 = vrot.slane %v1227_v37, 2  ;;  %3664 = vmatmul.mubr.f32.vlgmr.msra.gmra.mrb[12].mxu0 %v1227_v37 }
 0x7a2   :  { %4530 = vmatpush3.bf16.msra.mxu0 %v5077_v11  ;;  %3733 = vmatprep.mubr.msk.f32.mxu0 %vm4994_vm0, %v4995_v4 }
 0x7a3   :  { %4531 = vmatprep.subr.bf16.mxu0 %v4993_v0  ;;  %v5645_v23 = vsel %vm2535_vm4, %v5575_v12, %v2520_v3 }
 0x7a6   :  { %4533 = vmatpush3.bf16.msra.mxu0 %v5088_v14 }
 0x7a7   :  { %4534 = vmatprep.subr.bf16.mxu0 %v4993_v0 }
 0x7a9   :  { %v1307_v42 = vpop.permute.xlu0 %1306 }
 0x7aa   :  { %v1312_v21 = vmul.f32 %v1307_v42, %v5564_v29  ;;  %4536 = vmatpush3.bf16.msra.mxu0 %v5104_v18 }
 0x7ab   :  { %4537 = vmatprep.subr.bf16.mxu0 %v4993_v0 }
 0x7ac   :  { %v5652_v8 = vadd.f32 %v1313_v44, %v1312_v21 }
 0x7ad   :  { %v1311_v12 = vpop.permute.xlu0 %1310 }
 0x7ae   :  { %4918 = vtanh.f32 %v5652_v8  ;;  %4539 = vmatpush3.bf16.msra.mxu0 %v5120_v22 }
 0x7af   :  { %4540 = vmatprep.subr.bf16.mxu0 %v4993_v0 }
 0x7b2   :  { %4542 = vmatpush3.bf16.msra.mxu0 %v5132_v25 }
 0x7b3   :  { %4543 = vmatprep.subr.bf16.mxu0 %v4993_v0 }
 0x7b6   :  { %4545 = vmatpush3.bf16.msra.mxu0 %v5142_v28 }
 0x7b7   :  { %4546 = vmatprep.subr.bf16.mxu0 %v4993_v0 }
 0x7b8   :  { %v4919_v29 = vpop.eup %4918 }
 0x7b9   :  { %v1316_v46 = vmul.f32 %v4919_v29, %v1311_v12 }
 0x7ba   :  { %4548 = vmatpush3.bf16.msra.mxu0 %v5152_v31 }
 0x7bb   :  { %3699 = vmatmul.mubr.f32.vlgmr.msra.gmra.mrb[20].mxu1 %v1316_v46  ;;  %4549 = vmatprep.subr.bf16.mxu0 %v4993_v0 }
 0x7bc   :  { %4554 = vmatpush3.bf16.msra.mxu1 %v5179_v38  ;;  %3768 = vmatprep.mubr.msk.f32.mxu1 %vm4994_vm0, %v4995_v4 }
 0x7bd   :  { %4555 = vmatprep.subr.bf16.mxu1 %v4993_v0 }
 0x7be   :  { %4551 = vmatpush3.bf16.msra.mxu0 %v5162_v34 }
 0x7bf   :  { %4576 = vmatprep.subr.bf16.mxu0 %v4993_v0 }
 0x7c0   :  { %4557 = vmatpush3.bf16.msra.mxu1 %v5185_v40 }
 0x7c1   :  { %3734 = vmatmul.mubr.f32.vlgmr.msra.gmra.mrb[14].mxu0 %v1316_v46  ;;  %4558 = vmatprep.subr.bf16.mxu1 %v4993_v0 }
 0x7c2   :  { %4578 = vmatpush3.bf16.msra.mxu0 %v5200_v45  ;;  %3803 = vmatprep.mubr.msk.f32.mxu0 %vm4994_vm0, %v4995_v4 }
 0x7c3   :  { %4579 = vmatprep.subr.bf16.mxu0 %v4993_v0 }
 0x7c4   :  { %4560 = vmatpush3.bf16.msra.mxu1 %v5209_v48 }
 0x7c5   :  { %4561 = vmatprep.subr.bf16.mxu1 %v4993_v0 }
 0x7c6   :  { %4581 = vmatpush3.bf16.msra.mxu0 %v5219_v51 }
 0x7c7   :  { %4582 = vmatprep.subr.bf16.mxu0 %v4993_v0 }
 0x7c8   :  { %4563 = vmatpush3.bf16.msra.mxu1 %v5229_v54 }
 0x7c9   :  { %4564 = vmatprep.subr.bf16.mxu1 %v4993_v0 }
 0x7ca   :  { %4584 = vmatpush3.bf16.msra.mxu0 %v5239_v57 }
 0x7cb   :  { %4585 = vmatprep.subr.bf16.mxu0 %v4993_v0 }
 0x7cc   :  { %4566 = vmatpush3.bf16.msra.mxu1 %v5243_v58 }
 0x7cd   :  { %4567 = vmatprep.subr.bf16.mxu1 %v4993_v0 }
 0x7ce   :  { %4587 = vmatpush3.bf16.msra.mxu0 %v5315_v30 }
 0x7cf   :  { %4588 = vmatprep.subr.bf16.mxu0 %v4993_v0 }
 0x7d0   :  { %4569 = vmatpush3.bf16.msra.mxu1 %v5255_v61 }
 0x7d1   :  { %4570 = vmatprep.subr.bf16.mxu1 %v4993_v0 }
 0x7d2   :  { %4590 = vmatpush3.bf16.msra.mxu0 %v5325_v35 }
 0x7d3   :  { %4591 = vmatprep.subr.bf16.mxu0 %v4993_v0 }
 0x7d4   :  { %4572 = vmatpush3.bf16.msra.mxu1 %v5265_v1 }
 0x7d5   :  { %4573 = vmatprep.subr.bf16.mxu1 %v4993_v0 }
 0x7d6   :  { %4593 = vmatpush3.bf16.msra.mxu0 %v5335_v39 }
 0x7d7   :  { %4594 = vmatprep.subr.bf16.mxu0 %v4993_v0 }
 0x7d8   :  { %4575 = vmatpush3.bf16.msra.mxu1 %v5275_v5 }
 0x7d9   :  { %4600 = vmatprep.subr.bf16.mxu1 %v4993_v0 }
 0x7da   :  { %4596 = vmatpush3.bf16.msra.mxu0 %v5344_v43 }
 0x7db   :  { %4597 = vmatprep.subr.bf16.mxu0 %v4993_v0 }
 0x7de   :  { %4599 = vmatpush3.bf16.msra.mxu0 %v5356_v49 }
 0x7df   :  { %4624 = vmatprep.subr.bf16.mxu0 %v4993_v0 }
 0x874   :  { %v1383_v47 = vpop.f32.mrb[12].mxu0 }
 0x875   :  { %v3665_v50 = vpop.f32.mrb[13].mxu0 }
 0x88e   :  { %v1453_v52 = vpop.f32.mrb[20].mxu1 }
 0x88f   :  { %v1454_v53 = vadd.f32 %v1453_v52, %v1383_v47  ;;  %v3700_v55 = vpop.f32.mrb[21].mxu1 }
 0x891   :  { %v1457_v60 = vadd.f32 %v5404_v7, %v1454_v53 }
 0x893   :  { %v2664_v62 = vmul.f32 -1.442695, %v1457_v60 }
 0x894   :  { %v1542_v63 = vpop.f32.mrb[14].mxu0 }
 0x895   :  { %4920 = vpow2.f32 %v2664_v62  ;;  %v1547_v6 = vrot.slane %v1542_v63, 6  ;;  %v3735_v17 = vpop.f32.mrb[15].mxu0 }
 0x897   :  { %v1549_v9 = vadd.f32 %v1547_v6, %v5302_v10 }
 0x899   :  { %v2665_v13 = vmul.f32 -1.442695, %v1549_v9  ;;  %4922 = vtanh.f32 %v1549_v9  ;;  %v5777_v9 = vld [vmem:[%s6028_s6] ss:$0 sm:$0xff] }
 0x89b   :  { %4924 = vpow2.f32 %v2665_v13 }
 0x89c   :  { %4926 = vtanh.f32 %v1457_v60 }
 0x89f   :  { %v4921_v59 = vpop.eup %4920 }
 0x8a0   :  { %v1461_v56 = vadd.f32 1.0, %v4921_v59 }
 0x8a2   :  { %4928 = vrcp.f32 %v1461_v56 }
 0x8a3   :  { %v4923_v16 = vpop.eup %4922 }
 0x8a4   :  { %v1563_v19 = vrot.slane %v4923_v16, 2 }
 0x8a5   :  { %v4925_v20 = vpop.eup %4924 }
 0x8a6   :  { %v1553_v2 = vadd.f32 1.0, %v4925_v20  ;;  %1565 = vrot.lane.b32.xlu1 %v1563_v19, %s4998_s25  ;;  %v4927_v7 = vpop.eup %4926 }
 0x8a8   :  { %4930 = vrcp.f32 %v1553_v2 }
 0x8aa   :  { %1467 = vrot.lane.b32.xlu1 %v4927_v7, %s4998_s25 }
 0x8ac   :  { %v4929_v24 = vpop.eup %4928 }
 0x8ad   :  { %1465 = vrot.lane.b32.xlu0 %v4929_v24, %s4997_s24 }
 0x8ae   :  { %1469 = vrot.lane.b32.xlu1 %v4929_v24, %s4996_s23 }
 0x8b2   :  { %v4931_v26 = vpop.eup %4930 }
 0x8b3   :  { %v1558_v27 = vrot.slane %v4931_v26, 2 }
 0x8b5   :  { %1560 = vrot.lane.b32.xlu0 %v1558_v27, %s4997_s24 }
 0x8b9   :  { %1567 = vrot.lane.b32.xlu0 %v1558_v27, %s4996_s23 }
 0x918   :  { %v1566_v33 = vpop.permute.xlu1 %1565 }
 0x919   :  { %v1571_v3 = vrot.slane %v1566_v33, 6 }
 0x91b   :  { %v1573_v21 = vmul.f32 %v4931_v26, %v1571_v3 }
 0x91c   :  { %v1468_v36 = vpop.permute.xlu1 %1467 }
 0x91d   :  { %v1472_v41 = vmul.f32 %v4929_v24, %v1468_v36  ;;  %v1575_v12 = vrot.slane %v1573_v21, 2 }
 0x91f   :  { %v1466_v37 = vpop.permute.xlu0 %1465 }
 0x920   :  { %v1471_v42 = vmul.f32 %v1466_v37, %v5636_v32  ;;  %v1470_v52 = vpop.permute.xlu1 %1469 }
 0x922   :  { %v5710_v44 = vadd.f32 %v1472_v41, %v1471_v42 }
 0x924   :  { %4932 = vtanh.f32 %v5710_v44 }
 0x927   :  { %v1561_v29 = vpop.permute.xlu0 %1560 }
 0x928   :  { %v1569_v46 = vmul.f32 %v1561_v29, %v5652_v8 }
 0x92a   :  { %v5714_v47 = vadd.f32 %v1575_v12, %v1569_v46 }
 0x92b   :  { %v1568_v55 = vpop.permute.xlu0 %1567 }
 0x92c   :  { %4934 = vtanh.f32 %v5714_v47 }
 0x92e   :  { %v4933_v50 = vpop.eup %4932 }
 0x92f   :  { %v5717_v53 = vmul.f32 %v4933_v50, %v1470_v52 }
 0x931   :  { %3769 = vmatmul.mubr.f32.vlgmr.msra.gmra.mrb[22].mxu1 %v5717_v53 }
 0x932   :  { %4602 = vmatpush3.bf16.msra.mxu1 %v5077_v11  ;;  %3838 = vmatprep.mubr.msk.f32.mxu1 %vm4994_vm0, %v4995_v4 }
 0x933   :  { %4603 = vmatprep.subr.bf16.mxu1 %v4993_v0 }
 0x936   :  { %v4935_v32 = vpop.eup %4934  ;;  %4605 = vmatpush3.bf16.msra.mxu1 %v5088_v14 }
 0x937   :  { %v1579_v8 = vmul.f32 %v4935_v32, %v1568_v55  ;;  %4606 = vmatprep.subr.bf16.mxu1 %v4993_v0 }
 0x939   :  { %3804 = vmatmul.mubr.f32.vlgmr.msra.gmra.mrb[16].mxu0 %v1579_v8 }
 0x93a   :  { %4608 = vmatpush3.bf16.msra.mxu1 %v5104_v18  ;;  %4626 = vmatpush3.bf16.msra.mxu0 %v5179_v38 }
 0x93b   :  { %4609 = vmatprep.subr.bf16.mxu1 %v4993_v0  ;;  %4627 = vmatprep.subr.bf16.mxu0 %v4993_v0 }
 0x93c   :  { %3873 = vmatprep.mubr.msk.f32.mxu0 %vm4994_vm0, %v4995_v4 }
 0x93e   :  { %4611 = vmatpush3.bf16.msra.mxu1 %v5120_v22  ;;  %4629 = vmatpush3.bf16.msra.mxu0 %v5185_v40 }
 0x93f   :  { %4612 = vmatprep.subr.bf16.mxu1 %v4993_v0  ;;  %4630 = vmatprep.subr.bf16.mxu0 %v4993_v0 }
 0x942   :  { %4614 = vmatpush3.bf16.msra.mxu1 %v5132_v25  ;;  %4632 = vmatpush3.bf16.msra.mxu0 %v5209_v48 }
 0x943   :  { %4615 = vmatprep.subr.bf16.mxu1 %v4993_v0  ;;  %4633 = vmatprep.subr.bf16.mxu0 %v4993_v0 }
 0x946   :  { %4617 = vmatpush3.bf16.msra.mxu1 %v5142_v28  ;;  %4635 = vmatpush3.bf16.msra.mxu0 %v5229_v54 }
 0x947   :  { %4618 = vmatprep.subr.bf16.mxu1 %v4993_v0  ;;  %4636 = vmatprep.subr.bf16.mxu0 %v4993_v0 }
 0x94a   :  { %4620 = vmatpush3.bf16.msra.mxu1 %v5152_v31  ;;  %4638 = vmatpush3.bf16.msra.mxu0 %v5243_v58 }
 0x94b   :  { %4621 = vmatprep.subr.bf16.mxu1 %v4993_v0  ;;  %4639 = vmatprep.subr.bf16.mxu0 %v4993_v0 }
 0x94e   :  { %4623 = vmatpush3.bf16.msra.mxu1 %v5162_v34  ;;  %4641 = vmatpush3.bf16.msra.mxu0 %v5255_v61 }
 0x94f   :  { %4642 = vmatprep.subr.bf16.mxu0 %v4993_v0  ;;  %4648 = vmatprep.subr.bf16.mxu1 %v4993_v0 }
 0x951   :  { %3839 = vmatmul.mubr.f32.vlgmr.msra.gmra.mrb[24].mxu1 %v1579_v8 }
 0x952   :  { %4644 = vmatpush3.bf16.msra.mxu0 %v5265_v1  ;;  %4650 = vmatpush3.bf16.msra.mxu1 %v5200_v45 }
 0x953   :  { %4645 = vmatprep.subr.bf16.mxu0 %v4993_v0  ;;  %4651 = vmatprep.subr.bf16.mxu1 %v4993_v0 }
 0x954   :  { %3908 = vmatprep.mubr.msk.f32.mxu1 %vm4994_vm0, %v4995_v4 }
 0x956   :  { %4647 = vmatpush3.bf16.msra.mxu0 %v5275_v5  ;;  %4653 = vmatpush3.bf16.msra.mxu1 %v5219_v51 }
 0x957   :  { %4672 = vmatprep.subr.bf16.mxu0 %v4993_v0  ;;  %4654 = vmatprep.subr.bf16.mxu1 %v4993_v0 }
 0x95a   :  { %4656 = vmatpush3.bf16.msra.mxu1 %v5239_v57 }
 0x95b   :  { %4657 = vmatprep.subr.bf16.mxu1 %v4993_v0 }
 0x95e   :  { %4659 = vmatpush3.bf16.msra.mxu1 %v5315_v30 }
 0x95f   :  { %4660 = vmatprep.subr.bf16.mxu1 %v4993_v0 }
 0x962   :  { %4662 = vmatpush3.bf16.msra.mxu1 %v5325_v35 }
 0x963   :  { %4663 = vmatprep.subr.bf16.mxu1 %v4993_v0 }
 0x966   :  { %4665 = vmatpush3.bf16.msra.mxu1 %v5335_v39 }
 0x967   :  { %4666 = vmatprep.subr.bf16.mxu1 %v4993_v0 }
 0x96a   :  { %4668 = vmatpush3.bf16.msra.mxu1 %v5344_v43 }
 0x96b   :  { %4669 = vmatprep.subr.bf16.mxu1 %v4993_v0 }
 0x96e   :  { %4671 = vmatpush3.bf16.msra.mxu1 %v5356_v49 }
 0x96f   :  { %4696 = vmatprep.subr.bf16.mxu1 %v4993_v0 }
 0xa04   :  { %v1646_v60 = vpop.f32.mrb[22].mxu1 }
 0xa05   :  { %v3770_v62 = vpop.f32.mrb[23].mxu1 }
 0xa0c   :  { %v1716_v63 = vpop.f32.mrb[16].mxu0 }
 0xa0d   :  { %v1717_v6 = vadd.f32 %v1716_v63, %v1646_v60  ;;  %v3805_v17 = vpop.f32.mrb[17].mxu0 }
 0xa0f   :  { %v1720_v13 = vadd.f32 %v5777_v9, %v1717_v6 }
 0xa11   :  { %v2666_v59 = vmul.f32 -1.442695, %v1720_v13  ;;  %4936 = vtanh.f32 %v1720_v13 }
 0xa13   :  { %4938 = vpow2.f32 %v2666_v59 }
 0xa1b   :  { %v4937_v56 = vpop.eup %4936 }
 0xa1c   :  { %1730 = vrot.lane.b32.xlu0 %v4937_v56, %s4998_s25 }
 0xa1d   :  { %v4939_v16 = vpop.eup %4938 }
 0xa1e   :  { %v1724_v19 = vadd.f32 1.0, %v4939_v16 }
 0xa20   :  { %4940 = vrcp.f32 %v1724_v19 }
 0xa24   :  { %v1805_v20 = vpop.f32.mrb[24].mxu1 }
 0xa25   :  { %v1810_v2 = vrot.slane %v1805_v20, 4  ;;  %v3840_v7 = vpop.f32.mrb[25].mxu1 }
 0xa27   :  { %v1812_v24 = vadd.f32 %v1810_v2, %v5302_v10 }
 0xa29   :  { %v2667_v26 = vmul.f32 -1.442695, %v1812_v24  ;;  %4942 = vtanh.f32 %v1812_v24 }
 0xa2a   :  { %v4941_v27 = vpop.eup %4940 }
 0xa2b   :  { %4944 = vpow2.f32 %v2667_v26  ;;  %1728 = vrot.lane.b32.xlu1 %v4941_v27, %s4997_s24 }
 0xa2f   :  { %1732 = vrot.lane.b32.xlu1 %v4941_v27, %s4996_s23 }
 0xa33   :  { %v4943_v33 = vpop.eup %4942 }
 0xa34   :  { %v1826_v36 = vrot.slane %v4943_v33, 4 }
 0xa35   :  { %v4945_v37 = vpop.eup %4944 }
 0xa36   :  { %v1816_v3 = vadd.f32 1.0, %v4945_v37  ;;  %1828 = vrot.lane.b32.xlu0 %v1826_v36, %s4998_s25 }
 0xa38   :  { %4946 = vrcp.f32 %v1816_v3 }
 0xa42   :  { %v4947_v41 = vpop.eup %4946 }
 0xa43   :  { %v1821_v42 = vrot.slane %v4947_v41, 4 }
 0xa45   :  { %1830 = vrot.lane.b32.xlu0 %v1821_v42, %s4996_s23  ;;  %1823 = vrot.lane.b32.xlu1 %v1821_v42, %s4997_s24 }
 0xa8e   :  { %v1731_v21 = vpop.permute.xlu0 %1730 }
 0xa8f   :  { %v1735_v12 = vmul.f32 %v4941_v27, %v1731_v21 }
 0xa9d   :  { %v1729_v29 = vpop.permute.xlu1 %1728 }
 0xa9e   :  { %v1734_v46 = vmul.f32 %v1729_v29, %v5710_v44 }
 0xaa0   :  { %v5788_v50 = vadd.f32 %v1735_v12, %v1734_v46 }
 0xaa1   :  { %v1733_v32 = vpop.permute.xlu1 %1732 }
 0xaa2   :  { %4948 = vtanh.f32 %v5788_v50 }
 0xaa8   :  { %v1829_v8 = vpop.permute.xlu0 %1828 }
 0xaa9   :  { %v1834_v60 = vrot.slane %v1829_v8, 4 }
 0xaab   :  { %v1836_v44 = vmul.f32 %v4947_v41, %v1834_v60 }
 0xaac   :  { %v4949_v52 = vpop.eup %4948 }
 0xaad   :  { %v5791_v55 = vmul.f32 %v4949_v52, %v1733_v32  ;;  %v1838_v63 = vrot.slane %v1836_v44, 4 }
 0xaaf   :  { %3874 = vmatmul.mubr.f32.vlgmr.msra.gmra.mrb[18].mxu0 %v5791_v55 }
 0xab0   :  { %4674 = vmatpush3.bf16.msra.mxu0 %v5077_v11  ;;  %3943 = vmatprep.mubr.msk.f32.mxu0 %vm4994_vm0, %v4995_v4 }
 0xab1   :  { %4675 = vmatprep.subr.bf16.mxu0 %v4993_v0 }
 0xab4   :  { %4677 = vmatpush3.bf16.msra.mxu0 %v5088_v14 }
 0xab5   :  { %4678 = vmatprep.subr.bf16.mxu0 %v4993_v0 }
 0xab7   :  { %v1824_v62 = vpop.permute.xlu1 %1823  ;;  %v1831_v13 = vpop.permute.xlu0 %1830 }
 0xab8   :  { %v1832_v6 = vmul.f32 %v1824_v62, %v5714_v47  ;;  %4680 = vmatpush3.bf16.msra.mxu0 %v5104_v18 }
 0xab9   :  { %4681 = vmatprep.subr.bf16.mxu0 %v4993_v0 }
 0xaba   :  { %v5803_v17 = vadd.f32 %v1838_v63, %v1832_v6 }
 0xabc   :  { %4950 = vtanh.f32 %v5803_v17  ;;  %4683 = vmatpush3.bf16.msra.mxu0 %v5120_v22 }
 0xabd   :  { %4684 = vmatprep.subr.bf16.mxu0 %v4993_v0 }
 0xac0   :  { %4686 = vmatpush3.bf16.msra.mxu0 %v5132_v25 }
 0xac1   :  { %4687 = vmatprep.subr.bf16.mxu0 %v4993_v0 }
 0xac4   :  { %4689 = vmatpush3.bf16.msra.mxu0 %v5142_v28 }
 0xac5   :  { %4690 = vmatprep.subr.bf16.mxu0 %v4993_v0 }
 0xac6   :  { %v4951_v47 = vpop.eup %4950 }
 0xac7   :  { %v1842_v59 = vmul.f32 %v4951_v47, %v1831_v13 }
 0xac8   :  { %4692 = vmatpush3.bf16.msra.mxu0 %v5152_v31 }
 0xac9   :  { %3909 = vmatmul.mubr.f32.vlgmr.msra.gmra.mrb[26].mxu1 %v1842_v59  ;;  %4693 = vmatprep.subr.bf16.mxu0 %v4993_v0 }
 0xaca   :  { %4698 = vmatpush3.bf16.msra.mxu1 %v5179_v38  ;;  %3978 = vmatprep.mubr.msk.f32.mxu1 %vm4994_vm0, %v4995_v4 }
 0xacb   :  { %4699 = vmatprep.subr.bf16.mxu1 %v4993_v0 }
 0xacc   :  { %4695 = vmatpush3.bf16.msra.mxu0 %v5162_v34 }
 0xacd   :  { %4720 = vmatprep.subr.bf16.mxu0 %v4993_v0 }
 0xace   :  { %4701 = vmatpush3.bf16.msra.mxu1 %v5185_v40 }
 0xacf   :  { %3944 = vmatmul.mubr.f32.vlgmr.msra.gmra.mrb[20].mxu0 %v1842_v59  ;;  %4702 = vmatprep.subr.bf16.mxu1 %v4993_v0 }
 0xad0   :  { %4722 = vmatpush3.bf16.msra.mxu0 %v5200_v45  ;;  %4013 = vmatprep.mubr.msk.f32.mxu0 %vm4994_vm0, %v4995_v4 }
 0xad1   :  { %4723 = vmatprep.subr.bf16.mxu0 %v4993_v0 }
 0xad2   :  { %4704 = vmatpush3.bf16.msra.mxu1 %v5209_v48 }
 0xad3   :  { %4705 = vmatprep.subr.bf16.mxu1 %v4993_v0 }
 0xad4   :  { %4725 = vmatpush3.bf16.msra.mxu0 %v5219_v51 }
 0xad5   :  { %4726 = vmatprep.subr.bf16.mxu0 %v4993_v0 }
 0xad6   :  { %4707 = vmatpush3.bf16.msra.mxu1 %v5229_v54 }
 0xad7   :  { %4708 = vmatprep.subr.bf16.mxu1 %v4993_v0 }
 0xad8   :  { %4728 = vmatpush3.bf16.msra.mxu0 %v5239_v57 }
 0xad9   :  { %4729 = vmatprep.subr.bf16.mxu0 %v4993_v0 }
 0xada   :  { %4710 = vmatpush3.bf16.msra.mxu1 %v5243_v58 }
 0xadb   :  { %4711 = vmatprep.subr.bf16.mxu1 %v4993_v0 }
 0xadc   :  { %4731 = vmatpush3.bf16.msra.mxu0 %v5315_v30 }
 0xadd   :  { %4732 = vmatprep.subr.bf16.mxu0 %v4993_v0 }
 0xade   :  { %4713 = vmatpush3.bf16.msra.mxu1 %v5255_v61 }
 0xadf   :  { %4714 = vmatprep.subr.bf16.mxu1 %v4993_v0 }
 0xae0   :  { %4734 = vmatpush3.bf16.msra.mxu0 %v5325_v35 }
 0xae1   :  { %4735 = vmatprep.subr.bf16.mxu0 %v4993_v0 }
 0xae2   :  { %4716 = vmatpush3.bf16.msra.mxu1 %v5265_v1 }
 0xae3   :  { %4717 = vmatprep.subr.bf16.mxu1 %v4993_v0 }
 0xae4   :  { %4737 = vmatpush3.bf16.msra.mxu0 %v5335_v39 }
 0xae5   :  { %4738 = vmatprep.subr.bf16.mxu0 %v4993_v0 }
 0xae6   :  { %4719 = vmatpush3.bf16.msra.mxu1 %v5275_v5 }
 0xae7   :  { %4768 = vmatprep.subr.bf16.mxu1 %v4993_v0 }
 0xae8   :  { %4740 = vmatpush3.bf16.msra.mxu0 %v5344_v43 }
 0xae9   :  { %4741 = vmatprep.subr.bf16.mxu0 %v4993_v0 }
 0xaec   :  { %4743 = vmatpush3.bf16.msra.mxu0 %v5356_v49 }
 0xaed   :  { %4744 = vmatprep.subr.bf16.mxu0 %v4993_v0 }
 0xb82   :  { %v1909_v56 = vpop.f32.mrb[18].mxu0 }
 0xb83   :  { %v3875_v16 = vpop.f32.mrb[19].mxu0 }
 0xb9c   :  { %v1979_v19 = vpop.f32.mrb[26].mxu1 }
 0xb9d   :  { %v1980_v20 = vadd.f32 %v1979_v19, %v1909_v56  ;;  %v3910_v2 = vpop.f32.mrb[27].mxu1 }
 0xb9e   :  { %v2523_v2 = vrot.slane %v5791_v55, 6 }
 0xb9f   :  { %v1983_v7 = vadd.f32 %v5777_v9, %v1980_v20 }
 0xba1   :  { %v2668_v24 = vmul.f32 -1.442695, %v1983_v7 }
 0xba2   :  { %v2068_v26 = vpop.f32.mrb[20].mxu0 }
 0xba3   :  { %4952 = vpow2.f32 %v2668_v24  ;;  %v2073_v27 = vrot.slane %v2068_v26, 2  ;;  %v3945_v33 = vpop.f32.mrb[21].mxu0 }
 0xba5   :  { %v2075_v36 = vadd.f32 %v2073_v27, %v5302_v10 }
 0xba7   :  { %v2669_v37 = vmul.f32 -1.442695, %v2075_v36  ;;  %4954 = vtanh.f32 %v2075_v36 }
 0xba9   :  { %4956 = vpow2.f32 %v2669_v37  ;;  %v2552_v37 = vld [vmem:[%s6029_s7 + $0x60] sm:$0xff] }
 0xbaa   :  { %4958 = vtanh.f32 %v1983_v7 }
 0xbad   :  { %v4953_v3 = vpop.eup %4952 }
 0xbae   :  { %v1987_v41 = vadd.f32 1.0, %v4953_v3  ;;  %v2553_v3 = vld [vmem:[%s6029_s7 + $0x68] sm:$0xff] }
 0xbb0   :  { %4960 = vrcp.f32 %v1987_v41  ;;  %v4835_v41 = vpack.c.bf16 %v2553_v3, %v2552_v37 }
 0xbb1   :  { %v4955_v42 = vpop.eup %4954 }
 0xbb2   :  { %v2089_v21 = vrot.slane %v4955_v42, 6  ;;  %v2554_v42 = vld [vmem:[%s6029_s7 + $0x70] sm:$0xff] }
 0xbb3   :  { %v4957_v29 = vpop.eup %4956 }
 0xbb4   :  { %v2079_v12 = vadd.f32 1.0, %v4957_v29  ;;  %2091 = vrot.lane.b32.xlu1 %v2089_v21, %s4998_s25  ;;  %v4959_v46 = vpop.eup %4958  ;;  %v2555_v21 = vld [vmem:[%s6029_s7 + $0x78] sm:$0xff] }
 0xbb5   :  { %v4838_v29 = vpack.c.bf16 %v2555_v21, %v2554_v42 }
 0xbb6   :  { %4962 = vrcp.f32 %v2079_v12 }
 0xbb8   :  { %1993 = vrot.lane.b32.xlu1 %v4959_v46, %s4998_s25 }
 0xbba   :  { %v4961_v52 = vpop.eup %4960 }
 0xbbb   :  { %1991 = vrot.lane.b32.xlu0 %v4961_v52, %s4997_s24 }
 0xbbc   :  { %1995 = vrot.lane.b32.xlu1 %v4961_v52, %s4996_s23 }
 0xbc0   :  { %v4963_v10 = vpop.eup %4962 }
 0xbc1   :  { %v2084_v32 = vrot.slane %v4963_v10, 6 }
 0xbc3   :  { %2086 = vrot.lane.b32.xlu0 %v2084_v32, %s4997_s24 }
 0xbc7   :  { %2093 = vrot.lane.b32.xlu0 %v2084_v32, %s4996_s23 }
 0xc26   :  { %v2092_v8 = vpop.permute.xlu1 %2091 }
 0xc27   :  { %v2097_v62 = vrot.slane %v2092_v8, 2 }
 0xc29   :  { %v2099_v13 = vmul.f32 %v4963_v10, %v2097_v62 }
 0xc2a   :  { %v1994_v60 = vpop.permute.xlu1 %1993 }
 0xc2b   :  { %v1998_v63 = vmul.f32 %v4961_v52, %v1994_v60  ;;  %v2101_v56 = vrot.slane %v2099_v13, 6 }
 0xc2d   :  { %v1992_v44 = vpop.permute.xlu0 %1991 }
 0xc2e   :  { %v1997_v6 = vmul.f32 %v1992_v44, %v5788_v50  ;;  %v1996_v7 = vpop.permute.xlu1 %1995  ;;  %v2537_v50 = vsel %vm2531_vm2, %v5717_v53, %v2523_v2  ;;  %v2551_v53 = vld [vmem:[%s6029_s7 + $0x58] sm:$0xff] }
 0xc30   :  { %v5861_v47 = vadd.f32 %v1998_v63, %v1997_v6 }
 0xc32   :  { %4964 = vtanh.f32 %v5861_v47 }
 0xc35   :  { %v2087_v59 = vpop.permute.xlu0 %2086 }
 0xc36   :  { %v2095_v16 = vmul.f32 %v2087_v59, %v5803_v17 }
 0xc38   :  { %v5865_v19 = vadd.f32 %v2101_v56, %v2095_v16 }
 0xc39   :  { %v2094_v33 = vpop.permute.xlu0 %2093 }
 0xc3a   :  { %4966 = vtanh.f32 %v5865_v19 }
 0xc3c   :  { %v4965_v20 = vpop.eup %4964 }
 0xc3d   :  { %v2001_v24 = vmul.f32 %v4965_v20, %v1996_v7 }
 0xc3f   :  { %v2526_v26 = vrot.slane %v2001_v24, 4  ;;  %3979 = vmatmul.mubr.f32.vlgmr.msra.gmra.mrb[28].mxu1 %v2001_v24  ;;  %v5980_v24 = vld [vmem:[%s6030_s8] ss:$0 sm:$0xff] }
 0xc40   :  { %4770 = vmatpush3.bf16.msra.mxu1 %v5179_v38  ;;  %4083 = vmatprep.mubr.msk.f32.mxu1 %vm4994_vm0, %v4995_v4 }
 0xc41   :  { %4771 = vmatprep.subr.bf16.mxu1 %v4993_v0  ;;  %v5876_v17 = vsel %vm2533_vm3, %v2537_v50, %v2526_v26 }
 0xc44   :  { %v4967_v27 = vpop.eup %4966  ;;  %4773 = vmatpush3.bf16.msra.mxu1 %v5185_v40  ;;  %v2546_v40 = vld [vmem:[%s6029_s7 + $0x30] sm:$0xff] }
 0xc45   :  { %v2105_v55 = vmul.f32 %v4967_v27, %v2094_v33  ;;  %4774 = vmatprep.subr.bf16.mxu1 %v4993_v0 }
 0xc47   :  { %4014 = vmatmul.mubr.f32.vlgmr.msra.gmra.mrb[22].mxu0 %v2105_v55 }
 0xc48   :  { %4746 = vmatpush3.bf16.msra.mxu0 %v5077_v11  ;;  %4048 = vmatprep.mubr.msk.f32.mxu0 %vm4994_vm0, %v4995_v4  ;;  %v2540_v11 = vld [vmem:[%s6029_s7] sm:$0xff] }
 0xc49   :  { %4747 = vmatprep.subr.bf16.mxu0 %v4993_v0  ;;  %4776 = vmatpush3.bf16.msra.mxu1 %v5209_v48  ;;  %v2547_v48 = vld [vmem:[%s6029_s7 + $0x38] sm:$0xff] }
 0xc4a   :  { %4777 = vmatprep.subr.bf16.mxu1 %v4993_v0 }
 0xc4c   :  { %4749 = vmatpush3.bf16.msra.mxu0 %v5088_v14  ;;  %v2541_v14 = vld [vmem:[%s6029_s7 + $0x8] sm:$0xff] }
 0xc4d   :  { %4750 = vmatprep.subr.bf16.mxu0 %v4993_v0  ;;  %4779 = vmatpush3.bf16.msra.mxu1 %v5229_v54  ;;  %v4826_v54 = vpack.c.bf16 %v2547_v48, %v2546_v40 }
 0xc4e   :  { %4780 = vmatprep.subr.bf16.mxu1 %v4993_v0 }
 0xc50   :  { %4752 = vmatpush3.bf16.msra.mxu0 %v5104_v18  ;;  %v4817_v18 = vpack.c.bf16 %v2541_v14, %v2540_v11 }
 0xc51   :  { %4753 = vmatprep.subr.bf16.mxu0 %v4993_v0  ;;  %4782 = vmatpush3.bf16.msra.mxu1 %v5243_v58  ;;  %v2548_v58 = vld [vmem:[%s6029_s7 + $0x40] sm:$0xff] }
 0xc52   :  { %4783 = vmatprep.subr.bf16.mxu1 %v4993_v0 }
 0xc54   :  { %4755 = vmatpush3.bf16.msra.mxu0 %v5120_v22  ;;  %v2542_v22 = vld [vmem:[%s6029_s7 + $0x10] sm:$0xff] }
 0xc55   :  { %4756 = vmatprep.subr.bf16.mxu0 %v4993_v0  ;;  %4785 = vmatpush3.bf16.msra.mxu1 %v5255_v61  ;;  %v2549_v61 = vld [vmem:[%s6029_s7 + $0x48] sm:$0xff] }
 0xc56   :  { %4786 = vmatprep.subr.bf16.mxu1 %v4993_v0 }
 0xc58   :  { %4758 = vmatpush3.bf16.msra.mxu0 %v5132_v25  ;;  %v2543_v25 = vld [vmem:[%s6029_s7 + $0x18] sm:$0xff] }
 0xc59   :  { %4759 = vmatprep.subr.bf16.mxu0 %v4993_v0  ;;  %4788 = vmatpush3.bf16.msra.mxu1 %v5265_v1  ;;  %v4829_v1 = vpack.c.bf16 %v2549_v61, %v2548_v58 }
 0xc5a   :  { %4789 = vmatprep.subr.bf16.mxu1 %v4993_v0 }
 0xc5c   :  { %4761 = vmatpush3.bf16.msra.mxu0 %v5142_v28  ;;  %v4820_v28 = vpack.c.bf16 %v2543_v25, %v2542_v22 }
 0xc5d   :  { %4762 = vmatprep.subr.bf16.mxu0 %v4993_v0  ;;  %4791 = vmatpush3.bf16.msra.mxu1 %v5275_v5  ;;  %v2550_v5 = vld [vmem:[%s6029_s7 + $0x50] sm:$0xff] }
 0xc5e   :  { %4792 = vmatprep.subr.bf16.mxu1 %v4993_v0  ;;  %v4832_v36 = vpack.c.bf16 %v2551_v53, %v2550_v5 }
 0xc60   :  { %4764 = vmatpush3.bf16.msra.mxu0 %v5152_v31  ;;  %v2544_v31 = vld [vmem:[%s6029_s7 + $0x20] sm:$0xff] }
 0xc61   :  { %4765 = vmatprep.subr.bf16.mxu0 %v4993_v0 }
 0xc64   :  { %4767 = vmatpush3.bf16.msra.mxu0 %v5162_v34  ;;  %v2545_v34 = vld [vmem:[%s6029_s7 + $0x28] sm:$0xff] }
 0xc65   :  { %4816 = vmatprep.subr.bf16.mxu0 %v4993_v0  ;;  %v4823_v38 = vpack.c.bf16 %v2545_v34, %v2544_v31 }
 0xc67   :  { %4049 = vmatmul.mubr.f32.vlgmr.msra.gmra.mrb[24].mxu0 %v2105_v55 }
 0xc68   :  { %4818 = vmatpush3.bf16.msra.mxu0 %v4817_v18  ;;  %4153 = vmatprep.mubr.msk.f32.mxu0 %vm4994_vm0, %v4995_v4 }
 0xc69   :  { %4819 = vmatprep.subr.bf16.mxu0 %v4993_v0 }
 0xc6c   :  { %4821 = vmatpush3.bf16.msra.mxu0 %v4820_v28 }
 0xc6d   :  { %4822 = vmatprep.subr.bf16.mxu0 %v4993_v0 }
 0xc70   :  { %4824 = vmatpush3.bf16.msra.mxu0 %v4823_v38 }
 0xc71   :  { %4825 = vmatprep.subr.bf16.mxu0 %v4993_v0 }
 0xc74   :  { %4827 = vmatpush3.bf16.msra.mxu0 %v4826_v54 }
 0xc75   :  { %4828 = vmatprep.subr.bf16.mxu0 %v4993_v0 }
 0xc78   :  { %4830 = vmatpush3.bf16.msra.mxu0 %v4829_v1 }
 0xc79   :  { %4831 = vmatprep.subr.bf16.mxu0 %v4993_v0 }
 0xc7c   :  { %4833 = vmatpush3.bf16.msra.mxu0 %v4832_v36 }
 0xc7d   :  { %4834 = vmatprep.subr.bf16.mxu0 %v4993_v0 }
 0xc80   :  { %4836 = vmatpush3.bf16.msra.mxu0 %v4835_v41 }
 0xc81   :  { %4837 = vmatprep.subr.bf16.mxu0 %v4993_v0 }
 0xc84   :  { %4839 = vmatpush3.bf16.msra.mxu0 %v4838_v29 }
 0xc87   :  { %4154 = vmatmul.mubr.f32.vlgmr.msra.gmra.mrb[26].mxu0 %v5645_v23 }
 0xc88   :  { %4156 = vmatprep.mubr.msk.f32.mxu0 %vm4994_vm0, %v4995_v4 }
 0xd12   :  { %v2172_v12 = vpop.f32.mrb[28].mxu1 }
 0xd13   :  { %v3980_v46 = vpop.f32.mrb[29].mxu1 }
 0xd1a   :  { %v2242_v52 = vpop.f32.mrb[22].mxu0 }
 0xd1b   :  { %v2243_v10 = vadd.f32 %v2242_v52, %v2172_v12  ;;  %v4015_v32 = vpop.f32.mrb[23].mxu0 }
 0xd1d   :  { %v2246_v8 = vadd.f32 %v5777_v9, %v2243_v10 }
 0xd1f   :  { %v2670_v60 = vmul.f32 -1.442695, %v2246_v8  ;;  %4968 = vtanh.f32 %v2246_v8 }
 0xd21   :  { %4970 = vpow2.f32 %v2670_v60 }
 0xd29   :  { %v4969_v44 = vpop.eup %4968 }
 0xd2a   :  { %2256 = vrot.lane.b32.xlu0 %v4969_v44, %s4998_s25 }
 0xd2b   :  { %v4971_v62 = vpop.eup %4970 }
 0xd2c   :  { %v2250_v63 = vadd.f32 1.0, %v4971_v62 }
 0xd2e   :  { %4972 = vrcp.f32 %v2250_v63 }
 0xd38   :  { %v4973_v23 = vpop.eup %4972 }
 0xd39   :  { %2254 = vrot.lane.b32.xlu1 %v4973_v23, %s4997_s24 }
 0xd3a   :  { %v2331_v6 = vpop.f32.mrb[24].mxu0 }
 0xd3b   :  { %v2335_v13 = vadd.f32 %v2331_v6, %v5304_v15  ;;  %v4050_v59 = vpop.f32.mrb[25].mxu0 }
 0xd3d   :  { %v2671_v56 = vmul.f32 -1.442695, %v2335_v13  ;;  %4974 = vtanh.f32 %v2335_v13  ;;  %2258 = vrot.lane.b32.xlu1 %v4973_v23, %s4996_s23 }
 0xd3f   :  { %4976 = vpow2.f32 %v2671_v56 }
 0xd47   :  { %v4975_v16 = vpop.eup %4974 }
 0xd48   :  { %2345 = vrot.lane.b32.xlu1 %v4975_v16, %s4998_s25 }
 0xd49   :  { %v4977_v20 = vpop.eup %4976 }
 0xd4a   :  { %v2339_v2 = vadd.f32 1.0, %v4977_v20 }
 0xd4c   :  { %4978 = vrcp.f32 %v2339_v2 }
 0xd56   :  { %v4979_v7 = vpop.eup %4978 }
 0xd57   :  { %2343 = vrot.lane.b32.xlu0 %v4979_v7, %s4997_s24 }
 0xd5a   :  { %v2629_v15 = vpop.f32.mrb[26].mxu0 }
 0xd5b   :  { %v2630_v26 = vadd.f32 %v5980_v24, %v2629_v15  ;;  %v4155_v50 = vpop.f32.mrb[27].mxu0  ;;  %2347 = vrot.lane.b32.xlu0 %v4979_v7, %s4996_s23 }
 0xd5d   :  { %2643 = vst [vmem:[%s6031_s9] sm:$0xff] %v2630_v26 }
 0xd9c   :  { %v2257_v27 = vpop.permute.xlu0 %2256 }
 0xd9d   :  { %v2261_v55 = vmul.f32 %v4973_v23, %v2257_v27 }
 0xdab   :  { %v2255_v33 = vpop.permute.xlu1 %2254 }
 0xdac   :  { %v2260_v11 = vmul.f32 %v2255_v33, %v5861_v47 }
 0xdae   :  { %v2262_v14 = vadd.f32 %v2261_v55, %v2260_v11 }
 0xdaf   :  { %v2259_v22 = vpop.permute.xlu1 %2258 }
 0xdb0   :  { %4980 = vtanh.f32 %v2262_v14 }
 0xdba   :  { %v4981_v18 = vpop.eup %4980  ;;  %v2346_v47 = vpop.permute.xlu1 %2345 }
 0xdbb   :  { %v2264_v25 = vmul.f32 %v4981_v18, %v2259_v22  ;;  %v2350_v34 = vmul.f32 %v4979_v7, %v2346_v47 }
 0xdbd   :  { %v2529_v28 = vrot.slane %v2264_v25, 2  ;;  %4084 = vmatmul.mubr.f32.vlgmr.msra.gmra.mrb[30].mxu1 %v2264_v25 }
 0xdbe   :  { %4794 = vmatpush3.bf16.msra.mxu1 %v5200_v45  ;;  %4118 = vmatprep.mubr.msk.f32.mxu1 %vm4994_vm0, %v4995_v4 }
 0xdbf   :  { %4795 = vmatprep.subr.bf16.mxu1 %v4993_v0  ;;  %v2539_v31 = vsel %vm2535_vm4, %v5876_v17, %v2529_v28 }
 0xdc0   :  { %4157 = vmatmul.mubr.f32.gmra.mrb[28].mxu0 %v2539_v31 }
 0xdc1   :  { %4159 = vmatprep.mubr.msk.f32.mxu0 %vm4994_vm0, %v4995_v4 }
 0xdc2   :  { %4797 = vmatpush3.bf16.msra.mxu1 %v5219_v51 }
 0xdc3   :  { %4798 = vmatprep.subr.bf16.mxu1 %v4993_v0 }
 0xdc6   :  { %4800 = vmatpush3.bf16.msra.mxu1 %v5239_v57 }
 0xdc7   :  { %4801 = vmatprep.subr.bf16.mxu1 %v4993_v0 }
 0xdc9   :  { %v2344_v45 = vpop.permute.xlu0 %2343 }
 0xdca   :  { %v2349_v38 = vmul.f32 %v2344_v45, %v5865_v19  ;;  %4803 = vmatpush3.bf16.msra.mxu1 %v5315_v30 }
 0xdcb   :  { %4804 = vmatprep.subr.bf16.mxu1 %v4993_v0 }
 0xdcc   :  { %v2351_v17 = vadd.f32 %v2350_v34, %v2349_v38 }
 0xdcd   :  { %v2348_v51 = vpop.permute.xlu0 %2347 }
 0xdce   :  { %4982 = vtanh.f32 %v2351_v17  ;;  %4806 = vmatpush3.bf16.msra.mxu1 %v5325_v35 }
 0xdcf   :  { %4807 = vmatprep.subr.bf16.mxu1 %v4993_v0 }
 0xdd2   :  { %4809 = vmatpush3.bf16.msra.mxu1 %v5335_v39 }
 0xdd3   :  { %4810 = vmatprep.subr.bf16.mxu1 %v4993_v0 }
 0xdd6   :  { %4812 = vmatpush3.bf16.msra.mxu1 %v5344_v43 }
 0xdd7   :  { %4813 = vmatprep.subr.bf16.mxu1 %v4993_v0 }
 0xdd8   :  { %v4983_v4 = vpop.eup %4982 }
 0xdd9   :  { %v2353_v57 = vmul.f32 %v4983_v4, %v2348_v51 }
 0xdda   :  { %4815 = vmatpush3.bf16.msra.mxu1 %v5356_v49 }
 0xddd   :  { %4119 = vmatmul.mubr.f32.vlgmr.msra.gmra.mrb[32].mxu1 %v2353_v57 }
 0xe90   :  { %v2420_v30 = vpop.f32.mrb[30].mxu1 }
 0xe91   :  { %v4085_v19 = vpop.f32.mrb[31].mxu1 }
 0xe93   :  { %v2634_v40 = vpop.f32.mrb[28].mxu0 }
 0xe94   :  { %v2635_v35 = vadd.f32 %v5980_v24, %v2634_v40  ;;  %v4158_v48 = vpop.f32.mrb[29].mxu0 }
 0xe96   :  { %2644 = vst [vmem:[%s6031_s9 + $0x8] sm:$0xff] %v2635_v35 }
 0xeb0   :  { %v2490_v39 = vpop.f32.mrb[32].mxu1 }
 0xeb1   :  { %v2491_v43 = vadd.f32 %v2490_v39, %v2420_v30  ;;  %v4120_v54 = vpop.f32.mrb[33].mxu1 }
 0xeb3   :  { %v2494_v0 = vadd.f32 %v5777_v9, %v2491_v43 }
 0xeb5   :  { %v2672_v58 = vmul.f32 -1.442695, %v2494_v0  ;;  %4984 = vtanh.f32 %v2494_v0 }
 0xeb7   :  { %4986 = vpow2.f32 %v2672_v58 }
 0xebf   :  { %v4985_v49 = vpop.eup %4984 }
 0xec0   :  { %2504 = vrot.lane.b32.xlu0 %v4985_v49, %s4998_s25 }
 0xec1   :  { %v4987_v61 = vpop.eup %4986 }
 0xec2   :  { %v2498_v1 = vadd.f32 1.0, %v4987_v61 }
 0xec4   :  { %4988 = vrcp.f32 %v2498_v1 }
 0xece   :  { %v4989_v5 = vpop.eup %4988 }
 0xecf   :  { %2502 = vrot.lane.b32.xlu1 %v4989_v5, %s4997_s24 }
 0xed3   :  { %2506 = vrot.lane.b32.xlu1 %v4989_v5, %s4996_s23 }
 0xf32   :  { %v2505_v53 = vpop.permute.xlu0 %2504 }
 0xf33   :  { %v2509_v37 = vmul.f32 %v4989_v5, %v2505_v53 }
 0xf41   :  { %v2503_v36 = vpop.permute.xlu1 %2502 }
 0xf42   :  { %v2508_v3 = vmul.f32 %v2503_v36, %v2262_v14 }
 0xf44   :  { %v2510_v41 = vadd.f32 %v2509_v37, %v2508_v3 }
 0xf45   :  { %v2507_v42 = vpop.permute.xlu1 %2506 }
 0xf46   :  { %4990 = vtanh.f32 %v2510_v41 }
 0xf50   :  { %v4991_v9 = vpop.eup %4990 }
 0xf51   :  { %v2512_v21 = vmul.f32 %v4991_v9, %v2507_v42 }
 0xf53   :  { %4160 = vmatmul.mubr.f32.gmra.mrb[30].mxu0 %v2512_v21 }
0x1026   :  { %v2639_v29 = vpop.f32.mrb[30].mxu0 }
0x1027   :  { %v2640_v12 = vadd.f32 %v5980_v24, %v2639_v29  ;;  %v4161_v46 = vpop.f32.mrb[31].mxu0 }
0x1029   :  { %2645 = vst [vmem:[%s6031_s9 + $0x10] sm:$0x3] %v2640_v12 }

</bundles_post_ra>
